<compile_context>
chip_gen: v7x
topology: tpu7x:2x2x1
jax: 0.10.0
libtpu: 0.0.40
codegen_flags: <defaults>
</compile_context>

<pallas_src>
import math

import jax
import jax.numpy as jnp
from jax import lax
from jax.experimental import pallas as pl
from jax.experimental.pallas import tpu as pltpu

N_LAYERS = 12          # nn.TransformerDecoder(..., 12)
FF_DIM = 2048          # nn.TransformerDecoderLayer default dim_feedforward
LN_EPS = 1e-5
NEG_INF = -1e30        # additive mask value; scores stay f32 (never cast to bf16)


def _mm_nt(a, b):
    # a: (M, K), b: (N, K)  ->  (M, N) == a @ b.T   (PyTorch Linear convention)
    return lax.dot_general(a, b, (((1,), (1,)), ((), ())),
                           preferred_element_type=jnp.float32)


def _mm_nn(a, b):
    # a: (M, K), b: (K, N)  ->  (M, N)
    return lax.dot_general(a, b, (((1,), (0,)), ((), ())),
                           preferred_element_type=jnp.float32)


def init_params(key, n_dim, n_layers=N_LAYERS, ff_dim=FF_DIM):
    """Deterministic synthetic parameters, stacked per layer.

    Large weights are stored in bf16 (MXU-native, half the HBM traffic);
    biases and LayerNorm affine params stay f32.  The packed QKV weight/bias
    use a leading (q,k,v) axis; linear1 is stored transposed as (D_in, F).
    """
    D, F, L = n_dim, ff_dim, n_layers
    ks = jax.random.split(key, 12)
    wf = lambda k, shape, s=0.05: (s * jax.random.normal(k, shape)).astype(jnp.float32)
    b16 = lambda a: a.astype(jnp.bfloat16)
    ones = lambda shape: jnp.ones(shape, jnp.float32)
    zeros = lambda shape: jnp.zeros(shape, jnp.float32)
    return {
        # self-attention (packed [Wq;Wk;Wv] along a leading axis, (out,in) layout)
        "sa_in_w": b16(wf(ks[0], (L, 3, D, D))),
        "sa_in_b": wf(ks[1], (L, 3, D), 0.02),
        "sa_out_w": b16(wf(ks[2], (L, D, D))),
        "sa_out_b": wf(ks[3], (L, 1, D), 0.02),
        # cross-attention
        "ca_in_w": b16(wf(ks[4], (L, 3, D, D))),
        "ca_in_b": wf(ks[5], (L, 3, D), 0.02),
        "ca_out_w": b16(wf(ks[6], (L, D, D))),
        "ca_out_b": wf(ks[7], (L, 1, D), 0.02),
        # feed-forward (l1_w stored transposed: (D_in, F) -> lane-dense last dim)
        "l1_w": b16(wf(ks[8], (L, D, F))),
        "l1_b": wf(ks[9], (L, 1, F), 0.02),
        "l2_w": b16(wf(ks[10], (L, D, F))),      # PyTorch linear2 weight shape (D, F)
        "l2_b": wf(ks[11], (L, 1, D), 0.02),
        # layer norms (f32)
        "n1_w": ones((L, 1, D)), "n1_b": zeros((L, 1, D)),
        "n2_w": ones((L, 1, D)), "n2_b": zeros((L, 1, D)),
        "n3_w": ones((L, 1, D)), "n3_b": zeros((L, 1, D)),
    }


PARAM_ORDER = ["sa_in_w", "sa_in_b", "sa_out_w", "sa_out_b",
               "ca_in_w", "ca_in_b", "ca_out_w", "ca_out_b",
               "l1_w", "l1_b", "l2_w", "l2_b",
               "n1_w", "n1_b", "n2_w", "n2_b", "n3_w", "n3_b"]


def make_pred_transformer(n_dim, n_heads=8, n_layers=N_LAYERS, ff_dim=FF_DIM):
    D, H, L, F = n_dim, n_heads, n_layers, ff_dim
    assert D % H == 0
    HD = D // H
    scale = 1.0 / math.sqrt(HD)

    def forward(x, params):
        B, S, _ = x.shape
        T = S + 1
        RQ, RK = B * T, B * S
        x_f32 = x.astype(jnp.float32)

        # glue: tgt = cat([ones(B,1,D), x], dim=1); flatten batch into rows.
        tgt0 = jnp.concatenate([jnp.ones((B, 1, D), jnp.float32), x_f32], axis=1)
        tgt_flat = tgt0.reshape(RQ, D)          # (B*T, D), rows batch-major
        mem_flat = x_f32.reshape(RK, D)         # (B*S, D)

        # Additive attention biases (0 / -1e30), block-diagonal across batches,
        # causal for self-attention, tiled over heads -> one masked softmax per
        # attention.  Computed once in the wrapper (layer-independent).
        qb = jnp.repeat(jnp.arange(B), T)       # batch id of each query row
        qt = jnp.tile(jnp.arange(T), B)         # position of each query row
        keep_sa = (qb[:, None] == qb[None, :]) & (qt[None, :] <= qt[:, None])
        sa_bias = jnp.tile(
            jnp.where(keep_sa, 0.0, NEG_INF).astype(jnp.float32), (H, 1))   # (H*RQ, RQ)
        kb = jnp.repeat(jnp.arange(B), S)
        keep_ca = qb[:, None] == kb[None, :]
        ca_bias = jnp.tile(
            jnp.where(keep_ca, 0.0, NEG_INF).astype(jnp.float32), (H, 1))   # (H*RQ, RK)

        def kernel(tgt_ref, mem_ref, sa_bias_ref, ca_bias_ref,
                   sa_w, sa_b, sa_ow, sa_ob,
                   ca_w, ca_b, ca_ow, ca_ob,
                   w1, b1, w2, b2,
                   n1w, n1b, n2w, n2b, n3w, n3b,
                   out_ref):
            mem_bf = mem_ref[...].astype(jnp.bfloat16)   # (RK, D) memory == x
            sa_mask = sa_bias_ref[...]                    # (H*RQ, RQ) f32
            ca_mask = ca_bias_ref[...]                    # (H*RQ, RK) f32

            def layer_norm(y, w, b):                      # all f32
                mu = jnp.mean(y, axis=-1, keepdims=True)
                var = jnp.mean(jnp.square(y - mu), axis=-1, keepdims=True)
                return (y - mu) * lax.rsqrt(var + LN_EPS) * w + b

            def mha(q_src_bf, kv_bf, in_w, in_b, out_w, out_b, bias):
                # q_src_bf: (RQ, D) bf16, kv_bf: (rk, D) bf16
                # in_w: (3, D, D) bf16, in_b: (3, D) f32,
                # out_w: (D, D) bf16,  out_b: (1, D) f32, bias: (H*RQ, rk) f32
                q = _mm_nt(q_src_bf, in_w[0]) + in_b[0:1, :]     # (RQ, D) f32
                k = _mm_nt(kv_bf, in_w[1]) + in_b[1:2, :]        # (rk, D) f32
                v = _mm_nt(kv_bf, in_w[2]) + in_b[2:3, :]        # (rk, D) f32
                q_bf = (q * scale).astype(jnp.bfloat16)
                k_bf = k.astype(jnp.bfloat16)
                v_bf = v.astype(jnp.bfloat16)
                # per-head scores stacked along sublanes -> ONE masked softmax
                s = jnp.concatenate(
                    [_mm_nt(q_bf[:, h * HD:(h + 1) * HD],
                            k_bf[:, h * HD:(h + 1) * HD]) for h in range(H)],
                    axis=0)                                      # (H*RQ, rk) f32
                s = s + bias
                s = s - jnp.max(s, axis=-1, keepdims=True)
                p = jnp.exp(s)
                p = (p / jnp.sum(p, axis=-1, keepdims=True)).astype(jnp.bfloat16)
                # per-head PV, heads re-assembled along lanes, single out-proj
                ctx = jnp.concatenate(
                    [_mm_nn(p[h * RQ:(h + 1) * RQ, :],
                            v_bf[:, h * HD:(h + 1) * HD]) for h in range(H)],
                    axis=-1)                                     # (RQ, D) f32
                return _mm_nt(ctx.astype(jnp.bfloat16), out_w) + out_b

            def one_layer(l, h):
                # post-norm decoder layer (norm_first=False); dropout == identity
                h_bf = h.astype(jnp.bfloat16)
                sa = mha(h_bf, h_bf, sa_w[l], sa_b[l], sa_ow[l], sa_ob[l], sa_mask)
                h = layer_norm(h + sa, n1w[l], n1b[l])
                h_bf = h.astype(jnp.bfloat16)
                ca = mha(h_bf, mem_bf, ca_w[l], ca_b[l], ca_ow[l], ca_ob[l], ca_mask)
                h = layer_norm(h + ca, n2w[l], n2b[l])
                h_bf = h.astype(jnp.bfloat16)
                hid = jnp.maximum(_mm_nn(h_bf, w1[l]) + b1[l], 0.0)          # (RQ, F)
                ff = _mm_nt(hid.astype(jnp.bfloat16), w2[l]) + b2[l]         # (RQ, D)
                h = layer_norm(h + ff, n3w[l], n3b[l])
                return h

            h = lax.fori_loop(0, L, one_layer, tgt_ref[...])     # (RQ, D) f32
            # last token of each batch block is the prediction
            out_ref[...] = jnp.concatenate(
                [h[(b + 1) * T - 1:(b + 1) * T, :] for b in range(B)], axis=0)

        vmem_spec = pl.BlockSpec(memory_space=pltpu.MemorySpace.VMEM)
        in_specs = [vmem_spec] * (4 + len(PARAM_ORDER))

        return pl.pallas_call(
            kernel,
            out_shape=jax.ShapeDtypeStruct((B, D), jnp.float32),
            in_specs=in_specs,
            out_specs=vmem_spec,
            compiler_params=pltpu.CompilerParams(
                vmem_limit_bytes=32 * 1024 * 1024,
            ),
        )(tgt_flat, mem_flat, sa_bias, ca_bias,
          *[params[name] for name in PARAM_ORDER])

    return forward


def ref_forward(x, params, n_heads=8, n_layers=N_LAYERS):
    """Pure-JAX reference of the same forward pass (eval-mode).

    MXU operands are cast to bf16 exactly like the kernel (weights are already
    stored in bf16), with f32 accumulation and f32 element-wise math, so the
    comparison checks structure/indexing rather than precision policy.
    """
    B, S, D = x.shape
    H = n_heads
    HD = D // H
    scale = 1.0 / math.sqrt(HD)
    f32 = jnp.float32
    bf = lambda a: a.astype(jnp.bfloat16)
    x = x.astype(f32)
    h = jnp.concatenate([jnp.ones((B, 1, D), f32), x], axis=1)

    def mm(a, b, spec):
        return jnp.einsum(spec, bf(a), bf(b), preferred_element_type=f32)

    def mha(q_in, kv_in, in_w, in_b, out_w, out_b, causal):
        tq, tk = q_in.shape[1], kv_in.shape[1]
        q = mm(q_in, in_w[0], "btd,ed->bte") + in_b[0]
        k = mm(kv_in, in_w[1], "btd,ed->bte") + in_b[1]
        v = mm(kv_in, in_w[2], "btd,ed->bte") + in_b[2]
        q = q * scale
        qh = q.reshape(B, tq, H, HD)
        kh = k.reshape(B, tk, H, HD)
        vh = v.reshape(B, tk, H, HD)
        s = jnp.einsum("bqhe,bkhe->bhqk", bf(qh), bf(kh), preferred_element_type=f32)
        if causal:
            keep = jnp.tril(jnp.ones((tq, tk), bool))
            s = jnp.where(keep[None, None], s, NEG_INF)
        p = jax.nn.softmax(s, axis=-1)
        o = jnp.einsum("bhqk,bkhe->bqhe", bf(p), bf(vh), preferred_element_type=f32)
        o = o.reshape(B, tq, D)
        return mm(o, out_w, "bte,de->btd") + out_b[0]

    def ln(y, w, b):
        mu = jnp.mean(y, axis=-1, keepdims=True)
        var = jnp.mean(jnp.square(y - mu), axis=-1, keepdims=True)
        return (y - mu) * lax.rsqrt(var + LN_EPS) * w[0] + b[0]

    for l in range(n_layers):
        g = lambda name: params[name][l].astype(f32)
        sa = mha(h, h, g("sa_in_w"), g("sa_in_b"), g("sa_out_w"), g("sa_out_b"), True)
        h = ln(h + sa, g("n1_w"), g("n1_b"))
        ca = mha(h, x, g("ca_in_w"), g("ca_in_b"), g("ca_out_w"), g("ca_out_b"), False)
        h = ln(h + ca, g("n2_w"), g("n2_b"))
        hid = jnp.maximum(mm(h, g("l1_w"), "btd,df->btf") + g("l1_b")[0], 0.0)
        ff = mm(hid, g("l2_w"), "btf,df->btd") + g("l2_b")[0]
        h = ln(h + ff, g("n3_w"), g("n3_b"))
    return h[:, -1, :]


if __name__ == "__main__":
    key = jax.random.PRNGKey(0)
    k_x, k_p = jax.random.split(key)
    B, S, D, H = 2, 8, 32, 8          # x: (batch, seq, n_dim), n_heads=8
    x = jax.random.normal(k_x, (B, S, D), jnp.float32)
    params = init_params(k_p, D)

    fwd = make_pred_transformer(D, n_heads=H)
    out = jax.block_until_ready(jax.jit(fwd)(x, params))
    assert out.shape == (B, D) and out.dtype == jnp.float32

    ref = jax.block_until_ready(ref_forward(x, params, n_heads=H))
    max_err = float(jnp.max(jnp.abs(out - ref)))
    if max_err > 5e-3:
        raise RuntimeError(f"kernel mismatch vs JAX reference, max abs err = {max_err}")

    print("KERNEL_OK")
</pallas_src>

<mosaic_0001>
module attributes {stable_mosaic.version = 11 : i64} {
  func.func @kernel(%arg0: memref<18x32xf32, #tpu.memory_space<vmem>>, %arg1: memref<16x32xf32, #tpu.memory_space<vmem>>, %arg2: memref<144x18xf32, #tpu.memory_space<vmem>>, %arg3: memref<144x16xf32, #tpu.memory_space<vmem>>, %arg4: memref<12x3x32x32xbf16, #tpu.memory_space<vmem>>, %arg5: memref<12x3x32xf32, #tpu.memory_space<vmem>>, %arg6: memref<12x32x32xbf16, #tpu.memory_space<vmem>>, %arg7: memref<12x1x32xf32, #tpu.memory_space<vmem>>, %arg8: memref<12x3x32x32xbf16, #tpu.memory_space<vmem>>, %arg9: memref<12x3x32xf32, #tpu.memory_space<vmem>>, %arg10: memref<12x32x32xbf16, #tpu.memory_space<vmem>>, %arg11: memref<12x1x32xf32, #tpu.memory_space<vmem>>, %arg12: memref<12x32x2048xbf16, #tpu.memory_space<vmem>>, %arg13: memref<12x1x2048xf32, #tpu.memory_space<vmem>>, %arg14: memref<12x32x2048xbf16, #tpu.memory_space<vmem>>, %arg15: memref<12x1x32xf32, #tpu.memory_space<vmem>>, %arg16: memref<12x1x32xf32, #tpu.memory_space<vmem>>, %arg17: memref<12x1x32xf32, #tpu.memory_space<vmem>>, %arg18: memref<12x1x32xf32, #tpu.memory_space<vmem>>, %arg19: memref<12x1x32xf32, #tpu.memory_space<vmem>>, %arg20: memref<12x1x32xf32, #tpu.memory_space<vmem>>, %arg21: memref<12x1x32xf32, #tpu.memory_space<vmem>>, %arg22: memref<2x32xf32, #tpu.memory_space<vmem>>) attributes {dimension_semantics = [], scalar_prefetch = 0 : i64, scratch_operands = 0 : i64, tpu.core_type = #tpu.core_type<tc>} {
    %c0 = arith.constant 0 : index
    %c0_0 = arith.constant 0 : index
    %0 = vector.load %arg1[%c0, %c0_0] : memref<16x32xf32, #tpu.memory_space<vmem>>, vector<16x32xf32>
    %1 = arith.truncf %0 : vector<16x32xf32> to vector<16x32xbf16>
    %c0_1 = arith.constant 0 : index
    %c0_2 = arith.constant 0 : index
    %2 = vector.load %arg2[%c0_1, %c0_2] : memref<144x18xf32, #tpu.memory_space<vmem>>, vector<144x18xf32>
    %c0_3 = arith.constant 0 : index
    %c0_4 = arith.constant 0 : index
    %3 = vector.load %arg3[%c0_3, %c0_4] : memref<144x16xf32, #tpu.memory_space<vmem>>, vector<144x16xf32>
    %c0_5 = arith.constant 0 : index
    %c0_6 = arith.constant 0 : index
    %4 = vector.load %arg0[%c0_5, %c0_6] : memref<18x32xf32, #tpu.memory_space<vmem>>, vector<18x32xf32>
    %c0_i32 = arith.constant 0 : i32
    %c12_i32 = arith.constant 12 : i32
    %5 = arith.addi %c0_i32, %c12_i32 : i32
    %c1_i32 = arith.constant 1 : i32
    %6 = scf.for %arg23 = %c0_i32 to %5 step %c1_i32 iter_args(%arg24 = %4) -> (vector<18x32xf32>)  : i32 {
      %11 = arith.truncf %arg24 : vector<18x32xf32> to vector<18x32xbf16>
      %12 = arith.index_cast %arg23 : i32 to index
      %c0_10 = arith.constant 0 : index
      %c0_11 = arith.constant 0 : index
      %c0_12 = arith.constant 0 : index
      %13 = vector.load %arg4[%12, %c0_10, %c0_11, %c0_12] : memref<12x3x32x32xbf16, #tpu.memory_space<vmem>>, vector<1x3x32x32xbf16>
      %14 = vector.shape_cast %13 : vector<1x3x32x32xbf16> to vector<3x32x32xbf16>
      %15 = arith.index_cast %arg23 : i32 to index
      %c0_13 = arith.constant 0 : index
      %c0_14 = arith.constant 0 : index
      %16 = vector.load %arg5[%15, %c0_13, %c0_14] : memref<12x3x32xf32, #tpu.memory_space<vmem>>, vector<1x3x32xf32>
      %17 = vector.shape_cast %16 : vector<1x3x32xf32> to vector<3x32xf32>
      %18 = arith.index_cast %arg23 : i32 to index
      %c0_15 = arith.constant 0 : index
      %c0_16 = arith.constant 0 : index
      %19 = vector.load %arg6[%18, %c0_15, %c0_16] : memref<12x32x32xbf16, #tpu.memory_space<vmem>>, vector<1x32x32xbf16>
      %20 = vector.shape_cast %19 : vector<1x32x32xbf16> to vector<32x32xbf16>
      %21 = arith.index_cast %arg23 : i32 to index
      %c0_17 = arith.constant 0 : index
      %c0_18 = arith.constant 0 : index
      %22 = vector.load %arg7[%21, %c0_17, %c0_18] : memref<12x1x32xf32, #tpu.memory_space<vmem>>, vector<1x1x32xf32>
      %23 = vector.shape_cast %22 : vector<1x1x32xf32> to vector<1x32xf32>
      %24 = vector.extract_strided_slice %14 {offsets = [0, 0, 0], sizes = [1, 32, 32], strides = [1, 1, 1]} : vector<3x32x32xbf16> to vector<1x32x32xbf16>
      %25 = vector.shape_cast %24 : vector<1x32x32xbf16> to vector<32x32xbf16>
      %cst = arith.constant dense<0.000000e+00> : vector<18x32xf32>
      %26 = tpu.matmul %11, %25, %cst {dimension_numbers = #tpu.dot_dimension_numbers<[1], [1], [0], [0], [0, 0, 1, 0], [], []>} : vector<18x32xbf16>, vector<32x32xbf16>, vector<18x32xf32> -> vector<18x32xf32>
      %27 = vector.extract_strided_slice %17 {offsets = [0, 0], sizes = [1, 32], strides = [1, 1]} : vector<3x32xf32> to vector<1x32xf32>
      %28 = vector.broadcast %27 : vector<1x32xf32> to vector<18x32xf32>
      %29 = arith.addf %26, %28 : vector<18x32xf32>
      %30 = vector.extract_strided_slice %14 {offsets = [1, 0, 0], sizes = [1, 32, 32], strides = [1, 1, 1]} : vector<3x32x32xbf16> to vector<1x32x32xbf16>
      %31 = vector.shape_cast %30 : vector<1x32x32xbf16> to vector<32x32xbf16>
      %cst_19 = arith.constant dense<0.000000e+00> : vector<18x32xf32>
      %32 = tpu.matmul %11, %31, %cst_19 {dimension_numbers = #tpu.dot_dimension_numbers<[1], [1], [0], [0], [0, 0, 1, 0], [], []>} : vector<18x32xbf16>, vector<32x32xbf16>, vector<18x32xf32> -> vector<18x32xf32>
      %33 = vector.extract_strided_slice %17 {offsets = [1, 0], sizes = [1, 32], strides = [1, 1]} : vector<3x32xf32> to vector<1x32xf32>
      %34 = vector.broadcast %33 : vector<1x32xf32> to vector<18x32xf32>
      %35 = arith.addf %32, %34 : vector<18x32xf32>
      %36 = vector.extract_strided_slice %14 {offsets = [2, 0, 0], sizes = [1, 32, 32], strides = [1, 1, 1]} : vector<3x32x32xbf16> to vector<1x32x32xbf16>
      %37 = vector.shape_cast %36 : vector<1x32x32xbf16> to vector<32x32xbf16>
      %cst_20 = arith.constant dense<0.000000e+00> : vector<18x32xf32>
      %38 = tpu.matmul %11, %37, %cst_20 {dimension_numbers = #tpu.dot_dimension_numbers<[1], [1], [0], [0], [0, 0, 1, 0], [], []>} : vector<18x32xbf16>, vector<32x32xbf16>, vector<18x32xf32> -> vector<18x32xf32>
      %39 = vector.extract_strided_slice %17 {offsets = [2, 0], sizes = [1, 32], strides = [1, 1]} : vector<3x32xf32> to vector<1x32xf32>
      %40 = vector.broadcast %39 : vector<1x32xf32> to vector<18x32xf32>
      %41 = arith.addf %38, %40 : vector<18x32xf32>
      %cst_21 = arith.constant 5.000000e-01 : f32
      %42 = vector.broadcast %cst_21 : f32 to vector<18x32xf32>
      %43 = arith.mulf %29, %42 : vector<18x32xf32>
      %44 = arith.truncf %43 : vector<18x32xf32> to vector<18x32xbf16>
      %45 = arith.truncf %35 : vector<18x32xf32> to vector<18x32xbf16>
      %46 = arith.truncf %41 : vector<18x32xf32> to vector<18x32xbf16>
      %47 = vector.extract_strided_slice %44 {offsets = [0, 0], sizes = [18, 4], strides = [1, 1]} : vector<18x32xbf16> to vector<18x4xbf16>
      %48 = vector.extract_strided_slice %45 {offsets = [0, 0], sizes = [18, 4], strides = [1, 1]} : vector<18x32xbf16> to vector<18x4xbf16>
      %cst_22 = arith.constant dense<0.000000e+00> : vector<18x18xf32>
      %49 = tpu.matmul %47, %48, %cst_22 {dimension_numbers = #tpu.dot_dimension_numbers<[1], [1], [0], [0], [0, 0, 1, 0], [], []>} : vector<18x4xbf16>, vector<18x4xbf16>, vector<18x18xf32> -> vector<18x18xf32>
      %50 = vector.extract_strided_slice %44 {offsets = [0, 4], sizes = [18, 4], strides = [1, 1]} : vector<18x32xbf16> to vector<18x4xbf16>
      %51 = vector.extract_strided_slice %45 {offsets = [0, 4], sizes = [18, 4], strides = [1, 1]} : vector<18x32xbf16> to vector<18x4xbf16>
      %cst_23 = arith.constant dense<0.000000e+00> : vector<18x18xf32>
      %52 = tpu.matmul %50, %51, %cst_23 {dimension_numbers = #tpu.dot_dimension_numbers<[1], [1], [0], [0], [0, 0, 1, 0], [], []>} : vector<18x4xbf16>, vector<18x4xbf16>, vector<18x18xf32> -> vector<18x18xf32>
      %53 = vector.extract_strided_slice %44 {offsets = [0, 8], sizes = [18, 4], strides = [1, 1]} : vector<18x32xbf16> to vector<18x4xbf16>
      %54 = vector.extract_strided_slice %45 {offsets = [0, 8], sizes = [18, 4], strides = [1, 1]} : vector<18x32xbf16> to vector<18x4xbf16>
      %cst_24 = arith.constant dense<0.000000e+00> : vector<18x18xf32>
      %55 = tpu.matmul %53, %54, %cst_24 {dimension_numbers = #tpu.dot_dimension_numbers<[1], [1], [0], [0], [0, 0, 1, 0], [], []>} : vector<18x4xbf16>, vector<18x4xbf16>, vector<18x18xf32> -> vector<18x18xf32>
      %56 = vector.extract_strided_slice %44 {offsets = [0, 12], sizes = [18, 4], strides = [1, 1]} : vector<18x32xbf16> to vector<18x4xbf16>
      %57 = vector.extract_strided_slice %45 {offsets = [0, 12], sizes = [18, 4], strides = [1, 1]} : vector<18x32xbf16> to vector<18x4xbf16>
      %cst_25 = arith.constant dense<0.000000e+00> : vector<18x18xf32>
      %58 = tpu.matmul %56, %57, %cst_25 {dimension_numbers = #tpu.dot_dimension_numbers<[1], [1], [0], [0], [0, 0, 1, 0], [], []>} : vector<18x4xbf16>, vector<18x4xbf16>, vector<18x18xf32> -> vector<18x18xf32>
      %59 = vector.extract_strided_slice %44 {offsets = [0, 16], sizes = [18, 4], strides = [1, 1]} : vector<18x32xbf16> to vector<18x4xbf16>
      %60 = vector.extract_strided_slice %45 {offsets = [0, 16], sizes = [18, 4], strides = [1, 1]} : vector<18x32xbf16> to vector<18x4xbf16>
      %cst_26 = arith.constant dense<0.000000e+00> : vector<18x18xf32>
      %61 = tpu.matmul %59, %60, %cst_26 {dimension_numbers = #tpu.dot_dimension_numbers<[1], [1], [0], [0], [0, 0, 1, 0], [], []>} : vector<18x4xbf16>, vector<18x4xbf16>, vector<18x18xf32> -> vector<18x18xf32>
      %62 = vector.extract_strided_slice %44 {offsets = [0, 20], sizes = [18, 4], strides = [1, 1]} : vector<18x32xbf16> to vector<18x4xbf16>
      %63 = vector.extract_strided_slice %45 {offsets = [0, 20], sizes = [18, 4], strides = [1, 1]} : vector<18x32xbf16> to vector<18x4xbf16>
      %cst_27 = arith.constant dense<0.000000e+00> : vector<18x18xf32>
      %64 = tpu.matmul %62, %63, %cst_27 {dimension_numbers = #tpu.dot_dimension_numbers<[1], [1], [0], [0], [0, 0, 1, 0], [], []>} : vector<18x4xbf16>, vector<18x4xbf16>, vector<18x18xf32> -> vector<18x18xf32>
      %65 = vector.extract_strided_slice %44 {offsets = [0, 24], sizes = [18, 4], strides = [1, 1]} : vector<18x32xbf16> to vector<18x4xbf16>
      %66 = vector.extract_strided_slice %45 {offsets = [0, 24], sizes = [18, 4], strides = [1, 1]} : vector<18x32xbf16> to vector<18x4xbf16>
      %cst_28 = arith.constant dense<0.000000e+00> : vector<18x18xf32>
      %67 = tpu.matmul %65, %66, %cst_28 {dimension_numbers = #tpu.dot_dimension_numbers<[1], [1], [0], [0], [0, 0, 1, 0], [], []>} : vector<18x4xbf16>, vector<18x4xbf16>, vector<18x18xf32> -> vector<18x18xf32>
      %68 = vector.extract_strided_slice %44 {offsets = [0, 28], sizes = [18, 4], strides = [1, 1]} : vector<18x32xbf16> to vector<18x4xbf16>
      %69 = vector.extract_strided_slice %45 {offsets = [0, 28], sizes = [18, 4], strides = [1, 1]} : vector<18x32xbf16> to vector<18x4xbf16>
      %cst_29 = arith.constant dense<0.000000e+00> : vector<18x18xf32>
      %70 = tpu.matmul %68, %69, %cst_29 {dimension_numbers = #tpu.dot_dimension_numbers<[1], [1], [0], [0], [0, 0, 1, 0], [], []>} : vector<18x4xbf16>, vector<18x4xbf16>, vector<18x18xf32> -> vector<18x18xf32>
      %71 = tpu.concatenate %49, %52, %55, %58, %61, %64, %67, %70 in 0 : vector<18x18xf32>, vector<18x18xf32>, vector<18x18xf32>, vector<18x18xf32>, vector<18x18xf32>, vector<18x18xf32>, vector<18x18xf32>, vector<18x18xf32> -> vector<144x18xf32>
      %72 = arith.addf %71, %2 : vector<144x18xf32>
      %cst_30 = arith.constant dense<0xFF800000> : vector<144xf32>
      %73 = vector.multi_reduction <maximumf>, %72, %cst_30 [1] : vector<144x18xf32> to vector<144xf32>
      %74 = vector.shape_cast %73 : vector<144xf32> to vector<144x1xf32>
      %75 = vector.broadcast %74 : vector<144x1xf32> to vector<144x18xf32>
      %76 = arith.subf %72, %75 : vector<144x18xf32>
      %77 = math.exp %76 : vector<144x18xf32>
      %cst_31 = arith.constant dense<0.000000e+00> : vector<144xf32>
      %78 = vector.multi_reduction <add>, %77, %cst_31 [1] : vector<144x18xf32> to vector<144xf32>
      %79 = vector.shape_cast %78 : vector<144xf32> to vector<144x1xf32>
      %80 = vector.broadcast %79 : vector<144x1xf32> to vector<144x18xf32>
      %81 = arith.divf %77, %80 : vector<144x18xf32>
      %82 = arith.truncf %81 : vector<144x18xf32> to vector<144x18xbf16>
      %83 = vector.extract_strided_slice %82 {offsets = [0, 0], sizes = [18, 18], strides = [1, 1]} : vector<144x18xbf16> to vector<18x18xbf16>
      %84 = vector.extract_strided_slice %46 {offsets = [0, 0], sizes = [18, 4], strides = [1, 1]} : vector<18x32xbf16> to vector<18x4xbf16>
      %cst_32 = arith.constant dense<0.000000e+00> : vector<18x4xf32>
      %85 = tpu.matmul %83, %84, %cst_32 {dimension_numbers = #tpu.dot_dimension_numbers<[1], [0], [0], [1], [0, 0, 1, 1], [], []>} : vector<18x18xbf16>, vector<18x4xbf16>, vector<18x4xf32> -> vector<18x4xf32>
      %86 = vector.extract_strided_slice %82 {offsets = [18, 0], sizes = [18, 18], strides = [1, 1]} : vector<144x18xbf16> to vector<18x18xbf16>
      %87 = vector.extract_strided_slice %46 {offsets = [0, 4], sizes = [18, 4], strides = [1, 1]} : vector<18x32xbf16> to vector<18x4xbf16>
      %cst_33 = arith.constant dense<0.000000e+00> : vector<18x4xf32>
      %88 = tpu.matmul %86, %87, %cst_33 {dimension_numbers = #tpu.dot_dimension_numbers<[1], [0], [0], [1], [0, 0, 1, 1], [], []>} : vector<18x18xbf16>, vector<18x4xbf16>, vector<18x4xf32> -> vector<18x4xf32>
      %89 = vector.extract_strided_slice %82 {offsets = [36, 0], sizes = [18, 18], strides = [1, 1]} : vector<144x18xbf16> to vector<18x18xbf16>
      %90 = vector.extract_strided_slice %46 {offsets = [0, 8], sizes = [18, 4], strides = [1, 1]} : vector<18x32xbf16> to vector<18x4xbf16>
      %cst_34 = arith.constant dense<0.000000e+00> : vector<18x4xf32>
      %91 = tpu.matmul %89, %90, %cst_34 {dimension_numbers = #tpu.dot_dimension_numbers<[1], [0], [0], [1], [0, 0, 1, 1], [], []>} : vector<18x18xbf16>, vector<18x4xbf16>, vector<18x4xf32> -> vector<18x4xf32>
      %92 = vector.extract_strided_slice %82 {offsets = [54, 0], sizes = [18, 18], strides = [1, 1]} : vector<144x18xbf16> to vector<18x18xbf16>
      %93 = vector.extract_strided_slice %46 {offsets = [0, 12], sizes = [18, 4], strides = [1, 1]} : vector<18x32xbf16> to vector<18x4xbf16>
      %cst_35 = arith.constant dense<0.000000e+00> : vector<18x4xf32>
      %94 = tpu.matmul %92, %93, %cst_35 {dimension_numbers = #tpu.dot_dimension_numbers<[1], [0], [0], [1], [0, 0, 1, 1], [], []>} : vector<18x18xbf16>, vector<18x4xbf16>, vector<18x4xf32> -> vector<18x4xf32>
      %95 = vector.extract_strided_slice %82 {offsets = [72, 0], sizes = [18, 18], strides = [1, 1]} : vector<144x18xbf16> to vector<18x18xbf16>
      %96 = vector.extract_strided_slice %46 {offsets = [0, 16], sizes = [18, 4], strides = [1, 1]} : vector<18x32xbf16> to vector<18x4xbf16>
      %cst_36 = arith.constant dense<0.000000e+00> : vector<18x4xf32>
      %97 = tpu.matmul %95, %96, %cst_36 {dimension_numbers = #tpu.dot_dimension_numbers<[1], [0], [0], [1], [0, 0, 1, 1], [], []>} : vector<18x18xbf16>, vector<18x4xbf16>, vector<18x4xf32> -> vector<18x4xf32>
      %98 = vector.extract_strided_slice %82 {offsets = [90, 0], sizes = [18, 18], strides = [1, 1]} : vector<144x18xbf16> to vector<18x18xbf16>
      %99 = vector.extract_strided_slice %46 {offsets = [0, 20], sizes = [18, 4], strides = [1, 1]} : vector<18x32xbf16> to vector<18x4xbf16>
      %cst_37 = arith.constant dense<0.000000e+00> : vector<18x4xf32>
      %100 = tpu.matmul %98, %99, %cst_37 {dimension_numbers = #tpu.dot_dimension_numbers<[1], [0], [0], [1], [0, 0, 1, 1], [], []>} : vector<18x18xbf16>, vector<18x4xbf16>, vector<18x4xf32> -> vector<18x4xf32>
      %101 = vector.extract_strided_slice %82 {offsets = [108, 0], sizes = [18, 18], strides = [1, 1]} : vector<144x18xbf16> to vector<18x18xbf16>
      %102 = vector.extract_strided_slice %46 {offsets = [0, 24], sizes = [18, 4], strides = [1, 1]} : vector<18x32xbf16> to vector<18x4xbf16>
      %cst_38 = arith.constant dense<0.000000e+00> : vector<18x4xf32>
      %103 = tpu.matmul %101, %102, %cst_38 {dimension_numbers = #tpu.dot_dimension_numbers<[1], [0], [0], [1], [0, 0, 1, 1], [], []>} : vector<18x18xbf16>, vector<18x4xbf16>, vector<18x4xf32> -> vector<18x4xf32>
      %104 = vector.extract_strided_slice %82 {offsets = [126, 0], sizes = [18, 18], strides = [1, 1]} : vector<144x18xbf16> to vector<18x18xbf16>
      %105 = vector.extract_strided_slice %46 {offsets = [0, 28], sizes = [18, 4], strides = [1, 1]} : vector<18x32xbf16> to vector<18x4xbf16>
      %cst_39 = arith.constant dense<0.000000e+00> : vector<18x4xf32>
      %106 = tpu.matmul %104, %105, %cst_39 {dimension_numbers = #tpu.dot_dimension_numbers<[1], [0], [0], [1], [0, 0, 1, 1], [], []>} : vector<18x18xbf16>, vector<18x4xbf16>, vector<18x4xf32> -> vector<18x4xf32>
      %107 = tpu.concatenate %85, %88, %91, %94, %97, %100, %103, %106 in 1 : vector<18x4xf32>, vector<18x4xf32>, vector<18x4xf32>, vector<18x4xf32>, vector<18x4xf32>, vector<18x4xf32>, vector<18x4xf32>, vector<18x4xf32> -> vector<18x32xf32>
      %108 = arith.truncf %107 : vector<18x32xf32> to vector<18x32xbf16>
      %cst_40 = arith.constant dense<0.000000e+00> : vector<18x32xf32>
      %109 = tpu.matmul %108, %20, %cst_40 {dimension_numbers = #tpu.dot_dimension_numbers<[1], [1], [0], [0], [0, 0, 1, 0], [], []>} : vector<18x32xbf16>, vector<32x32xbf16>, vector<18x32xf32> -> vector<18x32xf32>
      %110 = vector.broadcast %23 : vector<1x32xf32> to vector<18x32xf32>
      %111 = arith.addf %109, %110 : vector<18x32xf32>
      %112 = arith.addf %arg24, %111 : vector<18x32xf32>
      %113 = arith.index_cast %arg23 : i32 to index
      %c0_41 = arith.constant 0 : index
      %c0_42 = arith.constant 0 : index
      %114 = vector.load %arg16[%113, %c0_41, %c0_42] : memref<12x1x32xf32, #tpu.memory_space<vmem>>, vector<1x1x32xf32>
      %115 = vector.shape_cast %114 : vector<1x1x32xf32> to vector<1x32xf32>
      %116 = arith.index_cast %arg23 : i32 to index
      %c0_43 = arith.constant 0 : index
      %c0_44 = arith.constant 0 : index
      %117 = vector.load %arg17[%116, %c0_43, %c0_44] : memref<12x1x32xf32, #tpu.memory_space<vmem>>, vector<1x1x32xf32>
      %118 = vector.shape_cast %117 : vector<1x1x32xf32> to vector<1x32xf32>
      %cst_45 = arith.constant dense<0.000000e+00> : vector<18xf32>
      %119 = vector.multi_reduction <add>, %112, %cst_45 [1] : vector<18x32xf32> to vector<18xf32>
      %120 = vector.shape_cast %119 : vector<18xf32> to vector<18x1xf32>
      %cst_46 = arith.constant 3.200000e+01 : f32
      %121 = vector.broadcast %cst_46 : f32 to vector<18x1xf32>
      %122 = arith.divf %120, %121 : vector<18x1xf32>
      %123 = vector.broadcast %122 : vector<18x1xf32> to vector<18x32xf32>
      %124 = arith.subf %112, %123 : vector<18x32xf32>
      %125 = arith.mulf %124, %124 : vector<18x32xf32>
      %cst_47 = arith.constant dense<0.000000e+00> : vector<18xf32>
      %126 = vector.multi_reduction <add>, %125, %cst_47 [1] : vector<18x32xf32> to vector<18xf32>
      %127 = vector.shape_cast %126 : vector<18xf32> to vector<18x1xf32>
      %cst_48 = arith.constant 3.200000e+01 : f32
      %128 = vector.broadcast %cst_48 : f32 to vector<18x1xf32>
      %129 = arith.divf %127, %128 : vector<18x1xf32>
      %130 = vector.broadcast %122 : vector<18x1xf32> to vector<18x32xf32>
      %131 = arith.subf %112, %130 : vector<18x32xf32>
      %cst_49 = arith.constant 9.99999974E-6 : f32
      %132 = vector.broadcast %cst_49 : f32 to vector<18x1xf32>
      %133 = arith.addf %129, %132 : vector<18x1xf32>
      %134 = math.rsqrt %133 : vector<18x1xf32>
      %135 = vector.broadcast %134 : vector<18x1xf32> to vector<18x32xf32>
      %136 = arith.mulf %131, %135 : vector<18x32xf32>
      %137 = vector.broadcast %115 : vector<1x32xf32> to vector<18x32xf32>
      %138 = arith.mulf %136, %137 : vector<18x32xf32>
      %139 = vector.broadcast %118 : vector<1x32xf32> to vector<18x32xf32>
      %140 = arith.addf %138, %139 : vector<18x32xf32>
      %141 = arith.truncf %140 : vector<18x32xf32> to vector<18x32xbf16>
      %142 = arith.index_cast %arg23 : i32 to index
      %c0_50 = arith.constant 0 : index
      %c0_51 = arith.constant 0 : index
      %c0_52 = arith.constant 0 : index
      %143 = vector.load %arg8[%142, %c0_50, %c0_51, %c0_52] : memref<12x3x32x32xbf16, #tpu.memory_space<vmem>>, vector<1x3x32x32xbf16>
      %144 = vector.shape_cast %143 : vector<1x3x32x32xbf16> to vector<3x32x32xbf16>
      %145 = arith.index_cast %arg23 : i32 to index
      %c0_53 = arith.constant 0 : index
      %c0_54 = arith.constant 0 : index
      %146 = vector.load %arg9[%145, %c0_53, %c0_54] : memref<12x3x32xf32, #tpu.memory_space<vmem>>, vector<1x3x32xf32>
      %147 = vector.shape_cast %146 : vector<1x3x32xf32> to vector<3x32xf32>
      %148 = arith.index_cast %arg23 : i32 to index
      %c0_55 = arith.constant 0 : index
      %c0_56 = arith.constant 0 : index
      %149 = vector.load %arg10[%148, %c0_55, %c0_56] : memref<12x32x32xbf16, #tpu.memory_space<vmem>>, vector<1x32x32xbf16>
      %150 = vector.shape_cast %149 : vector<1x32x32xbf16> to vector<32x32xbf16>
      %151 = arith.index_cast %arg23 : i32 to index
      %c0_57 = arith.constant 0 : index
      %c0_58 = arith.constant 0 : index
      %152 = vector.load %arg11[%151, %c0_57, %c0_58] : memref<12x1x32xf32, #tpu.memory_space<vmem>>, vector<1x1x32xf32>
      %153 = vector.shape_cast %152 : vector<1x1x32xf32> to vector<1x32xf32>
      %154 = vector.extract_strided_slice %144 {offsets = [0, 0, 0], sizes = [1, 32, 32], strides = [1, 1, 1]} : vector<3x32x32xbf16> to vector<1x32x32xbf16>
      %155 = vector.shape_cast %154 : vector<1x32x32xbf16> to vector<32x32xbf16>
      %cst_59 = arith.constant dense<0.000000e+00> : vector<18x32xf32>
      %156 = tpu.matmul %141, %155, %cst_59 {dimension_numbers = #tpu.dot_dimension_numbers<[1], [1], [0], [0], [0, 0, 1, 0], [], []>} : vector<18x32xbf16>, vector<32x32xbf16>, vector<18x32xf32> -> vector<18x32xf32>
      %157 = vector.extract_strided_slice %147 {offsets = [0, 0], sizes = [1, 32], strides = [1, 1]} : vector<3x32xf32> to vector<1x32xf32>
      %158 = vector.broadcast %157 : vector<1x32xf32> to vector<18x32xf32>
      %159 = arith.addf %156, %158 : vector<18x32xf32>
      %160 = vector.extract_strided_slice %144 {offsets = [1, 0, 0], sizes = [1, 32, 32], strides = [1, 1, 1]} : vector<3x32x32xbf16> to vector<1x32x32xbf16>
      %161 = vector.shape_cast %160 : vector<1x32x32xbf16> to vector<32x32xbf16>
      %cst_60 = arith.constant dense<0.000000e+00> : vector<16x32xf32>
      %162 = tpu.matmul %1, %161, %cst_60 {dimension_numbers = #tpu.dot_dimension_numbers<[1], [1], [0], [0], [0, 0, 1, 0], [], []>} : vector<16x32xbf16>, vector<32x32xbf16>, vector<16x32xf32> -> vector<16x32xf32>
      %163 = vector.extract_strided_slice %147 {offsets = [1, 0], sizes = [1, 32], strides = [1, 1]} : vector<3x32xf32> to vector<1x32xf32>
      %164 = vector.broadcast %163 : vector<1x32xf32> to vector<16x32xf32>
      %165 = arith.addf %162, %164 : vector<16x32xf32>
      %166 = vector.extract_strided_slice %144 {offsets = [2, 0, 0], sizes = [1, 32, 32], strides = [1, 1, 1]} : vector<3x32x32xbf16> to vector<1x32x32xbf16>
      %167 = vector.shape_cast %166 : vector<1x32x32xbf16> to vector<32x32xbf16>
      %cst_61 = arith.constant dense<0.000000e+00> : vector<16x32xf32>
      %168 = tpu.matmul %1, %167, %cst_61 {dimension_numbers = #tpu.dot_dimension_numbers<[1], [1], [0], [0], [0, 0, 1, 0], [], []>} : vector<16x32xbf16>, vector<32x32xbf16>, vector<16x32xf32> -> vector<16x32xf32>
      %169 = vector.extract_strided_slice %147 {offsets = [2, 0], sizes = [1, 32], strides = [1, 1]} : vector<3x32xf32> to vector<1x32xf32>
      %170 = vector.broadcast %169 : vector<1x32xf32> to vector<16x32xf32>
      %171 = arith.addf %168, %170 : vector<16x32xf32>
      %cst_62 = arith.constant 5.000000e-01 : f32
      %172 = vector.broadcast %cst_62 : f32 to vector<18x32xf32>
      %173 = arith.mulf %159, %172 : vector<18x32xf32>
      %174 = arith.truncf %173 : vector<18x32xf32> to vector<18x32xbf16>
      %175 = arith.truncf %165 : vector<16x32xf32> to vector<16x32xbf16>
      %176 = arith.truncf %171 : vector<16x32xf32> to vector<16x32xbf16>
      %177 = vector.extract_strided_slice %174 {offsets = [0, 0], sizes = [18, 4], strides = [1, 1]} : vector<18x32xbf16> to vector<18x4xbf16>
      %178 = vector.extract_strided_slice %175 {offsets = [0, 0], sizes = [16, 4], strides = [1, 1]} : vector<16x32xbf16> to vector<16x4xbf16>
      %cst_63 = arith.constant dense<0.000000e+00> : vector<18x16xf32>
      %179 = tpu.matmul %177, %178, %cst_63 {dimension_numbers = #tpu.dot_dimension_numbers<[1], [1], [0], [0], [0, 0, 1, 0], [], []>} : vector<18x4xbf16>, vector<16x4xbf16>, vector<18x16xf32> -> vector<18x16xf32>
      %180 = vector.extract_strided_slice %174 {offsets = [0, 4], sizes = [18, 4], strides = [1, 1]} : vector<18x32xbf16> to vector<18x4xbf16>
      %181 = vector.extract_strided_slice %175 {offsets = [0, 4], sizes = [16, 4], strides = [1, 1]} : vector<16x32xbf16> to vector<16x4xbf16>
      %cst_64 = arith.constant dense<0.000000e+00> : vector<18x16xf32>
      %182 = tpu.matmul %180, %181, %cst_64 {dimension_numbers = #tpu.dot_dimension_numbers<[1], [1], [0], [0], [0, 0, 1, 0], [], []>} : vector<18x4xbf16>, vector<16x4xbf16>, vector<18x16xf32> -> vector<18x16xf32>
      %183 = vector.extract_strided_slice %174 {offsets = [0, 8], sizes = [18, 4], strides = [1, 1]} : vector<18x32xbf16> to vector<18x4xbf16>
      %184 = vector.extract_strided_slice %175 {offsets = [0, 8], sizes = [16, 4], strides = [1, 1]} : vector<16x32xbf16> to vector<16x4xbf16>
      %cst_65 = arith.constant dense<0.000000e+00> : vector<18x16xf32>
      %185 = tpu.matmul %183, %184, %cst_65 {dimension_numbers = #tpu.dot_dimension_numbers<[1], [1], [0], [0], [0, 0, 1, 0], [], []>} : vector<18x4xbf16>, vector<16x4xbf16>, vector<18x16xf32> -> vector<18x16xf32>
      %186 = vector.extract_strided_slice %174 {offsets = [0, 12], sizes = [18, 4], strides = [1, 1]} : vector<18x32xbf16> to vector<18x4xbf16>
      %187 = vector.extract_strided_slice %175 {offsets = [0, 12], sizes = [16, 4], strides = [1, 1]} : vector<16x32xbf16> to vector<16x4xbf16>
      %cst_66 = arith.constant dense<0.000000e+00> : vector<18x16xf32>
      %188 = tpu.matmul %186, %187, %cst_66 {dimension_numbers = #tpu.dot_dimension_numbers<[1], [1], [0], [0], [0, 0, 1, 0], [], []>} : vector<18x4xbf16>, vector<16x4xbf16>, vector<18x16xf32> -> vector<18x16xf32>
      %189 = vector.extract_strided_slice %174 {offsets = [0, 16], sizes = [18, 4], strides = [1, 1]} : vector<18x32xbf16> to vector<18x4xbf16>
      %190 = vector.extract_strided_slice %175 {offsets = [0, 16], sizes = [16, 4], strides = [1, 1]} : vector<16x32xbf16> to vector<16x4xbf16>
      %cst_67 = arith.constant dense<0.000000e+00> : vector<18x16xf32>
      %191 = tpu.matmul %189, %190, %cst_67 {dimension_numbers = #tpu.dot_dimension_numbers<[1], [1], [0], [0], [0, 0, 1, 0], [], []>} : vector<18x4xbf16>, vector<16x4xbf16>, vector<18x16xf32> -> vector<18x16xf32>
      %192 = vector.extract_strided_slice %174 {offsets = [0, 20], sizes = [18, 4], strides = [1, 1]} : vector<18x32xbf16> to vector<18x4xbf16>
      %193 = vector.extract_strided_slice %175 {offsets = [0, 20], sizes = [16, 4], strides = [1, 1]} : vector<16x32xbf16> to vector<16x4xbf16>
      %cst_68 = arith.constant dense<0.000000e+00> : vector<18x16xf32>
      %194 = tpu.matmul %192, %193, %cst_68 {dimension_numbers = #tpu.dot_dimension_numbers<[1], [1], [0], [0], [0, 0, 1, 0], [], []>} : vector<18x4xbf16>, vector<16x4xbf16>, vector<18x16xf32> -> vector<18x16xf32>
      %195 = vector.extract_strided_slice %174 {offsets = [0, 24], sizes = [18, 4], strides = [1, 1]} : vector<18x32xbf16> to vector<18x4xbf16>
      %196 = vector.extract_strided_slice %175 {offsets = [0, 24], sizes = [16, 4], strides = [1, 1]} : vector<16x32xbf16> to vector<16x4xbf16>
      %cst_69 = arith.constant dense<0.000000e+00> : vector<18x16xf32>
      %197 = tpu.matmul %195, %196, %cst_69 {dimension_numbers = #tpu.dot_dimension_numbers<[1], [1], [0], [0], [0, 0, 1, 0], [], []>} : vector<18x4xbf16>, vector<16x4xbf16>, vector<18x16xf32> -> vector<18x16xf32>
      %198 = vector.extract_strided_slice %174 {offsets = [0, 28], sizes = [18, 4], strides = [1, 1]} : vector<18x32xbf16> to vector<18x4xbf16>
      %199 = vector.extract_strided_slice %175 {offsets = [0, 28], sizes = [16, 4], strides = [1, 1]} : vector<16x32xbf16> to vector<16x4xbf16>
      %cst_70 = arith.constant dense<0.000000e+00> : vector<18x16xf32>
      %200 = tpu.matmul %198, %199, %cst_70 {dimension_numbers = #tpu.dot_dimension_numbers<[1], [1], [0], [0], [0, 0, 1, 0], [], []>} : vector<18x4xbf16>, vector<16x4xbf16>, vector<18x16xf32> -> vector<18x16xf32>
      %201 = tpu.concatenate %179, %182, %185, %188, %191, %194, %197, %200 in 0 : vector<18x16xf32>, vector<18x16xf32>, vector<18x16xf32>, vector<18x16xf32>, vector<18x16xf32>, vector<18x16xf32>, vector<18x16xf32>, vector<18x16xf32> -> vector<144x16xf32>
      %202 = arith.addf %201, %3 : vector<144x16xf32>
      %cst_71 = arith.constant dense<0xFF800000> : vector<144xf32>
      %203 = vector.multi_reduction <maximumf>, %202, %cst_71 [1] : vector<144x16xf32> to vector<144xf32>
      %204 = vector.shape_cast %203 : vector<144xf32> to vector<144x1xf32>
      %205 = vector.broadcast %204 : vector<144x1xf32> to vector<144x16xf32>
      %206 = arith.subf %202, %205 : vector<144x16xf32>
      %207 = math.exp %206 : vector<144x16xf32>
      %cst_72 = arith.constant dense<0.000000e+00> : vector<144xf32>
      %208 = vector.multi_reduction <add>, %207, %cst_72 [1] : vector<144x16xf32> to vector<144xf32>
      %209 = vector.shape_cast %208 : vector<144xf32> to vector<144x1xf32>
      %210 = vector.broadcast %209 : vector<144x1xf32> to vector<144x16xf32>
      %211 = arith.divf %207, %210 : vector<144x16xf32>
      %212 = arith.truncf %211 : vector<144x16xf32> to vector<144x16xbf16>
      %213 = vector.extract_strided_slice %212 {offsets = [0, 0], sizes = [18, 16], strides = [1, 1]} : vector<144x16xbf16> to vector<18x16xbf16>
      %214 = vector.extract_strided_slice %176 {offsets = [0, 0], sizes = [16, 4], strides = [1, 1]} : vector<16x32xbf16> to vector<16x4xbf16>
      %cst_73 = arith.constant dense<0.000000e+00> : vector<18x4xf32>
      %215 = tpu.matmul %213, %214, %cst_73 {dimension_numbers = #tpu.dot_dimension_numbers<[1], [0], [0], [1], [0, 0, 1, 1], [], []>} : vector<18x16xbf16>, vector<16x4xbf16>, vector<18x4xf32> -> vector<18x4xf32>
      %216 = vector.extract_strided_slice %212 {offsets = [18, 0], sizes = [18, 16], strides = [1, 1]} : vector<144x16xbf16> to vector<18x16xbf16>
      %217 = vector.extract_strided_slice %176 {offsets = [0, 4], sizes = [16, 4], strides = [1, 1]} : vector<16x32xbf16> to vector<16x4xbf16>
      %cst_74 = arith.constant dense<0.000000e+00> : vector<18x4xf32>
      %218 = tpu.matmul %216, %217, %cst_74 {dimension_numbers = #tpu.dot_dimension_numbers<[1], [0], [0], [1], [0, 0, 1, 1], [], []>} : vector<18x16xbf16>, vector<16x4xbf16>, vector<18x4xf32> -> vector<18x4xf32>
      %219 = vector.extract_strided_slice %212 {offsets = [36, 0], sizes = [18, 16], strides = [1, 1]} : vector<144x16xbf16> to vector<18x16xbf16>
      %220 = vector.extract_strided_slice %176 {offsets = [0, 8], sizes = [16, 4], strides = [1, 1]} : vector<16x32xbf16> to vector<16x4xbf16>
      %cst_75 = arith.constant dense<0.000000e+00> : vector<18x4xf32>
      %221 = tpu.matmul %219, %220, %cst_75 {dimension_numbers = #tpu.dot_dimension_numbers<[1], [0], [0], [1], [0, 0, 1, 1], [], []>} : vector<18x16xbf16>, vector<16x4xbf16>, vector<18x4xf32> -> vector<18x4xf32>
      %222 = vector.extract_strided_slice %212 {offsets = [54, 0], sizes = [18, 16], strides = [1, 1]} : vector<144x16xbf16> to vector<18x16xbf16>
      %223 = vector.extract_strided_slice %176 {offsets = [0, 12], sizes = [16, 4], strides = [1, 1]} : vector<16x32xbf16> to vector<16x4xbf16>
      %cst_76 = arith.constant dense<0.000000e+00> : vector<18x4xf32>
      %224 = tpu.matmul %222, %223, %cst_76 {dimension_numbers = #tpu.dot_dimension_numbers<[1], [0], [0], [1], [0, 0, 1, 1], [], []>} : vector<18x16xbf16>, vector<16x4xbf16>, vector<18x4xf32> -> vector<18x4xf32>
      %225 = vector.extract_strided_slice %212 {offsets = [72, 0], sizes = [18, 16], strides = [1, 1]} : vector<144x16xbf16> to vector<18x16xbf16>
      %226 = vector.extract_strided_slice %176 {offsets = [0, 16], sizes = [16, 4], strides = [1, 1]} : vector<16x32xbf16> to vector<16x4xbf16>
      %cst_77 = arith.constant dense<0.000000e+00> : vector<18x4xf32>
      %227 = tpu.matmul %225, %226, %cst_77 {dimension_numbers = #tpu.dot_dimension_numbers<[1], [0], [0], [1], [0, 0, 1, 1], [], []>} : vector<18x16xbf16>, vector<16x4xbf16>, vector<18x4xf32> -> vector<18x4xf32>
      %228 = vector.extract_strided_slice %212 {offsets = [90, 0], sizes = [18, 16], strides = [1, 1]} : vector<144x16xbf16> to vector<18x16xbf16>
      %229 = vector.extract_strided_slice %176 {offsets = [0, 20], sizes = [16, 4], strides = [1, 1]} : vector<16x32xbf16> to vector<16x4xbf16>
      %cst_78 = arith.constant dense<0.000000e+00> : vector<18x4xf32>
      %230 = tpu.matmul %228, %229, %cst_78 {dimension_numbers = #tpu.dot_dimension_numbers<[1], [0], [0], [1], [0, 0, 1, 1], [], []>} : vector<18x16xbf16>, vector<16x4xbf16>, vector<18x4xf32> -> vector<18x4xf32>
      %231 = vector.extract_strided_slice %212 {offsets = [108, 0], sizes = [18, 16], strides = [1, 1]} : vector<144x16xbf16> to vector<18x16xbf16>
      %232 = vector.extract_strided_slice %176 {offsets = [0, 24], sizes = [16, 4], strides = [1, 1]} : vector<16x32xbf16> to vector<16x4xbf16>
      %cst_79 = arith.constant dense<0.000000e+00> : vector<18x4xf32>
      %233 = tpu.matmul %231, %232, %cst_79 {dimension_numbers = #tpu.dot_dimension_numbers<[1], [0], [0], [1], [0, 0, 1, 1], [], []>} : vector<18x16xbf16>, vector<16x4xbf16>, vector<18x4xf32> -> vector<18x4xf32>
      %234 = vector.extract_strided_slice %212 {offsets = [126, 0], sizes = [18, 16], strides = [1, 1]} : vector<144x16xbf16> to vector<18x16xbf16>
      %235 = vector.extract_strided_slice %176 {offsets = [0, 28], sizes = [16, 4], strides = [1, 1]} : vector<16x32xbf16> to vector<16x4xbf16>
      %cst_80 = arith.constant dense<0.000000e+00> : vector<18x4xf32>
      %236 = tpu.matmul %234, %235, %cst_80 {dimension_numbers = #tpu.dot_dimension_numbers<[1], [0], [0], [1], [0, 0, 1, 1], [], []>} : vector<18x16xbf16>, vector<16x4xbf16>, vector<18x4xf32> -> vector<18x4xf32>
      %237 = tpu.concatenate %215, %218, %221, %224, %227, %230, %233, %236 in 1 : vector<18x4xf32>, vector<18x4xf32>, vector<18x4xf32>, vector<18x4xf32>, vector<18x4xf32>, vector<18x4xf32>, vector<18x4xf32>, vector<18x4xf32> -> vector<18x32xf32>
      %238 = arith.truncf %237 : vector<18x32xf32> to vector<18x32xbf16>
      %cst_81 = arith.constant dense<0.000000e+00> : vector<18x32xf32>
      %239 = tpu.matmul %238, %150, %cst_81 {dimension_numbers = #tpu.dot_dimension_numbers<[1], [1], [0], [0], [0, 0, 1, 0], [], []>} : vector<18x32xbf16>, vector<32x32xbf16>, vector<18x32xf32> -> vector<18x32xf32>
      %240 = vector.broadcast %153 : vector<1x32xf32> to vector<18x32xf32>
      %241 = arith.addf %239, %240 : vector<18x32xf32>
      %242 = arith.addf %140, %241 : vector<18x32xf32>
      %243 = arith.index_cast %arg23 : i32 to index
      %c0_82 = arith.constant 0 : index
      %c0_83 = arith.constant 0 : index
      %244 = vector.load %arg18[%243, %c0_82, %c0_83] : memref<12x1x32xf32, #tpu.memory_space<vmem>>, vector<1x1x32xf32>
      %245 = vector.shape_cast %244 : vector<1x1x32xf32> to vector<1x32xf32>
      %246 = arith.index_cast %arg23 : i32 to index
      %c0_84 = arith.constant 0 : index
      %c0_85 = arith.constant 0 : index
      %247 = vector.load %arg19[%246, %c0_84, %c0_85] : memref<12x1x32xf32, #tpu.memory_space<vmem>>, vector<1x1x32xf32>
      %248 = vector.shape_cast %247 : vector<1x1x32xf32> to vector<1x32xf32>
      %cst_86 = arith.constant dense<0.000000e+00> : vector<18xf32>
      %249 = vector.multi_reduction <add>, %242, %cst_86 [1] : vector<18x32xf32> to vector<18xf32>
      %250 = vector.shape_cast %249 : vector<18xf32> to vector<18x1xf32>
      %cst_87 = arith.constant 3.200000e+01 : f32
      %251 = vector.broadcast %cst_87 : f32 to vector<18x1xf32>
      %252 = arith.divf %250, %251 : vector<18x1xf32>
      %253 = vector.broadcast %252 : vector<18x1xf32> to vector<18x32xf32>
      %254 = arith.subf %242, %253 : vector<18x32xf32>
      %255 = arith.mulf %254, %254 : vector<18x32xf32>
      %cst_88 = arith.constant dense<0.000000e+00> : vector<18xf32>
      %256 = vector.multi_reduction <add>, %255, %cst_88 [1] : vector<18x32xf32> to vector<18xf32>
      %257 = vector.shape_cast %256 : vector<18xf32> to vector<18x1xf32>
      %cst_89 = arith.constant 3.200000e+01 : f32
      %258 = vector.broadcast %cst_89 : f32 to vector<18x1xf32>
      %259 = arith.divf %257, %258 : vector<18x1xf32>
      %260 = vector.broadcast %252 : vector<18x1xf32> to vector<18x32xf32>
      %261 = arith.subf %242, %260 : vector<18x32xf32>
      %cst_90 = arith.constant 9.99999974E-6 : f32
      %262 = vector.broadcast %cst_90 : f32 to vector<18x1xf32>
      %263 = arith.addf %259, %262 : vector<18x1xf32>
      %264 = math.rsqrt %263 : vector<18x1xf32>
      %265 = vector.broadcast %264 : vector<18x1xf32> to vector<18x32xf32>
      %266 = arith.mulf %261, %265 : vector<18x32xf32>
      %267 = vector.broadcast %245 : vector<1x32xf32> to vector<18x32xf32>
      %268 = arith.mulf %266, %267 : vector<18x32xf32>
      %269 = vector.broadcast %248 : vector<1x32xf32> to vector<18x32xf32>
      %270 = arith.addf %268, %269 : vector<18x32xf32>
      %271 = arith.truncf %270 : vector<18x32xf32> to vector<18x32xbf16>
      %272 = arith.index_cast %arg23 : i32 to index
      %c0_91 = arith.constant 0 : index
      %c0_92 = arith.constant 0 : index
      %273 = vector.load %arg12[%272, %c0_91, %c0_92] : memref<12x32x2048xbf16, #tpu.memory_space<vmem>>, vector<1x32x2048xbf16>
      %274 = vector.shape_cast %273 : vector<1x32x2048xbf16> to vector<32x2048xbf16>
      %cst_93 = arith.constant dense<0.000000e+00> : vector<18x2048xf32>
      %275 = tpu.matmul %271, %274, %cst_93 {dimension_numbers = #tpu.dot_dimension_numbers<[1], [0], [0], [1], [0, 0, 1, 1], [], []>} : vector<18x32xbf16>, vector<32x2048xbf16>, vector<18x2048xf32> -> vector<18x2048xf32>
      %276 = arith.index_cast %arg23 : i32 to index
      %c0_94 = arith.constant 0 : index
      %c0_95 = arith.constant 0 : index
      %277 = vector.load %arg13[%276, %c0_94, %c0_95] : memref<12x1x2048xf32, #tpu.memory_space<vmem>>, vector<1x1x2048xf32>
      %278 = vector.shape_cast %277 : vector<1x1x2048xf32> to vector<1x2048xf32>
      %279 = vector.broadcast %278 : vector<1x2048xf32> to vector<18x2048xf32>
      %280 = arith.addf %275, %279 : vector<18x2048xf32>
      %cst_96 = arith.constant 0.000000e+00 : f32
      %281 = vector.broadcast %cst_96 : f32 to vector<18x2048xf32>
      %282 = arith.maximumf %280, %281 : vector<18x2048xf32>
      %283 = arith.truncf %282 : vector<18x2048xf32> to vector<18x2048xbf16>
      %284 = arith.index_cast %arg23 : i32 to index
      %c0_97 = arith.constant 0 : index
      %c0_98 = arith.constant 0 : index
      %285 = vector.load %arg14[%284, %c0_97, %c0_98] : memref<12x32x2048xbf16, #tpu.memory_space<vmem>>, vector<1x32x2048xbf16>
      %286 = vector.shape_cast %285 : vector<1x32x2048xbf16> to vector<32x2048xbf16>
      %cst_99 = arith.constant dense<0.000000e+00> : vector<18x32xf32>
      %287 = tpu.matmul %283, %286, %cst_99 {dimension_numbers = #tpu.dot_dimension_numbers<[1], [1], [0], [0], [0, 0, 1, 0], [], []>} : vector<18x2048xbf16>, vector<32x2048xbf16>, vector<18x32xf32> -> vector<18x32xf32>
      %288 = arith.index_cast %arg23 : i32 to index
      %c0_100 = arith.constant 0 : index
      %c0_101 = arith.constant 0 : index
      %289 = vector.load %arg15[%288, %c0_100, %c0_101] : memref<12x1x32xf32, #tpu.memory_space<vmem>>, vector<1x1x32xf32>
      %290 = vector.shape_cast %289 : vector<1x1x32xf32> to vector<1x32xf32>
      %291 = vector.broadcast %290 : vector<1x32xf32> to vector<18x32xf32>
      %292 = arith.addf %287, %291 : vector<18x32xf32>
      %293 = arith.addf %270, %292 : vector<18x32xf32>
      %294 = arith.index_cast %arg23 : i32 to index
      %c0_102 = arith.constant 0 : index
      %c0_103 = arith.constant 0 : index
      %295 = vector.load %arg20[%294, %c0_102, %c0_103] : memref<12x1x32xf32, #tpu.memory_space<vmem>>, vector<1x1x32xf32>
      %296 = vector.shape_cast %295 : vector<1x1x32xf32> to vector<1x32xf32>
      %297 = arith.index_cast %arg23 : i32 to index
      %c0_104 = arith.constant 0 : index
      %c0_105 = arith.constant 0 : index
      %298 = vector.load %arg21[%297, %c0_104, %c0_105] : memref<12x1x32xf32, #tpu.memory_space<vmem>>, vector<1x1x32xf32>
      %299 = vector.shape_cast %298 : vector<1x1x32xf32> to vector<1x32xf32>
      %cst_106 = arith.constant dense<0.000000e+00> : vector<18xf32>
      %300 = vector.multi_reduction <add>, %293, %cst_106 [1] : vector<18x32xf32> to vector<18xf32>
      %301 = vector.shape_cast %300 : vector<18xf32> to vector<18x1xf32>
      %cst_107 = arith.constant 3.200000e+01 : f32
      %302 = vector.broadcast %cst_107 : f32 to vector<18x1xf32>
      %303 = arith.divf %301, %302 : vector<18x1xf32>
      %304 = vector.broadcast %303 : vector<18x1xf32> to vector<18x32xf32>
      %305 = arith.subf %293, %304 : vector<18x32xf32>
      %306 = arith.mulf %305, %305 : vector<18x32xf32>
      %cst_108 = arith.constant dense<0.000000e+00> : vector<18xf32>
      %307 = vector.multi_reduction <add>, %306, %cst_108 [1] : vector<18x32xf32> to vector<18xf32>
      %308 = vector.shape_cast %307 : vector<18xf32> to vector<18x1xf32>
      %cst_109 = arith.constant 3.200000e+01 : f32
      %309 = vector.broadcast %cst_109 : f32 to vector<18x1xf32>
      %310 = arith.divf %308, %309 : vector<18x1xf32>
      %311 = vector.broadcast %303 : vector<18x1xf32> to vector<18x32xf32>
      %312 = arith.subf %293, %311 : vector<18x32xf32>
      %cst_110 = arith.constant 9.99999974E-6 : f32
      %313 = vector.broadcast %cst_110 : f32 to vector<18x1xf32>
      %314 = arith.addf %310, %313 : vector<18x1xf32>
      %315 = math.rsqrt %314 : vector<18x1xf32>
      %316 = vector.broadcast %315 : vector<18x1xf32> to vector<18x32xf32>
      %317 = arith.mulf %312, %316 : vector<18x32xf32>
      %318 = vector.broadcast %296 : vector<1x32xf32> to vector<18x32xf32>
      %319 = arith.mulf %317, %318 : vector<18x32xf32>
      %320 = vector.broadcast %299 : vector<1x32xf32> to vector<18x32xf32>
      %321 = arith.addf %319, %320 : vector<18x32xf32>
      scf.yield %321 : vector<18x32xf32>
    }
    %c12_i32_7 = arith.constant 12 : i32
    %7 = vector.extract_strided_slice %6 {offsets = [8, 0], sizes = [1, 32], strides = [1, 1]} : vector<18x32xf32> to vector<1x32xf32>
    %8 = vector.extract_strided_slice %6 {offsets = [17, 0], sizes = [1, 32], strides = [1, 1]} : vector<18x32xf32> to vector<1x32xf32>
    %9 = tpu.concatenate %7, %8 in 0 : vector<1x32xf32>, vector<1x32xf32> -> vector<2x32xf32>
    %c0_8 = arith.constant 0 : index
    %c0_9 = arith.constant 0 : index
    %10 = vector.load %arg22[%c0_8, %c0_9] : memref<2x32xf32, #tpu.memory_space<vmem>>, vector<2x32xf32>
    tpu.vector_store %arg22[%c0_8, %c0_9], %9 {strides = array<i32>} : memref<2x32xf32, #tpu.memory_space<vmem>>, vector<2x32xf32>,
    return
  }
}

</mosaic_0001>

<bundles_post_ra>
// kernel: tile.26
= control target key start
LH: loop header
LB: loop body
LE: loop exit
PB: predicated region body
PF: predicated region fallthrough
CT: control target
= control target key end

     0   :  { %vm4_vm0 = vcmask 1047556   ;;  %vm35_vm1 = vcmask 15360   ;;  %s83_s6 = smov 3  ;;  %s86_s17 = smov 3  ;;  %vm49_vm2 = vcmask 1045506   ;;  %vm54_vm3 = vcmask 1047558   ;;  %s718_s0 = inlined_call_operand.vmem [shape: f32[8,18,18], index: 0, kind: input, shape index: {}]   ;;  %s719_s1 = inlined_call_operand.vmem [shape: f32[144,18], index: 1, kind: output, shape index: {}]  }
   0x1   :  { %v325_v0 = vld [vmem:[%s718_s0 + $0x7] ss:$8 sm:$0xf]   ;;  %s45_s18 = smov 3  ;;  %s52_s23 = smov 192  ;;  %vm6_vm4 = vcmask 146432  }
   0x2   :  { %v326_v1 = vld [vmem:[%s718_s0 + $0x7] ss:$8 sm:$0xf0]   ;;  %s57_s24 = smov 3  ;;  %s405_s25 = smov 126   ;;  %vm39_vm5 = vcmask 130048  }
   0x3   :  { %v28_v2 = vsel %vm4_vm0, %v326_v1, %v325_v0  ;;  %v327_v3 = vld [vmem:[%s718_s0 + $0x7] ss:$8 sm:$0xf]   ;;  %s64_s30 = smov 192  ;;  %s109_s10 = smov 3  ;;  %vm42_vm6 = vcmask 1048560  }
   0x4   :  { %v328_v4 = vld [vmem:[%s718_s0 + $0x7] ss:$8 sm:$0xf0]   ;;  %v344_v19 = vld [vmem:[%s718_s0 + $0x6] ss:$8 sm:$0xf]  }
   0x5   :  { %v34_v5 = vsel %vm4_vm0, %v328_v4, %v327_v3  ;;  %v340_v6 = vld [vmem:[%s718_s0 + $0x77] ss:$8 sm:%s83_s6]   ;;  %v345_v21 = vld [vmem:[%s718_s0 + $0x6] ss:$8 sm:$0xf0]   ;;  %s116_s15 = smov 192 }
   0x6   :  { %v36_v7 = vsel %vm35_vm1, %v34_v5, %v28_v2  ;;  %v341_v8 = vld [vmem:[%s718_s0 + $0x77] ss:$8 sm:%s86_s17]   ;;  %v346_v22 = vld [vmem:[%s718_s0 + $0x86] ss:$8 sm:%s109_s10]   ;;  %v103_v24 = vsel %vm4_vm0, %v345_v21, %v344_v19  ;;  %s128_s20 = smov 3  ;;  %s406_s21 = smov 108  }
   0x7   :  { %v330_v9 = vld [vmem:[%s718_s0 + $0x87] ss:$8 sm:%s45_s18]   ;;  %37 = vrot.lane.b32.xlu0 %v36_v7, %s405_s25  ;;  %v89_v10 = vsel %vm35_vm1, %v341_v8, %v340_v6  ;;  %v347_v25 = vld [vmem:[%s718_s0 + $0x36] ss:$8 sm:$0x3c]   ;;  %s153_s4 = smov 192 }
   0x8   :  { %v331_v11 = vld [vmem:[%s718_s0 + $0x37] ss:$8 sm:$0x3c]   ;;  %90 = vrot.lane.b32.xlu1 %v89_v10, %s405_s25  ;;  %v348_v26 = vld [vmem:[%s718_s0 + $0x36] ss:$8 sm:%s116_s15]   ;;  %v114_v27 = vsel %vm49_vm2, %v347_v25, %v346_v22  ;;  %s183_s7 = smov 3 }
   0x9   :  { %v332_v12 = vld [vmem:[%s718_s0 + $0x37] ss:$8 sm:%s52_s23]   ;;  %v50_v13 = vsel %vm49_vm2, %v331_v11, %v330_v9  ;;  %v351_v28 = vld [vmem:[%s718_s0 + $0x76] ss:$8 sm:%s128_s20]   ;;  %v119_v29 = vsel %vm54_vm3, %v348_v26, %v114_v27  ;;  %s165_s8 = smov 3  ;;  %s190_s17 = smov 192 }
   0xa   :  { %v333_v14 = vld [vmem:[%s718_s0 + $0x87] ss:$8 sm:%s57_s24]   ;;  %v55_v16 = vsel %vm54_vm3, %v332_v12, %v50_v13  ;;  %s146_s24 = smov 3  ;;  %v353_v30 = vld [vmem:[%s718_s0 + $0x5] ss:$8 sm:$0xf]  }
   0xb   :  { %v334_v15 = vld [vmem:[%s718_s0 + $0x37] ss:$8 sm:$0x3c]   ;;  %v354_v31 = vld [vmem:[%s718_s0 + $0x5] ss:$8 sm:$0xf0]  }
   0xc   :  { %v62_v17 = vsel %vm49_vm2, %v334_v15, %v333_v14  ;;  %v335_v18 = vld [vmem:[%s718_s0 + $0x37] ss:$8 sm:%s64_s30]   ;;  %104 = vrot.lane.b32.xlu1 %v103_v24, %s406_s21  ;;  %v356_v33 = vld [vmem:[%s718_s0 + $0x35] ss:$8 sm:$0x3c]   ;;  %v140_v36 = vsel %vm4_vm0, %v354_v31, %v353_v30  ;;  %s407_s18 = smov 90  }
   0xd   :  { %v67_v20 = vsel %vm54_vm3, %v335_v18, %v62_v17  ;;  %v355_v32 = vld [vmem:[%s718_s0 + $0x85] ss:$8 sm:%s146_s24]   ;;  %v362_v38 = vld [vmem:[%s718_s0 + $0x4] ss:$8 sm:$0xf]   ;;  %s220_s19 = smov 3 }
   0xe   :  { %v69_v23 = vsel %vm35_vm1, %v67_v20, %v55_v16  ;;  %v151_v34 = vsel %vm49_vm2, %v356_v33, %v355_v32  ;;  %v357_v35 = vld [vmem:[%s718_s0 + $0x35] ss:$8 sm:%s153_s4]   ;;  %v363_v39 = vld [vmem:[%s718_s0 + $0x4] ss:$8 sm:$0xf0]   ;;  %s202_s24 = smov 3 }
   0xf   :  { %70 = vrot.lane.b32.xlu0 %v69_v23, %s405_s25  ;;  %v156_v37 = vsel %vm54_vm3, %v357_v35, %v151_v34  ;;  %v364_v40 = vld [vmem:[%s718_s0 + $0x84] ss:$8 sm:%s183_s7]   ;;  %v177_v43 = vsel %vm4_vm0, %v363_v39, %v362_v38  ;;  %v374_v47 = vld [vmem:[%s718_s0 + $0x33] ss:$8 sm:$0x3c]   ;;  %s227_s29 = smov 192 }
  0x10   :  { %130 = vrot.lane.b32.xlu1 %v351_v28, %s406_s21  ;;  %v365_v41 = vld [vmem:[%s718_s0 + $0x34] ss:$8 sm:$0x3c]   ;;  %v360_v42 = vld [vmem:[%s718_s0 + $0x75] ss:$8 sm:%s165_s8]   ;;  %s408_s30 = smov 72  }
  0x11   :  { %v188_v44 = vsel %vm49_vm2, %v365_v41, %v364_v40  ;;  %v366_v45 = vld [vmem:[%s718_s0 + $0x34] ss:$8 sm:%s190_s17]   ;;  %v373_v46 = vld [vmem:[%s718_s0 + $0x83] ss:$8 sm:%s220_s19]   ;;  %s257_s10 = smov 3  ;;  %s239_s11 = smov 3 }
  0x12   :  { %v193_v48 = vsel %vm54_vm3, %v366_v45, %v188_v44  ;;  %v369_v49 = vld [vmem:[%s718_s0 + $0x74] ss:$8 sm:%s202_s24]   ;;  %v371_v50 = vld [vmem:[%s718_s0 + $0x3] ss:$8 sm:$0xf]   ;;  %v225_v52 = vsel %vm49_vm2, %v374_v47, %v373_v46  ;;  %s264_s20 = smov 192 }
  0x13   :  { %120 = vrot.lane.b32.xlu0 %v119_v29, %s406_s21  ;;  %v372_v51 = vld [vmem:[%s718_s0 + $0x3] ss:$8 sm:$0xf0]   ;;  %v380_v54 = vld [vmem:[%s718_s0 + $0x2] ss:$8 sm:$0xf]  }
  0x14   :  { %157 = vrot.lane.b32.xlu1 %v156_v37, %s407_s18  ;;  %v375_v53 = vld [vmem:[%s718_s0 + $0x33] ss:$8 sm:%s227_s29]   ;;  %v381_v55 = vld [vmem:[%s718_s0 + $0x2] ss:$8 sm:$0xf0]   ;;  %v214_v56 = vsel %vm4_vm0, %v372_v51, %v371_v50  ;;  %s18_s21 = smov 3 }
  0x15   :  { %v230_v57 = vsel %vm54_vm3, %v375_v53, %v225_v52  ;;  %v382_v58 = vld [vmem:[%s718_s0 + $0x82] ss:$8 sm:%s257_s10]   ;;  %v2_v60 = vld [vmem:[%s718_s0] ss:$8 sm:$0xf]   ;;  %s294_s2 = smov 3  ;;  %v251_v4 = vsel %vm4_vm0, %v381_v55, %v380_v54 }
  0x16   :  { %v383_v59 = vld [vmem:[%s718_s0 + $0x32] ss:$8 sm:$0x3c]   ;;  %v3_v61 = vld [vmem:[%s718_s0] ss:$8 sm:$0xf0]  }
  0x17   :  { %141 = vrot.lane.b32.xlu0 %v140_v36, %s407_s18  ;;  %v5_v62 = vsel %vm4_vm0, %v3_v61, %v2_v60  ;;  %v320_v63 = vld [vmem:[%s718_s0 + $0x40] ss:$8 sm:$0xf]   ;;  %v378_v3 = vld [vmem:[%s718_s0 + $0x73] ss:$8 sm:%s239_s11]   ;;  %v262_v5 = vsel %vm49_vm2, %v383_v59, %v382_v58  ;;  %s276_s15 = smov 3 }
  0x18   :  { %178 = vrot.lane.b32.xlu1 %v177_v43, %s408_s30  ;;  %v321_v0 = vld [vmem:[%s718_s0 + $0x40] ss:$8 sm:$0xf0]   ;;  %7 = vst.msk [vmem:[%s719_s1] sm:$0xff] %vm6_vm4, %v5_v62   ;;  %vm106_vm7 = vcmask 1032032   ;;  %vm143_vm8 = vcmask 884432  }
  0x19   :  { %v13_v1 = vsel %vm4_vm0, %v321_v0, %v320_v63  ;;  %v323_v2 = vld [vmem:[%s718_s0 + $0x80] ss:$8 sm:%s18_s21]   ;;  %v384_v6 = vld [vmem:[%s718_s0 + $0x32] ss:$8 sm:%s264_s20]   ;;  %s301_s20 = smov 192  ;;  %s410_s21 = smov 36  }
  0x1a   :  { %322 = vst.msk [vmem:[%s719_s1 + $0x10] sm:$0xff] %vm6_vm4, %v13_v1   ;;  %324 = vst.msk [vmem:[%s719_s1 + $0x20] sm:$0x3] %vm6_vm4, %v323_v2   ;;  %v391_v7 = vld [vmem:[%s718_s0 + $0x81] ss:$8 sm:%s294_s2]   ;;  %v267_v9 = vsel %vm54_vm3, %v384_v6, %v262_v5  ;;  %s411_s2 = smov 18  }
  0x1b   :  { %167 = vrot.lane.b32.xlu0 %v360_v42, %s407_s18  ;;  %v392_v8 = vld [vmem:[%s718_s0 + $0x31] ss:$8 sm:$0x3c]   ;;  %v387_v10 = vld [vmem:[%s718_s0 + $0x72] ss:$8 sm:%s276_s15]   ;;  %vm180_vm9 = vcmask 736832  }
  0x1c   :  { %204 = vrot.lane.b32.xlu1 %v369_v49, %s408_s30  ;;  %v389_v11 = vld [vmem:[%s718_s0 + $0x1] ss:$8 sm:$0xf]   ;;  %v299_v13 = vsel %vm49_vm2, %v392_v8, %v391_v7  ;;  %vm217_vm10 = vcmask 589232   ;;  %vm254_vm11 = vcmask 441632   ;;  %vm291_vm12 = vcmask 294032  }
  0x1d   :  { %v390_v12 = vld [vmem:[%s718_s0 + $0x1] ss:$8 sm:$0xf0]  }
  0x1e   :  { %v393_v14 = vld [vmem:[%s718_s0 + $0x31] ss:$8 sm:%s301_s20]   ;;  %v288_v15 = vsel %vm4_vm0, %v390_v12, %v389_v11 }
  0x1f   :  { %194 = vrot.lane.b32.xlu0 %v193_v48, %s408_s30  ;;  %s409_s30 = smov 54   ;;  %v304_v16 = vsel %vm54_vm3, %v393_v14, %v299_v13 }
  0x20   :  { %231 = vrot.lane.b32.xlu1 %v230_v57, %s409_s30 }
  0x23   :  { %215 = vrot.lane.b32.xlu0 %v214_v56, %s409_s30 }
  0x24   :  { %252 = vrot.lane.b32.xlu1 %v251_v4, %s410_s21 }
  0x27   :  { %241 = vrot.lane.b32.xlu0 %v378_v3, %s409_s30  ;;  %s313_s30 = smov 3 }
  0x28   :  { %278 = vrot.lane.b32.xlu1 %v387_v10, %s410_s21  ;;  %v396_v17 = vld [vmem:[%s718_s0 + $0x71] ss:$8 sm:%s313_s30]  }
  0x2b   :  { %268 = vrot.lane.b32.xlu0 %v267_v9, %s410_s21 }
  0x2c   :  { %305 = vrot.lane.b32.xlu1 %v304_v16, %s411_s2 }
  0x2f   :  { %289 = vrot.lane.b32.xlu0 %v288_v15, %s411_s2 }
  0x33   :  { %315 = vrot.lane.b32.xlu0 %v396_v17, %s411_s2 }
  0x79   :  { %v38_v18 = vpop.permute.xlu0 %37  }
  0x7a   :  { %329 = vst.msk [vmem:[%s719_s1 + $0x8] sm:$0xff] %vm39_vm5, %v38_v18   ;;  %v91_v19 = vpop.permute.xlu1 %90  }
  0x7b   :  { %43 = vst.msk [vmem:[%s719_s1] sm:$0xff] %vm42_vm6, %v38_v18   ;;  %343 = vst.msk [vmem:[%s719_s1 + $0x16] sm:$0x3] %vm42_vm6, %v91_v19  }
  0x7c   :  { %342 = vst.msk [vmem:[%s719_s1 + $0x1e] sm:$0x3] %vm39_vm5, %v91_v19  }
  0x7e   :  { %v105_v21 = vpop.permute.xlu1 %104  }
  0x7f   :  { %107 = vst.msk [vmem:[%s719_s1] sm:$0xff] %vm106_vm7, %v105_v21  }
  0x81   :  { %v71_v20 = vpop.permute.xlu0 %70  }
  0x82   :  { %336 = vst.msk [vmem:[%s719_s1 + $0x28] sm:$0x3] %vm39_vm5, %v71_v20   ;;  %337 = vst.msk [vmem:[%s719_s1 + $0x16] sm:$0xfc] %vm39_vm5, %v71_v20   ;;  %v131_v23 = vpop.permute.xlu1 %130  }
  0x83   :  { %338 = vst.msk [vmem:[%s719_s1 + $0x20] sm:$0x3] %vm42_vm6, %v71_v20   ;;  %339 = vst.msk [vmem:[%s719_s1 + $0xe] sm:$0xfc] %vm42_vm6, %v71_v20  }
  0x84   :  { %352 = vst.msk [vmem:[%s719_s1 + $0x16] sm:$0x3] %vm106_vm7, %v131_v23  }
  0x85   :  { %v121_v22 = vpop.permute.xlu0 %120  }
  0x86   :  { %349 = vst.msk [vmem:[%s719_s1 + $0x20] sm:$0x3] %vm106_vm7, %v121_v22   ;;  %350 = vst.msk [vmem:[%s719_s1 + $0xe] sm:$0xfc] %vm106_vm7, %v121_v22   ;;  %v158_v25 = vpop.permute.xlu1 %157  }
  0x87   :  { %358 = vst.msk [vmem:[%s719_s1 + $0x20] sm:$0x3] %vm143_vm8, %v158_v25   ;;  %359 = vst.msk [vmem:[%s719_s1 + $0xe] sm:$0xfc] %vm143_vm8, %v158_v25  }
  0x89   :  { %v142_v24 = vpop.permute.xlu0 %141  }
  0x8a   :  { %144 = vst.msk [vmem:[%s719_s1] sm:$0xff] %vm143_vm8, %v142_v24   ;;  %v179_v27 = vpop.permute.xlu1 %178  }
  0x8b   :  { %181 = vst.msk [vmem:[%s719_s1] sm:$0xff] %vm180_vm9, %v179_v27  }
  0x8d   :  { %v168_v26 = vpop.permute.xlu0 %167  }
  0x8e   :  { %361 = vst.msk [vmem:[%s719_s1 + $0x16] sm:$0x3] %vm143_vm8, %v168_v26   ;;  %v205_v29 = vpop.permute.xlu1 %204  }
  0x8f   :  { %370 = vst.msk [vmem:[%s719_s1 + $0x16] sm:$0x3] %vm180_vm9, %v205_v29  }
  0x91   :  { %v195_v28 = vpop.permute.xlu0 %194  }
  0x92   :  { %367 = vst.msk [vmem:[%s719_s1 + $0x20] sm:$0x3] %vm180_vm9, %v195_v28   ;;  %368 = vst.msk [vmem:[%s719_s1 + $0xe] sm:$0xfc] %vm180_vm9, %v195_v28   ;;  %v232_v31 = vpop.permute.xlu1 %231  }
  0x93   :  { %376 = vst.msk [vmem:[%s719_s1 + $0x20] sm:$0x3] %vm217_vm10, %v232_v31   ;;  %377 = vst.msk [vmem:[%s719_s1 + $0xe] sm:$0xfc] %vm217_vm10, %v232_v31  }
  0x95   :  { %v216_v30 = vpop.permute.xlu0 %215  }
  0x96   :  { %218 = vst.msk [vmem:[%s719_s1] sm:$0xff] %vm217_vm10, %v216_v30   ;;  %v253_v33 = vpop.permute.xlu1 %252  }
  0x97   :  { %255 = vst.msk [vmem:[%s719_s1] sm:$0xff] %vm254_vm11, %v253_v33  }
  0x99   :  { %v242_v32 = vpop.permute.xlu0 %241  }
  0x9a   :  { %379 = vst.msk [vmem:[%s719_s1 + $0x16] sm:$0x3] %vm217_vm10, %v242_v32   ;;  %v279_v35 = vpop.permute.xlu1 %278  }
  0x9b   :  { %388 = vst.msk [vmem:[%s719_s1 + $0x16] sm:$0x3] %vm254_vm11, %v279_v35  }
  0x9d   :  { %v269_v34 = vpop.permute.xlu0 %268  }
  0x9e   :  { %385 = vst.msk [vmem:[%s719_s1 + $0x20] sm:$0x3] %vm254_vm11, %v269_v34   ;;  %386 = vst.msk [vmem:[%s719_s1 + $0xe] sm:$0xfc] %vm254_vm11, %v269_v34   ;;  %v306_v37 = vpop.permute.xlu1 %305  }
  0x9f   :  { %394 = vst.msk [vmem:[%s719_s1 + $0x20] sm:$0x3] %vm291_vm12, %v306_v37   ;;  %395 = vst.msk [vmem:[%s719_s1 + $0xe] sm:$0xfc] %vm291_vm12, %v306_v37  }
  0xa1   :  { %v290_v36 = vpop.permute.xlu0 %289  }
  0xa2   :  { %292 = vst.msk [vmem:[%s719_s1] sm:$0xff] %vm291_vm12, %v290_v36  }
  0xa5   :  { %v316_v38 = vpop.permute.xlu0 %315  }
  0xa6   :  { %397 = vst.msk [vmem:[%s719_s1 + $0x16] sm:$0x3] %vm291_vm12, %v316_v38  }

// kernel: tile.31
= control target key start
LH: loop header
LB: loop body
LE: loop exit
PB: predicated region body
PF: predicated region fallthrough
CT: control target
= control target key end

     0   :  { %vm4_vm0 = vcmask 1047556   ;;  %vm29_vm1 = vcmask 15360   ;;  %s237_s14 = smov 108   ;;  %s238_s27 = smov 126   ;;  %vm6_vm2 = vcmask 146432   ;;  %vm33_vm3 = vcmask 130048   ;;  %s438_s0 = inlined_call_operand.vmem [shape: f32[8,18,16], index: 0, kind: input, shape index: {}]   ;;  %s439_s1 = inlined_call_operand.vmem [shape: f32[144,16], index: 1, kind: output, shape index: {}]  }
   0x1   :  { %v200_v0 = vld [vmem:[%s438_s0 + $0x6] ss:$8 sm:$0xf]   ;;  %v189_v3 = vld [vmem:[%s438_s0 + $0x7] ss:$8 sm:$0xf]  }
   0x2   :  { %v201_v1 = vld [vmem:[%s438_s0 + $0x6] ss:$8 sm:$0xf0]   ;;  %v190_v4 = vld [vmem:[%s438_s0 + $0x7] ss:$8 sm:$0xf0]  }
   0x3   :  { %v65_v2 = vsel %vm4_vm0, %v201_v1, %v200_v0  ;;  %v22_v5 = vsel %vm4_vm0, %v190_v4, %v189_v3  ;;  %v191_v6 = vld [vmem:[%s438_s0 + $0x7] ss:$8 sm:$0xf]   ;;  %v202_v9 = vld [vmem:[%s438_s0 + $0x46] ss:$8 sm:$0xf]  }
   0x4   :  { %66 = vrot.lane.b32.xlu1 %v65_v2, %s237_s14  ;;  %v192_v7 = vld [vmem:[%s438_s0 + $0x7] ss:$8 sm:$0xf0]   ;;  %v203_v10 = vld [vmem:[%s438_s0 + $0x46] ss:$8 sm:$0xf0]  }
   0x5   :  { %v28_v8 = vsel %vm4_vm0, %v192_v7, %v191_v6  ;;  %v75_v12 = vsel %vm4_vm0, %v203_v10, %v202_v9  ;;  %v194_v13 = vld [vmem:[%s438_s0 + $0x47] ss:$8 sm:$0xf]   ;;  %v207_v19 = vld [vmem:[%s438_s0 + $0x45] ss:$8 sm:$0xf]  }
   0x6   :  { %v30_v11 = vsel %vm29_vm1, %v28_v8, %v22_v5  ;;  %v195_v14 = vld [vmem:[%s438_s0 + $0x47] ss:$8 sm:$0xf0]   ;;  %v208_v21 = vld [vmem:[%s438_s0 + $0x45] ss:$8 sm:$0xf0]  }
   0x7   :  { %31 = vrot.lane.b32.xlu0 %v30_v11, %s238_s27  ;;  %v43_v15 = vsel %vm4_vm0, %v195_v14, %v194_v13  ;;  %v196_v16 = vld [vmem:[%s438_s0 + $0x47] ss:$8 sm:$0xf]   ;;  %v205_v22 = vld [vmem:[%s438_s0 + $0x5] ss:$8 sm:$0xf]   ;;  %v96_v23 = vsel %vm4_vm0, %v208_v21, %v207_v19 }
   0x8   :  { %v197_v17 = vld [vmem:[%s438_s0 + $0x47] ss:$8 sm:$0xf0]   ;;  %76 = vrot.lane.b32.xlu1 %v75_v12, %s237_s14  ;;  %v206_v24 = vld [vmem:[%s438_s0 + $0x5] ss:$8 sm:$0xf0]  }
   0x9   :  { %v49_v18 = vsel %vm4_vm0, %v197_v17, %v196_v16  ;;  %v212_v25 = vld [vmem:[%s438_s0 + $0x44] ss:$8 sm:$0xf]   ;;  %s239_s15 = smov 90   ;;  %v86_v27 = vsel %vm4_vm0, %v206_v24, %v205_v22  ;;  %s240_s24 = smov 72   ;;  %vm36_vm4 = vcmask 1048560  }
   0xa   :  { %v51_v20 = vsel %vm29_vm1, %v49_v18, %v43_v15  ;;  %v213_v26 = vld [vmem:[%s438_s0 + $0x44] ss:$8 sm:$0xf0]   ;;  %v217_v31 = vld [vmem:[%s438_s0 + $0x43] ss:$8 sm:$0xf]  }
   0xb   :  { %52 = vrot.lane.b32.xlu0 %v51_v20, %s238_s27  ;;  %v117_v28 = vsel %vm4_vm0, %v213_v26, %v212_v25  ;;  %v210_v29 = vld [vmem:[%s438_s0 + $0x4] ss:$8 sm:$0xf]   ;;  %v218_v32 = vld [vmem:[%s438_s0 + $0x43] ss:$8 sm:$0xf0]  }
   0xc   :  { %97 = vrot.lane.b32.xlu1 %v96_v23, %s239_s15  ;;  %v211_v30 = vld [vmem:[%s438_s0 + $0x4] ss:$8 sm:$0xf0]   ;;  %v138_v34 = vsel %vm4_vm0, %v218_v32, %v217_v31  ;;  %v215_v35 = vld [vmem:[%s438_s0 + $0x3] ss:$8 sm:$0xf]  }
   0xd   :  { %v107_v33 = vsel %vm4_vm0, %v211_v30, %v210_v29  ;;  %v216_v36 = vld [vmem:[%s438_s0 + $0x3] ss:$8 sm:$0xf0]   ;;  %v222_v37 = vld [vmem:[%s438_s0 + $0x42] ss:$8 sm:$0xf]  }
   0xe   :  { %v223_v38 = vld [vmem:[%s438_s0 + $0x42] ss:$8 sm:$0xf0]   ;;  %v2_v40 = vld [vmem:[%s438_s0] ss:$8 sm:$0xf]   ;;  %v128_v41 = vsel %vm4_vm0, %v216_v36, %v215_v35 }
   0xf   :  { %87 = vrot.lane.b32.xlu0 %v86_v27, %s239_s15  ;;  %v220_v39 = vld [vmem:[%s438_s0 + $0x2] ss:$8 sm:$0xf]   ;;  %s241_s8 = smov 54   ;;  %v159_v44 = vsel %vm4_vm0, %v223_v38, %v222_v37  ;;  %s242_s25 = smov 36   ;;  %vm68_vm5 = vcmask 1032032  }
  0x10   :  { %118 = vrot.lane.b32.xlu1 %v117_v28, %s240_s24  ;;  %v3_v42 = vld [vmem:[%s438_s0] ss:$8 sm:$0xf0]   ;;  %v221_v45 = vld [vmem:[%s438_s0 + $0x2] ss:$8 sm:$0xf0]  }
  0x11   :  { %v186_v43 = vld [vmem:[%s438_s0 + $0x40] ss:$8 sm:$0xf]   ;;  %v5_v46 = vsel %vm4_vm0, %v3_v42, %v2_v40  ;;  %v227_v48 = vld [vmem:[%s438_s0 + $0x41] ss:$8 sm:$0xf]   ;;  %v149_v51 = vsel %vm4_vm0, %v221_v45, %v220_v39 }
  0x12   :  { %v187_v47 = vld [vmem:[%s438_s0 + $0x40] ss:$8 sm:$0xf0]   ;;  %v228_v49 = vld [vmem:[%s438_s0 + $0x41] ss:$8 sm:$0xf0]  }
  0x13   :  { %108 = vrot.lane.b32.xlu0 %v107_v33, %s240_s24  ;;  %7 = vst.msk [vmem:[%s439_s1] sm:$0xff] %vm6_vm2, %v5_v46   ;;  %v13_v50 = vsel %vm4_vm0, %v187_v47, %v186_v43  ;;  %v180_v52 = vsel %vm4_vm0, %v228_v49, %v227_v48  ;;  %v225_v53 = vld [vmem:[%s438_s0 + $0x1] ss:$8 sm:$0xf]   ;;  %vm89_vm6 = vcmask 884432   ;;  %vm110_vm7 = vcmask 736832  }
  0x14   :  { %139 = vrot.lane.b32.xlu1 %v138_v34, %s241_s8  ;;  %188 = vst.msk [vmem:[%s439_s1 + $0x10] sm:$0xff] %vm6_vm2, %v13_v50   ;;  %v226_v54 = vld [vmem:[%s438_s0 + $0x1] ss:$8 sm:$0xf0]   ;;  %s243_s0 = smov 18   ;;  %vm131_vm8 = vcmask 589232  }
  0x15   :  { %v170_v55 = vsel %vm4_vm0, %v226_v54, %v225_v53  ;;  %vm152_vm9 = vcmask 441632   ;;  %vm173_vm10 = vcmask 294032  }
  0x17   :  { %129 = vrot.lane.b32.xlu0 %v128_v41, %s241_s8 }
  0x18   :  { %160 = vrot.lane.b32.xlu1 %v159_v44, %s242_s25 }
  0x1b   :  { %150 = vrot.lane.b32.xlu0 %v149_v51, %s242_s25 }
  0x1c   :  { %181 = vrot.lane.b32.xlu1 %v180_v52, %s243_s0 }
  0x1f   :  { %171 = vrot.lane.b32.xlu0 %v170_v55, %s243_s0 }
  0x76   :  { %v67_v56 = vpop.permute.xlu1 %66  }
  0x79   :  { %v32_v57 = vpop.permute.xlu0 %31  }
  0x7a   :  { %193 = vst.msk [vmem:[%s439_s1 + $0x8] sm:$0xff] %vm33_vm3, %v32_v57   ;;  %v77_v58 = vpop.permute.xlu1 %76  }
  0x7b   :  { %37 = vst.msk [vmem:[%s439_s1] sm:$0xff] %vm36_vm4, %v32_v57  }
  0x7c   :  { %69 = vst.msk [vmem:[%s439_s1] sm:$0xff] %vm68_vm5, %v67_v56  }
  0x7d   :  { %v53_v59 = vpop.permute.xlu0 %52  }
  0x7e   :  { %198 = vst.msk [vmem:[%s439_s1 + $0x18] sm:$0xff] %vm33_vm3, %v53_v59   ;;  %v98_v60 = vpop.permute.xlu1 %97  }
  0x7f   :  { %199 = vst.msk [vmem:[%s439_s1 + $0x10] sm:$0xff] %vm36_vm4, %v53_v59  }
  0x80   :  { %204 = vst.msk [vmem:[%s439_s1 + $0x10] sm:$0xff] %vm68_vm5, %v77_v58  }
  0x81   :  { %209 = vst.msk [vmem:[%s439_s1 + $0x10] sm:$0xff] %vm89_vm6, %v98_v60   ;;  %v88_v61 = vpop.permute.xlu0 %87  }
  0x82   :  { %90 = vst.msk [vmem:[%s439_s1] sm:$0xff] %vm89_vm6, %v88_v61   ;;  %v119_v62 = vpop.permute.xlu1 %118  }
  0x83   :  { %214 = vst.msk [vmem:[%s439_s1 + $0x10] sm:$0xff] %vm110_vm7, %v119_v62  }
  0x85   :  { %v109_v63 = vpop.permute.xlu0 %108  }
  0x86   :  { %111 = vst.msk [vmem:[%s439_s1] sm:$0xff] %vm110_vm7, %v109_v63   ;;  %v140_v0 = vpop.permute.xlu1 %139  }
  0x87   :  { %219 = vst.msk [vmem:[%s439_s1 + $0x10] sm:$0xff] %vm131_vm8, %v140_v0  }
  0x89   :  { %v130_v1 = vpop.permute.xlu0 %129  }
  0x8a   :  { %132 = vst.msk [vmem:[%s439_s1] sm:$0xff] %vm131_vm8, %v130_v1   ;;  %v161_v2 = vpop.permute.xlu1 %160  }
  0x8b   :  { %224 = vst.msk [vmem:[%s439_s1 + $0x10] sm:$0xff] %vm152_vm9, %v161_v2  }
  0x8d   :  { %v151_v3 = vpop.permute.xlu0 %150  }
  0x8e   :  { %153 = vst.msk [vmem:[%s439_s1] sm:$0xff] %vm152_vm9, %v151_v3   ;;  %v182_v4 = vpop.permute.xlu1 %181  }
  0x8f   :  { %229 = vst.msk [vmem:[%s439_s1 + $0x10] sm:$0xff] %vm173_vm10, %v182_v4  }
  0x91   :  { %v172_v5 = vpop.permute.xlu0 %171  }
  0x92   :  { %174 = vst.msk [vmem:[%s439_s1] sm:$0xff] %vm173_vm10, %v172_v5  }

// kernel: forward.1
= control target key start
LH: loop header
LB: loop body
LE: loop exit
PB: predicated region body
PF: predicated region fallthrough
CT: control target
= control target key end

     0   :  { %s8946_s0 = inlined_call_operand.vmem [shape: f32[18,32], index: 0, kind: input, shape index: {}]   ;;  %s8947_s1 = inlined_call_operand.hbm [shape: f32[16,32], index: 1, kind: input, shape index: {}]   ;;  %s8948_s2 = inlined_call_operand.vmem [shape: f32[144,18], index: 2, kind: input, shape index: {}]   ;;  %s8949_s3 = inlined_call_operand.vmem [shape: f32[144,16], index: 3, kind: input, shape index: {}]   ;;  %s8950_s4 = inlined_call_operand.hbm [shape: bf16[12,3,32,32], index: 4, kind: input, shape index: {}]   ;;  %s8951_s5 = inlined_call_operand.hbm [shape: f32[12,3,32], index: 5, kind: input, shape index: {}]   ;;  %s8952_s6 = inlined_call_operand.hbm [shape: bf16[12,32,32], index: 6, kind: input, shape index: {}]   ;;  %s8953_s7 = inlined_call_operand.hbm [shape: f32[12,1,32], index: 7, kind: input, shape index: {}]   ;;  %s8954_s8 = inlined_call_operand.hbm [shape: bf16[12,3,32,32], index: 8, kind: input, shape index: {}]   ;;  %s8955_s9 = inlined_call_operand.hbm [shape: f32[12,3,32], index: 9, kind: input, shape index: {}]   ;;  %s8956_s10 = inlined_call_operand.hbm [shape: bf16[12,32,32], index: 10, kind: input, shape index: {}]   ;;  %s8957_s11 = inlined_call_operand.hbm [shape: f32[12,1,32], index: 11, kind: input, shape index: {}]   ;;  %s8958_s12 = inlined_call_operand.hbm [shape: bf16[12,32,2048], index: 12, kind: input, shape index: {}]   ;;  %s8959_s13 = inlined_call_operand.hbm [shape: f32[12,1,2048], index: 13, kind: input, shape index: {}]   ;;  %s8960_s14 = inlined_call_operand.hbm [shape: bf16[12,32,2048], index: 14, kind: input, shape index: {}]   ;;  %s8961_s15 = inlined_call_operand.hbm [shape: f32[12,1,32], index: 15, kind: input, shape index: {}]   ;;  %s8962_s16 = inlined_call_operand.hbm [shape: f32[12,1,32], index: 16, kind: input, shape index: {}]   ;;  %s8963_s17 = inlined_call_operand.hbm [shape: f32[12,1,32], index: 17, kind: input, shape index: {}]   ;;  %s8964_s18 = inlined_call_operand.hbm [shape: f32[12,1,32], index: 18, kind: input, shape index: {}]   ;;  %s8965_s19 = inlined_call_operand.hbm [shape: f32[12,1,32], index: 19, kind: input, shape index: {}]   ;;  %s8966_s20 = inlined_call_operand.hbm [shape: f32[12,1,32], index: 20, kind: input, shape index: {}]   ;;  %s8967_s21 = inlined_call_operand.hbm [shape: f32[12,1,32], index: 21, kind: input, shape index: {}]   ;;  %s8968_s22 = inlined_call_operand.hbm [shape: f32[2,32], index: 22, kind: output, shape index: {}]  }
   0x1   :  { %8982 = sst [smem:[#allocation67_spill]] %s8946_s0 }
   0x2   :  { %8983 = sst [smem:[#allocation68_spill]] %s8947_s1 }
   0x3   :  { %8984 = sst [smem:[#allocation69_spill]] %s8948_s2 }
   0x4   :  { %8985 = sst [smem:[#allocation70_spill]] %s8949_s3 }
   0x5   :  { %8986 = sst [smem:[#allocation71_spill]] %s8950_s4 }
   0x6   :  { %8987 = sst [smem:[#allocation72_spill]] %s8951_s5 }
   0x7   :  { %8988 = sst [smem:[#allocation73_spill]] %s8952_s6 }
   0x8   :  { %8989 = sst [smem:[#allocation74_spill]] %s8965_s19 }
   0x9   :  { %8990 = sst [smem:[#allocation75_spill]] %s8967_s21 }
   0xa   :  { %8991 = sst [smem:[#allocation76_spill]] %s8968_s22 }
   0xb   :  { %27 = vsyncpa [#allocation3], 0 }
   0xc   :  { %28 = vsyncpa [#allocation6], 0 }
   0xd   :  { %29 = vsyncpa [#allocation9], 0 }
   0xe   :  { %30 = vsyncpa [#allocation12], 0 }
   0xf   :  { %31 = vsyncpa [#allocation15], 0 }
  0x10   :  { %32 = vsyncpa [#allocation18], 0 }
  0x11   :  { %33 = vsyncpa [#allocation21], 0 }
  0x12   :  { %34 = vsyncpa [#allocation24], 0 }
  0x13   :  { %35 = vsyncpa [#allocation27], 0 }
  0x14   :  { %36 = vsyncpa [#allocation30], 0 }
  0x15   :  { %37 = vsyncpa [#allocation4], 0  ;;  %s7003_s3 = smov [#allocation5]   ;;  %s8992_s4 = sld [smem:[#allocation71_spill]] }
  0x16   :  { %s61_s28 = sshll.u32 %s7003_s3, 4  ;;  %s62_s28 = int_to_ptr.vmem [resolvable:$true] %s61_s28 }
  0x1b   :  { %s6509_s0 = scalar_lea.hbm %s8992_s4, 9216 }
  0x1c   :  { %p6510_p0 = scmp.ne.s32.totalorder %s8992_s4, %s6509_s0  ;;  %p6513_p1 = scmp.lt.u32.totalorder %s6509_s0, %s8992_s4 }
  0x1e   :  { %p6515_p2 = pnand %p6513_p1, %p6510_p0 }
  0x20   :  { %6518 = shalt.err (!%p6515_p2)
}
  0x21   :  { %s6519_s6 = scalar_lea.vmem %s62_s28, 9216  ;;  %p6524_p4 = scmp.lt.s32.totalorder %s62_s28, %s62_s28 }
  0x22   :  { %p6520_p3 = scmp.ne.s32.totalorder %s62_s28, %s6519_s6  ;;  %p6525_p5 = scmp.lt.s32.totalorder %s6519_s6, %s6519_s6 }
  0x24   :  { %p6526_p6 = por %p6525_p5, %p6524_p4 }
  0x26   :  { %p6527_p7 = pnand %p6526_p6, %p6520_p3 }
  0x28   :  { %6530 = shalt.err (!%p6527_p7)
}
  0x29   :  { %s7004_s25 = smov 64   ;;  %s7005_s26 = smov 4  }
  0x2a   :  { %67 = dma.hbm_to_vmem [thread:$0]  %s8992_s4, 9216, %s62_s28, [#allocation6], %s7004_s25, %s7004_s25, %s7005_s26  }
  0x2b   :  { %s7006_s3 = smov [#allocation8]   ;;  %s7007_s30 = smov [#allocation11]  }
  0x2c   :  { %s85_s29 = sshll.u32 %s7006_s3, 4  ;;  %s109_s0 = sshll.u32 %s7007_s30, 4  ;;  %s86_s29 = int_to_ptr.vmem [resolvable:$true] %s85_s29  ;;  %s110_s0 = int_to_ptr.vmem [resolvable:$true] %s109_s0 }
  0x2d   :  { %s8993_s5 = sld [smem:[#allocation73_spill]] }
  0x33   :  { %s6531_s24 = scalar_lea.hbm %s8993_s5, 3072 }
  0x34   :  { %p6532_p8 = scmp.ne.s32.totalorder %s8993_s5, %s6531_s24  ;;  %p6535_p9 = scmp.lt.u32.totalorder %s6531_s24, %s8993_s5 }
  0x36   :  { %p6537_p10 = pnand %p6535_p9, %p6532_p8 }
  0x38   :  { %6540 = shalt.err (!%p6537_p10)
}
  0x39   :  { %s6541_s28 = scalar_lea.vmem %s86_s29, 3072  ;;  %p6546_p12 = scmp.lt.s32.totalorder %s86_s29, %s86_s29 }
  0x3a   :  { %p6542_p11 = scmp.ne.s32.totalorder %s86_s29, %s6541_s28  ;;  %p6547_p13 = scmp.lt.s32.totalorder %s6541_s28, %s6541_s28 }
  0x3c   :  { %p6548_p0 = por %p6547_p13, %p6546_p12 }
  0x3e   :  { %p6549_p1 = pnand %p6548_p0, %p6542_p11 }
  0x40   :  { %6552 = shalt.err (!%p6549_p1)
}
  0x41   :  { %91 = dma.hbm_to_vmem [thread:$0]  %s8993_s5, 3072, %s86_s29, [#allocation9], %s7004_s25, %s7004_s25, %s7005_s26  }
  0x42   :  { %s6553_s21 = scalar_lea.hbm %s8954_s8, 9216 }
  0x43   :  { %p6554_p2 = scmp.ne.s32.totalorder %s8954_s8, %s6553_s21  ;;  %p6557_p3 = scmp.lt.u32.totalorder %s6553_s21, %s8954_s8 }
  0x45   :  { %p6559_p4 = pnand %p6557_p3, %p6554_p2 }
  0x47   :  { %6562 = shalt.err (!%p6559_p4)
}
  0x48   :  { %s6563_s1 = scalar_lea.vmem %s110_s0, 9216  ;;  %p6568_p6 = scmp.lt.s32.totalorder %s110_s0, %s110_s0 }
  0x49   :  { %p6564_p5 = scmp.ne.s32.totalorder %s110_s0, %s6563_s1  ;;  %p6569_p7 = scmp.lt.s32.totalorder %s6563_s1, %s6563_s1 }
  0x4b   :  { %p6570_p8 = por %p6569_p7, %p6568_p6 }
  0x4d   :  { %p6571_p9 = pnand %p6570_p8, %p6564_p5 }
  0x4f   :  { %6574 = shalt.err (!%p6571_p9)
}
  0x50   :  { %115 = dma.hbm_to_vmem [thread:$0]  %s8954_s8, 9216, %s110_s0, [#allocation12], %s7004_s25, %s7004_s25, %s7005_s26  }
  0x51   :  { %s7008_s24 = smov [#allocation14]   ;;  %s7009_s28 = smov [#allocation17]  }
  0x52   :  { %s133_s6 = sshll.u32 %s7008_s24, 4  ;;  %s157_s4 = sshll.u32 %s7009_s28, 4  ;;  %s134_s6 = int_to_ptr.vmem [resolvable:$true] %s133_s6  ;;  %s158_s4 = int_to_ptr.vmem [resolvable:$true] %s157_s4 }
  0x53   :  { %s6575_s19 = scalar_lea.hbm %s8956_s10, 3072 }
  0x54   :  { %p6576_p10 = scmp.ne.s32.totalorder %s8956_s10, %s6575_s19  ;;  %p6579_p11 = scmp.lt.u32.totalorder %s6575_s19, %s8956_s10 }
  0x56   :  { %p6581_p12 = pnand %p6579_p11, %p6576_p10 }
  0x58   :  { %6584 = shalt.err (!%p6581_p12)
}
  0x59   :  { %s6585_s8 = scalar_lea.vmem %s134_s6, 3072  ;;  %p6590_p0 = scmp.lt.s32.totalorder %s134_s6, %s134_s6 }
  0x5a   :  { %p6586_p13 = scmp.ne.s32.totalorder %s134_s6, %s6585_s8  ;;  %p6591_p1 = scmp.lt.s32.totalorder %s6585_s8, %s6585_s8 }
  0x5c   :  { %p6592_p2 = por %p6591_p1, %p6590_p0 }
  0x5e   :  { %p6593_p3 = pnand %p6592_p2, %p6586_p13 }
  0x60   :  { %6596 = shalt.err (!%p6593_p3)
}
  0x61   :  { %139 = dma.hbm_to_vmem [thread:$0]  %s8956_s10, 3072, %s134_s6, [#allocation15], %s7004_s25, %s7004_s25, %s7005_s26  }
  0x62   :  { %s6597_s5 = scalar_lea.hbm %s8958_s12, 49152 }
  0x63   :  { %p6598_p4 = scmp.ne.s32.totalorder %s8958_s12, %s6597_s5  ;;  %p6601_p5 = scmp.lt.u32.totalorder %s6597_s5, %s8958_s12 }
  0x65   :  { %p6603_p6 = pnand %p6601_p5, %p6598_p4 }
  0x67   :  { %6606 = shalt.err (!%p6603_p6)
}
  0x68   :  { %s6607_s19 = scalar_lea.vmem %s158_s4, 49152  ;;  %p6612_p8 = scmp.lt.s32.totalorder %s158_s4, %s158_s4 }
  0x69   :  { %p6608_p7 = scmp.ne.s32.totalorder %s158_s4, %s6607_s19  ;;  %p6613_p9 = scmp.lt.s32.totalorder %s6607_s19, %s6607_s19 }
  0x6b   :  { %p6614_p10 = por %p6613_p9, %p6612_p8 }
  0x6d   :  { %p6615_p11 = pnand %p6614_p10, %p6608_p7 }
  0x6f   :  { %6618 = shalt.err (!%p6615_p11)
}
  0x70   :  { %s7010_s10 = smov 1024   ;;  %s7011_s27 = smov [#allocation20]  }
  0x71   :  { %163 = dma.hbm_to_vmem [thread:$0]  %s8958_s12, 49152, %s158_s4, [#allocation18], %s7010_s10, %s7010_s10, %s7004_s25  }
  0x72   :  { %s181_s3 = sshll.u32 %s7011_s27, 4  ;;  %s6619_s0 = scalar_lea.hbm %s8960_s14, 49152  ;;  %s182_s3 = int_to_ptr.vmem [resolvable:$true] %s181_s3 }
  0x73   :  { %p6620_p12 = scmp.ne.s32.totalorder %s8960_s14, %s6619_s0  ;;  %p6623_p13 = scmp.lt.u32.totalorder %s6619_s0, %s8960_s14 }
  0x75   :  { %p6625_p0 = pnand %p6623_p13, %p6620_p12 }
  0x77   :  { %6628 = shalt.err (!%p6625_p0)
}
  0x78   :  { %s6629_s24 = scalar_lea.vmem %s182_s3, 49152  ;;  %p6634_p2 = scmp.lt.s32.totalorder %s182_s3, %s182_s3 }
  0x79   :  { %p6630_p1 = scmp.ne.s32.totalorder %s182_s3, %s6629_s24  ;;  %p6635_p3 = scmp.lt.s32.totalorder %s6629_s24, %s6629_s24 }
  0x7b   :  { %p6636_p4 = por %p6635_p3, %p6634_p2 }
  0x7d   :  { %p6637_p5 = pnand %p6636_p4, %p6630_p1 }
  0x7f   :  { %6640 = shalt.err (!%p6637_p5)
}
  0x80   :  { %187 = dma.hbm_to_vmem [thread:$0]  %s8960_s14, 49152, %s182_s3, [#allocation21], %s7010_s10, %s7010_s10, %s7004_s25  }
  0x81   :  { %s7012_s28 = smov [#allocation23]   ;;  %s7013_s22 = smov [#allocation26]  }
  0x82   :  { %s205_s2 = sshll.u32 %s7012_s28, 4  ;;  %s229_s19 = sshll.u32 %s7013_s22, 4  ;;  %s206_s2 = int_to_ptr.vmem [resolvable:$true] %s205_s2  ;;  %s230_s19 = int_to_ptr.vmem [resolvable:$true] %s229_s19 }
  0x83   :  { %s6641_s27 = scalar_lea.hbm %s8962_s16, 192 }
  0x84   :  { %p6642_p6 = scmp.ne.s32.totalorder %s8962_s16, %s6641_s27  ;;  %p6645_p7 = scmp.lt.u32.totalorder %s6641_s27, %s8962_s16 }
  0x86   :  { %p6647_p8 = pnand %p6645_p7, %p6642_p6 }
  0x88   :  { %6650 = shalt.err (!%p6647_p8)
}
  0x89   :  { %s6651_s14 = scalar_lea.vmem %s206_s2, 192  ;;  %p6656_p10 = scmp.lt.s32.totalorder %s206_s2, %s206_s2 }
  0x8a   :  { %p6652_p9 = scmp.ne.s32.totalorder %s206_s2, %s6651_s14  ;;  %p6657_p11 = scmp.lt.s32.totalorder %s6651_s14, %s6651_s14 }
  0x8c   :  { %p6658_p12 = por %p6657_p11, %p6656_p10 }
  0x8e   :  { %p6659_p13 = pnand %p6658_p12, %p6652_p9 }
  0x90   :  { %6662 = shalt.err (!%p6659_p13)
}
  0x91   :  { %s7014_s10 = smov 16   ;;  %s7015_s3 = smov 1  }
  0x92   :  { %211 = dma.hbm_to_vmem [thread:$0]  %s8962_s16, 192, %s206_s2, [#allocation24], %s7014_s10, %s7014_s10, %s7015_s3  }
  0x93   :  { %s6663_s12 = scalar_lea.hbm %s8964_s18, 192 }
  0x94   :  { %p6664_p0 = scmp.ne.s32.totalorder %s8964_s18, %s6663_s12  ;;  %p6667_p1 = scmp.lt.u32.totalorder %s6663_s12, %s8964_s18 }
  0x96   :  { %p6669_p2 = pnand %p6667_p1, %p6664_p0 }
  0x98   :  { %6672 = shalt.err (!%p6669_p2)
}
  0x99   :  { %s6673_s21 = scalar_lea.vmem %s230_s19, 192  ;;  %p6678_p4 = scmp.lt.s32.totalorder %s230_s19, %s230_s19 }
  0x9a   :  { %p6674_p3 = scmp.ne.s32.totalorder %s230_s19, %s6673_s21  ;;  %p6679_p5 = scmp.lt.s32.totalorder %s6673_s21, %s6673_s21 }
  0x9c   :  { %p6680_p6 = por %p6679_p5, %p6678_p4 }
  0x9e   :  { %p6681_p7 = pnand %p6680_p6, %p6674_p3 }
  0xa0   :  { %6684 = shalt.err (!%p6681_p7)
}
  0xa1   :  { %235 = dma.hbm_to_vmem [thread:$0]  %s8964_s18, 192, %s230_s19, [#allocation27], %s7014_s10, %s7014_s10, %s7015_s3  }
  0xa2   :  { %s7016_s27 = smov [#allocation29]   ;;  %s7017_s8 = smov [#allocation2]  }
  0xa3   :  { %s253_s30 = sshll.u32 %s7016_s27, 4  ;;  %s45_s0 = sshll.u32 %s7017_s8, 4  ;;  %s254_s30 = int_to_ptr.vmem [resolvable:$true] %s253_s30  ;;  %s46_s0 = int_to_ptr.vmem [resolvable:$true] %s45_s0 }
  0xa4   :  { %s6685_s1 = scalar_lea.hbm %s8966_s20, 192 }
  0xa5   :  { %p6686_p8 = scmp.ne.s32.totalorder %s8966_s20, %s6685_s1  ;;  %p6689_p9 = scmp.lt.u32.totalorder %s6685_s1, %s8966_s20 }
  0xa7   :  { %p6691_p10 = pnand %p6689_p9, %p6686_p8 }
  0xa9   :  { %6694 = shalt.err (!%p6691_p10)
}
  0xaa   :  { %s6695_s18 = scalar_lea.vmem %s254_s30, 192  ;;  %p6700_p12 = scmp.lt.s32.totalorder %s254_s30, %s254_s30 }
  0xab   :  { %p6696_p11 = scmp.ne.s32.totalorder %s254_s30, %s6695_s18  ;;  %p6701_p13 = scmp.lt.s32.totalorder %s6695_s18, %s6695_s18 }
  0xad   :  { %p6702_p0 = por %p6701_p13, %p6700_p12 }
  0xaf   :  { %p6703_p1 = pnand %p6702_p0, %p6696_p11 }
  0xb1   :  { %6706 = shalt.err (!%p6703_p1)
}
  0xb2   :  { %259 = dma.hbm_to_vmem [thread:$0]  %s8966_s20, 192, %s254_s30, [#allocation30], %s7014_s10, %s7014_s10, %s7015_s3  }
  0xb3   :  { %s8994_s6 = sld [smem:[#allocation68_spill]] }
  0xb9   :  { %s6707_s21 = scalar_lea.hbm %s8994_s6, 256 }
  0xba   :  { %p6708_p2 = scmp.ne.s32.totalorder %s8994_s6, %s6707_s21  ;;  %p6711_p3 = scmp.lt.u32.totalorder %s6707_s21, %s8994_s6 }
  0xbc   :  { %p6713_p4 = pnand %p6711_p3, %p6708_p2 }
  0xbe   :  { %6716 = shalt.err (!%p6713_p4)
}
  0xbf   :  { %s6717_s23 = scalar_lea.vmem %s46_s0, 256  ;;  %p6722_p6 = scmp.lt.s32.totalorder %s46_s0, %s46_s0 }
  0xc0   :  { %p6718_p5 = scmp.ne.s32.totalorder %s46_s0, %s6717_s23  ;;  %p6723_p7 = scmp.lt.s32.totalorder %s6717_s23, %s6717_s23 }
  0xc2   :  { %p6724_p8 = por %p6723_p7, %p6722_p6 }
  0xc4   :  { %p6725_p9 = pnand %p6724_p8, %p6718_p5 }
  0xc6   :  { %6728 = shalt.err (!%p6725_p9)
}
  0xc7   :  { %s7018_s20 = smov 128   ;;  %s7019_s30 = smov 8  }
  0xc8   :  { %51 = dma.hbm_to_vmem [thread:$0]  %s8994_s6, 256, %s46_s0, [#allocation3], %s7018_s20, %s7018_s20, %s7019_s30  }
  0xc9   :  { %s7020_s29 = smov [#allocation7]   ;;  %s7021_s24 = smov [#allocation10]  }
  0xca   :  { %s73_s5 = sshll.u32 %s7020_s29, 4  ;;  %s97_s12 = sshll.u32 %s7021_s24, 4  ;;  %s74_s5 = int_to_ptr.vmem [resolvable:$true] %s73_s5  ;;  %s98_s12 = int_to_ptr.vmem [resolvable:$true] %s97_s12 }
  0xcb   :  { %s8995_s4 = sld [smem:[#allocation72_spill]] }
  0xd1   :  { %s6729_s28 = scalar_lea.hbm %s8995_s4, 768 }
  0xd2   :  { %p6730_p10 = scmp.ne.s32.totalorder %s8995_s4, %s6729_s28  ;;  %p6733_p11 = scmp.lt.u32.totalorder %s6729_s28, %s8995_s4 }
  0xd4   :  { %p6735_p12 = pnand %p6733_p11, %p6730_p10 }
  0xd6   :  { %6738 = shalt.err (!%p6735_p12)
}
  0xd7   :  { %s6739_s0 = scalar_lea.vmem %s74_s5, 768  ;;  %p6744_p0 = scmp.lt.s32.totalorder %s74_s5, %s74_s5 }
  0xd8   :  { %p6740_p13 = scmp.ne.s32.totalorder %s74_s5, %s6739_s0  ;;  %p6745_p1 = scmp.lt.s32.totalorder %s6739_s0, %s6739_s0 }
  0xda   :  { %p6746_p2 = por %p6745_p1, %p6744_p0 }
  0xdc   :  { %p6747_p3 = pnand %p6746_p2, %p6740_p13 }
  0xde   :  { %6750 = shalt.err (!%p6747_p3)
}
  0xdf   :  { %79 = dma.hbm_to_vmem [thread:$0]  %s8995_s4, 768, %s74_s5, [#allocation6], %s7004_s25, %s7004_s25, %s7005_s26  }
  0xe0   :  { %s6751_s20 = scalar_lea.hbm %s8953_s7, 192 }
  0xe1   :  { %p6752_p4 = scmp.ne.s32.totalorder %s8953_s7, %s6751_s20  ;;  %p6755_p5 = scmp.lt.u32.totalorder %s6751_s20, %s8953_s7 }
  0xe3   :  { %p6757_p6 = pnand %p6755_p5, %p6752_p4 }
  0xe5   :  { %6760 = shalt.err (!%p6757_p6)
}
  0xe6   :  { %s6761_s24 = scalar_lea.vmem %s98_s12, 192  ;;  %p6766_p8 = scmp.lt.s32.totalorder %s98_s12, %s98_s12 }
  0xe7   :  { %p6762_p7 = scmp.ne.s32.totalorder %s98_s12, %s6761_s24  ;;  %p6767_p9 = scmp.lt.s32.totalorder %s6761_s24, %s6761_s24 }
  0xe9   :  { %p6768_p10 = por %p6767_p9, %p6766_p8 }
  0xeb   :  { %p6769_p11 = pnand %p6768_p10, %p6762_p7 }
  0xed   :  { %6772 = shalt.err (!%p6769_p11)
}
  0xee   :  { %103 = dma.hbm_to_vmem [thread:$0]  %s8953_s7, 192, %s98_s12, [#allocation9], %s7014_s10, %s7014_s10, %s7015_s3  }
  0xef   :  { %s7022_s19 = smov [#allocation13]   ;;  %s7023_s28 = smov [#allocation16]  }
  0xf0   :  { %s121_s4 = sshll.u32 %s7022_s19, 4  ;;  %s145_s22 = sshll.u32 %s7023_s28, 4  ;;  %s122_s4 = int_to_ptr.vmem [resolvable:$true] %s121_s4  ;;  %s146_s22 = int_to_ptr.vmem [resolvable:$true] %s145_s22 }
  0xf1   :  { %s6773_s2 = scalar_lea.hbm %s8955_s9, 768 }
  0xf2   :  { %p6774_p12 = scmp.ne.s32.totalorder %s8955_s9, %s6773_s2  ;;  %p6777_p13 = scmp.lt.u32.totalorder %s6773_s2, %s8955_s9 }
  0xf4   :  { %p6779_p0 = pnand %p6777_p13, %p6774_p12 }
  0xf6   :  { %6782 = shalt.err (!%p6779_p0)
}
  0xf7   :  { %s6783_s7 = scalar_lea.vmem %s122_s4, 768  ;;  %p6788_p2 = scmp.lt.s32.totalorder %s122_s4, %s122_s4 }
  0xf8   :  { %p6784_p1 = scmp.ne.s32.totalorder %s122_s4, %s6783_s7  ;;  %p6789_p3 = scmp.lt.s32.totalorder %s6783_s7, %s6783_s7 }
  0xfa   :  { %p6790_p4 = por %p6789_p3, %p6788_p2 }
  0xfc   :  { %p6791_p5 = pnand %p6790_p4, %p6784_p1 }
  0xfe   :  { %6794 = shalt.err (!%p6791_p5)
}
  0xff   :  { %127 = dma.hbm_to_vmem [thread:$0]  %s8955_s9, 768, %s122_s4, [#allocation12], %s7004_s25, %s7004_s25, %s7005_s26  }
 0x100   :  { %s6795_s14 = scalar_lea.hbm %s8957_s11, 192 }
 0x101   :  { %p6796_p6 = scmp.ne.s32.totalorder %s8957_s11, %s6795_s14  ;;  %p6799_p7 = scmp.lt.u32.totalorder %s6795_s14, %s8957_s11 }
 0x103   :  { %p6801_p8 = pnand %p6799_p7, %p6796_p6 }
 0x105   :  { %6804 = shalt.err (!%p6801_p8)
}
 0x106   :  { %s6805_s18 = scalar_lea.vmem %s146_s22, 192  ;;  %p6810_p10 = scmp.lt.s32.totalorder %s146_s22, %s146_s22 }
 0x107   :  { %p6806_p9 = scmp.ne.s32.totalorder %s146_s22, %s6805_s18  ;;  %p6811_p11 = scmp.lt.s32.totalorder %s6805_s18, %s6805_s18 }
 0x109   :  { %p6812_p12 = por %p6811_p11, %p6810_p10 }
 0x10b   :  { %p6813_p13 = pnand %p6812_p12, %p6806_p9 }
 0x10d   :  { %6816 = shalt.err (!%p6813_p13)
}
 0x10e   :  { %151 = dma.hbm_to_vmem [thread:$0]  %s8957_s11, 192, %s146_s22, [#allocation15], %s7014_s10, %s7014_s10, %s7015_s3  }
 0x10f   :  { %s7024_s26 = smov [#allocation19]   ;;  %s6817_s21 = scalar_lea.hbm %s8959_s13, 3072 }
 0x110   :  { %s169_s19 = sshll.u32 %s7024_s26, 4  ;;  %p6818_p0 = scmp.ne.s32.totalorder %s8959_s13, %s6817_s21  ;;  %s170_s19 = int_to_ptr.vmem [resolvable:$true] %s169_s19 }
 0x111   :  { %p6821_p1 = scmp.lt.u32.totalorder %s6817_s21, %s8959_s13 }
 0x113   :  { %p6823_p2 = pnand %p6821_p1, %p6818_p0 }
 0x115   :  { %6826 = shalt.err (!%p6823_p2)
}
 0x116   :  { %s6827_s27 = scalar_lea.vmem %s170_s19, 3072  ;;  %p6832_p4 = scmp.lt.s32.totalorder %s170_s19, %s170_s19 }
 0x117   :  { %p6828_p3 = scmp.ne.s32.totalorder %s170_s19, %s6827_s27  ;;  %p6833_p5 = scmp.lt.s32.totalorder %s6827_s27, %s6827_s27 }
 0x119   :  { %p6834_p6 = por %p6833_p5, %p6832_p4 }
 0x11b   :  { %p6835_p7 = pnand %p6834_p6, %p6828_p3 }
 0x11d   :  { %6838 = shalt.err (!%p6835_p7)
}
 0x11e   :  { %s7025_s11 = smov 256   ;;  %s7026_s7 = smov [#allocation22]  }
 0x11f   :  { %175 = dma.hbm_to_vmem [thread:$0]  %s8959_s13, 3072, %s170_s19, [#allocation18], %s7025_s11, %s7025_s11, %s7014_s10  }
 0x120   :  { %s193_s12 = sshll.u32 %s7026_s7, 4  ;;  %s7027_s23 = smov [#allocation25]   ;;  %s194_s12 = int_to_ptr.vmem [resolvable:$true] %s193_s12 }
 0x121   :  { %s217_s20 = sshll.u32 %s7027_s23, 4  ;;  %s6839_s1 = scalar_lea.hbm %s8961_s15, 192  ;;  %s218_s20 = int_to_ptr.vmem [resolvable:$true] %s217_s20 }
 0x122   :  { %p6840_p8 = scmp.ne.s32.totalorder %s8961_s15, %s6839_s1  ;;  %p6843_p9 = scmp.lt.u32.totalorder %s6839_s1, %s8961_s15 }
 0x124   :  { %p6845_p10 = pnand %p6843_p9, %p6840_p8 }
 0x126   :  { %6848 = shalt.err (!%p6845_p10)
}
 0x127   :  { %s6849_s13 = scalar_lea.vmem %s194_s12, 192  ;;  %p6854_p12 = scmp.lt.s32.totalorder %s194_s12, %s194_s12 }
 0x128   :  { %p6850_p11 = scmp.ne.s32.totalorder %s194_s12, %s6849_s13  ;;  %p6855_p13 = scmp.lt.s32.totalorder %s6849_s13, %s6849_s13 }
 0x12a   :  { %p6856_p0 = por %p6855_p13, %p6854_p12 }
 0x12c   :  { %p6857_p1 = pnand %p6856_p0, %p6850_p11 }
 0x12e   :  { %6860 = shalt.err (!%p6857_p1)
}
 0x12f   :  { %199 = dma.hbm_to_vmem [thread:$0]  %s8961_s15, 192, %s194_s12, [#allocation21], %s7014_s10, %s7014_s10, %s7015_s3  }
 0x130   :  { %s6861_s4 = scalar_lea.hbm %s8963_s17, 192 }
 0x131   :  { %p6862_p2 = scmp.ne.s32.totalorder %s8963_s17, %s6861_s4  ;;  %p6865_p3 = scmp.lt.u32.totalorder %s6861_s4, %s8963_s17 }
 0x133   :  { %p6867_p4 = pnand %p6865_p3, %p6862_p2 }
 0x135   :  { %6870 = shalt.err (!%p6867_p4)
}
 0x136   :  { %s6871_s0 = scalar_lea.vmem %s218_s20, 192  ;;  %p6876_p6 = scmp.lt.s32.totalorder %s218_s20, %s218_s20 }
 0x137   :  { %p6872_p5 = scmp.ne.s32.totalorder %s218_s20, %s6871_s0  ;;  %p6877_p7 = scmp.lt.s32.totalorder %s6871_s0, %s6871_s0 }
 0x139   :  { %p6878_p8 = por %p6877_p7, %p6876_p6 }
 0x13b   :  { %p6879_p9 = pnand %p6878_p8, %p6872_p5 }
 0x13d   :  { %6882 = shalt.err (!%p6879_p9)
}
 0x13e   :  { %223 = dma.hbm_to_vmem [thread:$0]  %s8963_s17, 192, %s218_s20, [#allocation24], %s7014_s10, %s7014_s10, %s7015_s3  }
 0x13f   :  { %s7028_s27 = smov [#allocation28]   ;;  %s7029_s22 = smov [#allocation31]  }
 0x140   :  { %s241_s11 = sshll.u32 %s7028_s27, 4  ;;  %s265_s8 = sshll.u32 %s7029_s22, 4  ;;  %s242_s11 = int_to_ptr.vmem [resolvable:$true] %s241_s11  ;;  %s266_s8 = int_to_ptr.vmem [resolvable:$true] %s265_s8 }
 0x141   :  { %s8996_s23 = sld [smem:[#allocation74_spill]] }
 0x147   :  { %s6883_s30 = scalar_lea.hbm %s8996_s23, 192 }
 0x148   :  { %p6884_p10 = scmp.ne.s32.totalorder %s8996_s23, %s6883_s30  ;;  %p6887_p11 = scmp.lt.u32.totalorder %s6883_s30, %s8996_s23 }
 0x14a   :  { %p6889_p12 = pnand %p6887_p11, %p6884_p10 }
 0x14c   :  { %6892 = shalt.err (!%p6889_p12)
}
 0x14d   :  { %s6893_s17 = scalar_lea.vmem %s242_s11, 192  ;;  %p6898_p0 = scmp.lt.s32.totalorder %s242_s11, %s242_s11 }
 0x14e   :  { %p6894_p13 = scmp.ne.s32.totalorder %s242_s11, %s6893_s17  ;;  %p6899_p1 = scmp.lt.s32.totalorder %s6893_s17, %s6893_s17 }
 0x150   :  { %p6900_p2 = por %p6899_p1, %p6898_p0 }
 0x152   :  { %p6901_p3 = pnand %p6900_p2, %p6894_p13 }
 0x154   :  { %6904 = shalt.err (!%p6901_p3)
}
 0x155   :  { %247 = dma.hbm_to_vmem [thread:$0]  %s8996_s23, 192, %s242_s11, [#allocation27], %s7014_s10, %s7014_s10, %s7015_s3  }
 0x156   :  { %s8997_s9 = sld [smem:[#allocation75_spill]] }
 0x15c   :  { %s6905_s25 = scalar_lea.hbm %s8997_s9, 192 }
 0x15d   :  { %p6906_p4 = scmp.ne.s32.totalorder %s8997_s9, %s6905_s25  ;;  %p6909_p5 = scmp.lt.u32.totalorder %s6905_s25, %s8997_s9 }
 0x15f   :  { %p6911_p6 = pnand %p6909_p5, %p6906_p4 }
 0x161   :  { %6914 = shalt.err (!%p6911_p6)
}
 0x162   :  { %s6915_s21 = scalar_lea.vmem %s266_s8, 192  ;;  %p6920_p8 = scmp.lt.s32.totalorder %s266_s8, %s266_s8 }
 0x163   :  { %p6916_p7 = scmp.ne.s32.totalorder %s266_s8, %s6915_s21  ;;  %p6921_p9 = scmp.lt.s32.totalorder %s6915_s21, %s6915_s21 }
 0x165   :  { %p6922_p10 = por %p6921_p9, %p6920_p8 }
 0x167   :  { %p6923_p11 = pnand %p6922_p10, %p6916_p7 }
 0x169   :  { %6926 = shalt.err (!%p6923_p11)
}
 0x16a   :  { %271 = dma.hbm_to_vmem [thread:$0]  %s8997_s9, 192, %s266_s8, [#allocation30], %s7014_s10, %s7014_s10, %s7015_s3  }
 0x16b   :  { %6965 = dma.done.wait [#allocation3], 256  }
 0x16c   :  { %6966 = vsyncadd [#allocation3], 4294967040 }
 0x16d   :  { %6967 = dma.done.wait [#allocation6], 9984  }
 0x16e   :  { %6968 = vsyncadd [#allocation6], 4294957312 }
 0x16f   :  { %6969 = dma.done.wait [#allocation9], 3264  }
 0x170   :  { %6970 = vsyncadd [#allocation9], 4294964032 }
 0x171   :  { %6971 = dma.done.wait [#allocation12], 9984  }
 0x172   :  { %6972 = vsyncadd [#allocation12], 4294957312 }
 0x173   :  { %6973 = dma.done.wait [#allocation15], 3264  }
 0x174   :  { %6974 = vsyncadd [#allocation15], 4294964032 }
 0x175   :  { %6975 = dma.done.wait [#allocation18], 52224  }
 0x176   :  { %6976 = vsyncadd [#allocation18], 4294915072 }
 0x177   :  { %6977 = dma.done.wait [#allocation21], 49344  }
 0x178   :  { %6978 = vsyncadd [#allocation21], 4294917952 }
 0x179   :  { %6979 = dma.done.wait [#allocation24], 384  }
 0x17a   :  { %6980 = vsyncadd [#allocation24], 4294966912 }
 0x17b   :  { %6981 = dma.done.wait [#allocation27], 384  }
 0x17c   :  { %6982 = vsyncadd [#allocation27], 4294966912 }
 0x17d   :  { %6983 = dma.done.wait [#allocation30], 384  }
 0x17e   :  { %6984 = vsyncadd [#allocation30], 4294966912  ;;  %v330_v0 = vld [vmem:[#allocation2] sm:$0xff]  ;;  %v331_v1 = vld [vmem:[#allocation2 + $0x8] sm:$0xff]  ;;  %s8998_s0 = sld [smem:[#allocation69_spill]]  ;;  %s9016_s7 = sld [smem:[#allocation70_spill]] }
 0x17f   :  { %v7444_v3 = vpack.c.bf16 %v331_v1, %v330_v0 }
 0x184   :  { %v7442_v2 = vld [vmem:[%s8998_s0] sm:$0xff]  ;;  %v7449_v4 = vld [vmem:[%s8998_s0 + $0x8] sm:$0xff]  ;;  %v7454_v5 = vld [vmem:[%s8998_s0 + $0x10] sm:$0xff] }
 0x185   :  { %8999 = vst [vmem:[#allocation44_spill] sm:$0xff] %v7442_v2  ;;  %9000 = vst [vmem:[#allocation45_spill] sm:$0xff] %v7449_v4  ;;  %v7459_v6 = vld [vmem:[%s8998_s0 + $0x18] sm:$0xff]  ;;  %v7464_v7 = vld [vmem:[%s8998_s0 + $0x20] sm:$0xff] }
 0x186   :  { %9001 = vst [vmem:[#allocation46_spill] sm:$0xff] %v7454_v5  ;;  %9002 = vst [vmem:[#allocation47_spill] sm:$0xff] %v7459_v6  ;;  %v7469_v8 = vld [vmem:[%s8998_s0 + $0x28] sm:$0xff]  ;;  %v7474_v9 = vld [vmem:[%s8998_s0 + $0x30] sm:$0xff] }
 0x187   :  { %9003 = vst [vmem:[#allocation48_spill] sm:$0xff] %v7464_v7  ;;  %9004 = vst [vmem:[#allocation49_spill] sm:$0xff] %v7469_v8  ;;  %v7479_v10 = vld [vmem:[%s8998_s0 + $0x38] sm:$0xff]  ;;  %v7484_v11 = vld [vmem:[%s8998_s0 + $0x40] sm:$0xff] }
 0x188   :  { %9005 = vst [vmem:[#allocation50_spill] sm:$0xff] %v7474_v9  ;;  %9006 = vst [vmem:[#allocation51_spill] sm:$0xff] %v7479_v10  ;;  %v7489_v12 = vld [vmem:[%s8998_s0 + $0x48] sm:$0xff]  ;;  %v7494_v13 = vld [vmem:[%s8998_s0 + $0x50] sm:$0xff] }
 0x189   :  { %9007 = vst [vmem:[#allocation52_spill] sm:$0xff] %v7484_v11  ;;  %9008 = vst [vmem:[#allocation53_spill] sm:$0xff] %v7489_v12  ;;  %v7499_v14 = vld [vmem:[%s8998_s0 + $0x58] sm:$0xff]  ;;  %v7504_v15 = vld [vmem:[%s8998_s0 + $0x60] sm:$0xff] }
 0x18a   :  { %9009 = vst [vmem:[#allocation54_spill] sm:$0xff] %v7494_v13  ;;  %9010 = vst [vmem:[#allocation55_spill] sm:$0xff] %v7499_v14  ;;  %v7509_v16 = vld [vmem:[%s8998_s0 + $0x68] sm:$0xff]  ;;  %v7514_v17 = vld [vmem:[%s8998_s0 + $0x70] sm:$0xff] }
 0x18b   :  { %9011 = vst [vmem:[#allocation56_spill] sm:$0xff] %v7504_v15  ;;  %9012 = vst [vmem:[#allocation57_spill] sm:$0xff] %v7509_v16  ;;  %v7519_v18 = vld [vmem:[%s8998_s0 + $0x78] sm:$0xff]  ;;  %v7524_v19 = vld [vmem:[%s8998_s0 + $0x80] sm:$0xff] }
 0x18c   :  { %9013 = vst [vmem:[#allocation58_spill] sm:$0xff] %v7514_v17  ;;  %9014 = vst [vmem:[#allocation59_spill] sm:$0xff] %v7519_v18  ;;  %v7529_v20 = vld [vmem:[%s8998_s0 + $0x88] sm:$0xff]  ;;  %v7534_v21 = vld [vmem:[%s9016_s7] sm:$0xff]  ;;  %s9022_s0 = sld [smem:[#allocation67_spill]] }
 0x18d   :  { %9015 = vst [vmem:[#allocation60_spill] sm:$0xff] %v7524_v19  ;;  %v7539_v22 = vld [vmem:[%s9016_s7 + $0x8] sm:$0xff]  ;;  %v7544_v23 = vld [vmem:[%s9016_s7 + $0x10] sm:$0xff]  ;;  %v7549_v24 = vld [vmem:[%s9016_s7 + $0x18] sm:$0xff] }
 0x18e   :  { %v7554_v25 = vld [vmem:[%s9016_s7 + $0x20] sm:$0xff]  ;;  %v7559_v26 = vld [vmem:[%s9016_s7 + $0x28] sm:$0xff]  ;;  %v7564_v27 = vld [vmem:[%s9016_s7 + $0x30] sm:$0xff] }
 0x18f   :  { %v7569_v28 = vld [vmem:[%s9016_s7 + $0x38] sm:$0xff]  ;;  %v7574_v29 = vld [vmem:[%s9016_s7 + $0x40] sm:$0xff]  ;;  %v7579_v30 = vld [vmem:[%s9016_s7 + $0x48] sm:$0xff] }
 0x190   :  { %v7584_v31 = vld [vmem:[%s9016_s7 + $0x50] sm:$0xff]  ;;  %v7589_v32 = vld [vmem:[%s9016_s7 + $0x58] sm:$0xff]  ;;  %v7594_v33 = vld [vmem:[%s9016_s7 + $0x60] sm:$0xff] }
 0x191   :  { %v7599_v34 = vld [vmem:[%s9016_s7 + $0x68] sm:$0xff]  ;;  %v7604_v35 = vld [vmem:[%s9016_s7 + $0x70] sm:$0xff]  ;;  %v7609_v36 = vld [vmem:[%s9016_s7 + $0x78] sm:$0xff] }
 0x192   :  { %9017 = vst [vmem:[#allocation61_spill] sm:$0xff] %v7599_v34  ;;  %9018 = vst [vmem:[#allocation62_spill] sm:$0xff] %v7604_v35  ;;  %v7614_v37 = vld [vmem:[%s9016_s7 + $0x80] sm:$0xff]  ;;  %v7619_v38 = vld [vmem:[%s9016_s7 + $0x88] sm:$0xff]  ;;  %s7636_s7 = smov 0  }
 0x193   :  { %9019 = vst [vmem:[#allocation63_spill] sm:$0xff] %v7609_v36  ;;  %9020 = vst [vmem:[#allocation64_spill] sm:$0xff] %v7614_v37  ;;  %v369_v39 = vld [vmem:[%s9022_s0] sm:$0xff]   ;;  %v370_v40 = vld [vmem:[%s9022_s0 + $0x8] sm:$0xff]  }
 0x194   :  { %9021 = vst [vmem:[#allocation65_spill] sm:$0xff] %v7619_v38  ;;  %v371_v41 = vld [vmem:[%s9022_s0 + $0x10] sm:$0x3]  }
 0x195 LB: > { %s5704_s18 = smul.u32 48, %s7001_s7  ;;  %v381_v42 = vpack.c.bf16 %v6993_v40, %v6997_v39  ;;  %vm423_vm0 = vcmask 261120   ;;  %v382_v52 = vpack.c.bf16 %v6989_v41, %v6989_v41  ;;  %v409_v56 = vlaneseq  ;;  %s5513_s9 = sshll.u32 %s7001_s7, 2  ;;  %v9024_v2 = vld [vmem:[#allocation44_spill] sm:$0xff]  ;;  %v9025_v4 = vld [vmem:[#allocation45_spill] sm:$0xff]  ;;  %v9026_v5 = vld [vmem:[#allocation46_spill] sm:$0xff]  ;;  %s7001_s7 = sphi %s7636_s7, %s377_s7   ;;  %v6997_v39 = vphi %v369_v39, %v9052_v39   ;;  %v6993_v40 = vphi %v370_v40, %v9051_v40   ;;  %v6989_v41 = vphi %v371_v41, %v9050_v41  }
 0x196   : > { %s399_s25 = scalar_lea.vmem [#allocation7], %s5513_s9  ;;  %vm629_vm1 = vcmask 31744   ;;  %s7030_s26 = smov 120   ;;  %vm1477_vm2 = vcmask 1040384   ;;  %vm1263_vm3 = vcmask 146432   ;;  %vm1173_vm4 = vcmask 1041408  }
 0x197   : > { %5864 = vmatprep.mubr.msk.bf16.mxu1 %vm423_vm0, %v381_v42  ;;  %5856 = vmatprep.mubr.msk.bf16.mxu0 %vm423_vm0, %v381_v42  ;;  %s385_s13 = scalar_lea.vmem [#allocation5], %s5704_s18  ;;  %v7676_v57 = vshrl.u32 %v409_v56, 7  ;;  %v7686_v60 = vld [vmem:[%s399_s25] sm:$0x7]  ;;  %s7031_s19 = smov 124   ;;  %vm1185_vm5 = vcmask 1043456  }
 0x198   : > { %v6331_v43 = vld [vmem:[%s385_s13 + $0x10] sm:$0xff]   ;;  %v6332_v44 = vld [vmem:[%s385_s13] sm:$0xff]   ;;  %v6333_v46 = vld [vmem:[%s385_s13 + $0x18] sm:$0xff]   ;;  %s7032_s4 = smov 116   ;;  %s7033_s28 = smov 112   ;;  %vm1197_vm6 = vcmask 1045504  }
 0x199   : > { %6142 = vmatprep.subr.msk.bf16.mxu1 %vm423_vm0, %v6331_v43  ;;  %v499_v45 = vsel %vm423_vm0, %v6331_v43, 0  ;;  %6140 = vmatprep.subr.msk.bf16.mxu0 %vm423_vm0, %v6332_v44  ;;  %v431_v47 = vsel %vm423_vm0, %v6332_v44, 0  ;;  %v6334_v48 = vld [vmem:[%s385_s13 + $0x8] sm:$0xff]   ;;  %v502_v49 = vsel %vm423_vm0, %v6333_v46, 0  ;;  %v6335_v51 = vld [vmem:[%s385_s13 + $0x20] sm:$0xff]   ;;  %9023 = vst [vmem:[#allocation66_spill] sm:$0xff] %v7676_v57 }
 0x19a   : > { %5861 = vmatpush3.bf16.xpose.msra.mxu1 %v499_v45  ;;  %5853 = vmatpush3.bf16.xpose.msra.mxu0 %v431_v47  ;;  %v434_v50 = vsel %vm423_vm0, %v6334_v48, 0  ;;  %v567_v53 = vsel %vm423_vm0, %v6335_v51, 0  ;;  %v6336_v54 = vld [vmem:[%s385_s13 + $0x28] sm:$0xff]   ;;  %v7679_v58 = vsub.s32 0, %v7676_v57  ;;  %v7682_v59 = vsub.s32 1, %v7676_v57  ;;  %s7034_s21 = smov 108  }
 0x19b   : > { %6143 = vmatprep.subr.msk.bf16.mxu1 %vm423_vm0, %v6333_v46  ;;  %6141 = vmatprep.subr.msk.bf16.mxu0 %vm423_vm0, %v6334_v48  ;;  %v570_v55 = vsel %vm423_vm0, %v6336_v54, 0  ;;  %s7035_s16 = smov 104   ;;  %s7036_s2 = smov 100   ;;  %v9027_v6 = vld [vmem:[#allocation47_spill] sm:$0xff]  ;;  %v9028_v7 = vld [vmem:[#allocation48_spill] sm:$0xff]  ;;  %v9029_v8 = vld [vmem:[#allocation49_spill] sm:$0xff] }
 0x19c   : > { %v412_v61 = vrot.slane %v7686_v60, %v7679_v58  ;;  %v487_v62 = vrot.slane %v7686_v60, %v7682_v59  ;;  %v9030_v12 = vld [vmem:[#allocation53_spill] sm:$0xff]  ;;  %v9031_v13 = vld [vmem:[#allocation54_spill] sm:$0xff]  ;;  %v9032_v10 = vld [vmem:[#allocation51_spill] sm:$0xff]  ;;  %vm1531_vm7 = vcmask 1046528   ;;  %vm1667_vm8 = vcmask 1044480   ;;  %s7037_s10 = smov 4  }
 0x19d   : > { %v9033_v9 = vld [vmem:[#allocation50_spill] sm:$0xff]  ;;  %v9034_v11 = vld [vmem:[#allocation52_spill] sm:$0xff]  ;;  %v9035_v14 = vld [vmem:[#allocation55_spill] sm:$0xff]  ;;  %vm1801_vm9 = vcmask 1042432   ;;  %s7038_s3 = smov 8   ;;  %s8115_s15 = sshll.u32 %s7001_s7, 4 }
 0x19e   : > { %v9036_v15 = vld [vmem:[#allocation56_spill] sm:$0xff]  ;;  %v9037_v16 = vld [vmem:[#allocation57_spill] sm:$0xff]  ;;  %v9038_v17 = vld [vmem:[#allocation58_spill] sm:$0xff]  ;;  %s402_s6 = scalar_lea.vmem [#allocation8], %s8115_s15  ;;  %s7039_s27 = smov 12   ;;  %vm2088_vm10 = vcmask 64512  }
 0x19f   : > { %v9039_v18 = vld [vmem:[#allocation59_spill] sm:$0xff]  ;;  %v9040_v19 = vld [vmem:[#allocation60_spill] sm:$0xff]  ;;  %s7040_s11 = smov 16   ;;  %s7041_s22 = smov 20   ;;  %vm2092_vm11 = vcmask 97280   ;;  %vm2096_vm12 = vcmask 130048  }
 0x1a0   : > { %s7042_s8 = smov 24   ;;  %s7043_s12 = smov 28   ;;  %vm2100_vm13 = vcmask 162816   ;;  %vm2104_vm14 = vcmask 195584   ;;  %vm8981_vm15 = vcmask 228352  }
 0x1a1   : > { %s407_s23 = scalar_lea.vmem [#allocation10], %s7001_s7  ;;  %s8168_s30 = scalar_lea.vmem [#allocation11], %s5704_s18 }
 0x1a2   : > { %5863 = vmatpush3.bf16.xpose.msra.mxu1 %v502_v49  ;;  %5855 = vmatpush3.bf16.xpose.msra.mxu0 %v434_v50  ;;  %s2193_s14 = scalar_lea.vmem [#allocation23], %s7001_s7  ;;  %s2195_s1 = scalar_lea.vmem [#allocation25], %s7001_s7 }
 0x1a3   : > { %6144 = vmatprep.subr.msk.bf16.mxu0 %vm423_vm0, %v6335_v51  ;;  %s2272_s29 = scalar_lea.vmem [#allocation13], %s5513_s9  ;;  %s2275_s0 = scalar_lea.vmem [#allocation14], %s8115_s15 }
 0x1a4   : > { %s2280_s24 = scalar_lea.vmem [#allocation16], %s7001_s7  ;;  %s5708_s17 = sshll.u32 %s7001_s7, 8 }
 0x1a5   : > { %s8616_s20 = scalar_lea.vmem [#allocation17], %s5708_s17  ;;  %s3955_s5 = scalar_lea.vmem [#allocation26], %s7001_s7 }
 0x1a6   : > { %s3957_s18 = scalar_lea.vmem [#allocation28], %s7001_s7  ;;  %s8697_s13 = scalar_lea.vmem [#allocation20], %s5708_s17 }
 0x1a7   : > { %s4054_s9 = scalar_lea.vmem [#allocation19], %s8115_s15  ;;  %s4827_s25 = scalar_lea.vmem [#allocation22], %s7001_s7 }
 0x1a9   : > { %5865 = vmatmul.mubr.msk.bf16.vlgmr.msra.gmra.mrb[0].mxu1 %vm423_vm0, %v382_v52  ;;  %5857 = vmatmul.mubr.msk.bf16.vlgmr.msra.gmra.mrb[0].mxu0 %vm423_vm0, %v382_v52 }
 0x1aa   : > { %5869 = vmatpush3.bf16.xpose.msra.mxu0 %v567_v53  ;;  %5872 = vmatprep.mubr.msk.bf16.mxu0 %vm423_vm0, %v381_v42 }
 0x1ab   : > { %6145 = vmatprep.subr.msk.bf16.mxu0 %vm423_vm0, %v6336_v54 }
 0x1b2   : > { %5871 = vmatpush3.bf16.xpose.msra.mxu0 %v570_v55 }
 0x1b9   : > { %5873 = vmatmul.mubr.msk.bf16.vlgmr.msra.gmra.mrb[4].mxu0 %vm423_vm0, %v382_v52 }
 0x27c   : > { %v5866_v63 = vpop.f32.mrb[0].mxu1  ;;  %v5858_v1 = vpop.f32.mrb[0].mxu0 }
 0x27d   : > { %v538_v0 = vpop.f32.mrb[1].mxu1  ;;  %v470_v43 = vpop.f32.mrb[1].mxu0  ;;  %v547_v50 = vadd.f32 %v5866_v63, %v487_v62  ;;  %v479_v53 = vadd.f32 %v5858_v1, %v412_v61  ;;  %v7723_v63 = vsub.s32 2, %v7676_v57 }
 0x27e   : > { %v5867_v42 = vpop.f32.mrb[2].mxu1  ;;  %v471_v44 = vadd.f32 %v470_v43, %v412_v61  ;;  %v5859_v46 = vpop.f32.mrb[2].mxu0  ;;  %v539_v47 = vadd.f32 %v538_v0, %v487_v62 }
 0x27f   : > { %v541_v45 = vpop.f32.mrb[3].mxu1  ;;  %v473_v49 = vpop.f32.mrb[3].mxu0  ;;  %v626_v42 = vpack.c.bf16 %v547_v50, %v547_v50  ;;  %v622_v0 = vmul.f32 0.5, %v479_v53 }
 0x280   : > { %v542_v48 = vadd.f32 %v541_v45, %v487_v62  ;;  %v620_v51 = vmul.f32 0.5, %v471_v44  ;;  %v474_v52 = vadd.f32 %v473_v49, %v412_v61  ;;  %v555_v45 = vrot.slane %v7686_v60, %v7723_v63 }
 0x281   : > { %v624_v61 = vpack.c.bf16 %v622_v0, %v622_v0  ;;  %v640_v62 = vsel %vm629_vm1, %v626_v42, 0 }
 0x282   : > { %v625_v54 = vpack.c.bf16 %v542_v48, %v539_v47  ;;  %v621_v55 = vmul.f32 0.5, %v474_v52 }
 0x284   : > { %766 = vrot.lane.b32.xlu1 %v625_v54, %s7030_s26  ;;  %698 = vrot.lane.b32.xlu0 %v625_v54, %s7031_s19  ;;  %v637_v56 = vsel %vm629_vm1, %v625_v54, 0  ;;  %v623_v43 = vpack.c.bf16 %v621_v55, %v620_v51 }
 0x285   : > { %6146 = vmatprep.subr.msk.bf16.mxu1 %vm629_vm1, %v625_v54 }
 0x286   : > { %5877 = vmatpush3.bf16.xpose.msra.mxu1 %v637_v56  ;;  %5880 = vmatprep.mubr.msk.bf16.mxu1 %vm629_vm1, %v623_v43 }
 0x287   : > { %6147 = vmatprep.subr.msk.bf16.mxu1 %vm629_vm1, %v626_v42 }
 0x288   : > { %700 = vrot.lane.b32.xlu0 %v626_v42, %s7031_s19  ;;  %692 = vrot.lane.b32.xlu1 %v623_v43, %s7031_s19 }
 0x28c   : > { %834 = vrot.lane.b32.xlu0 %v625_v54, %s7032_s4  ;;  %694 = vrot.lane.b32.xlu1 %v624_v61, %s7031_s19  ;;  %v5874_v1 = vpop.f32.mrb[4].mxu0 }
 0x28d   : > { %v606_v44 = vpop.f32.mrb[5].mxu0  ;;  %v615_v47 = vadd.f32 %v5874_v1, %v555_v45 }
 0x28e   : > { %5879 = vmatpush3.bf16.xpose.msra.mxu1 %v640_v62  ;;  %v5875_v46 = vpop.f32.mrb[6].mxu0  ;;  %v607_v48 = vadd.f32 %v606_v44, %v555_v45 }
 0x28f   : > { %v609_v49 = vpop.f32.mrb[7].mxu0  ;;  %v7731_v50 = vpack.c.bf16 %v615_v47, %v615_v47 }
 0x290   : > { %768 = vrot.lane.b32.xlu0 %v626_v42, %s7030_s26  ;;  %836 = vrot.lane.b32.xlu1 %v626_v42, %s7032_s4  ;;  %v610_v51 = vadd.f32 %v609_v49, %v555_v45 }
 0x292   : > { %v7733_v52 = vpack.c.bf16 %v610_v51, %v607_v48 }
 0x294   : > { %764 = vrot.lane.b32.xlu0 %v624_v61, %s7030_s26  ;;  %902 = vrot.lane.b32.xlu1 %v625_v54, %s7033_s28 }
 0x295   : > { %5881 = vmatmul.mubr.msk.bf16.vlgmr.msra.gmra.mrb[4].mxu1 %vm629_vm1, %v624_v61 }
 0x298   : > { %762 = vrot.lane.b32.xlu0 %v623_v43, %s7030_s26  ;;  %830 = vrot.lane.b32.xlu1 %v623_v43, %s7032_s4 }
 0x29c   : > { %970 = vrot.lane.b32.xlu0 %v625_v54, %s7034_s21  ;;  %832 = vrot.lane.b32.xlu1 %v624_v61, %s7032_s4 }
 0x2a0   : > { %904 = vrot.lane.b32.xlu0 %v626_v42, %s7033_s28  ;;  %972 = vrot.lane.b32.xlu1 %v626_v42, %s7034_s21 }
 0x2a4   : > { %900 = vrot.lane.b32.xlu0 %v624_v61, %s7033_s28  ;;  %1038 = vrot.lane.b32.xlu1 %v625_v54, %s7035_s16 }
 0x2a8   : > { %898 = vrot.lane.b32.xlu0 %v623_v43, %s7033_s28  ;;  %966 = vrot.lane.b32.xlu1 %v623_v43, %s7034_s21 }
 0x2ac   : > { %1106 = vrot.lane.b32.xlu0 %v625_v54, %s7036_s2  ;;  %968 = vrot.lane.b32.xlu1 %v624_v61, %s7034_s21 }
 0x2b0   : > { %1040 = vrot.lane.b32.xlu0 %v626_v42, %s7035_s16  ;;  %1108 = vrot.lane.b32.xlu1 %v626_v42, %s7036_s2 }
 0x2b4   : > { %1034 = vrot.lane.b32.xlu0 %v623_v43, %s7035_s16  ;;  %1036 = vrot.lane.b32.xlu1 %v624_v61, %s7035_s16 }
 0x2b8   : > { %1102 = vrot.lane.b32.xlu0 %v623_v43, %s7036_s2  ;;  %1104 = vrot.lane.b32.xlu1 %v624_v61, %s7036_s2 }
 0x2bc   : > { %1673 = vrot.lane.b32.xlu1 %v7731_v50, %s7032_s4  ;;  %1539 = vrot.lane.b32.xlu0 %v7731_v50, %s7031_s19 }
 0x2c0   : > { %1537 = vrot.lane.b32.xlu1 %v7733_v52, %s7031_s19  ;;  %1606 = vrot.lane.b32.xlu0 %v7731_v50, %s7030_s26 }
 0x2c4   : > { %1604 = vrot.lane.b32.xlu1 %v7733_v52, %s7030_s26  ;;  %1738 = vrot.lane.b32.xlu0 %v7733_v52, %s7033_s28 }
 0x2c8   : > { %1671 = vrot.lane.b32.xlu1 %v7733_v52, %s7032_s4 }
 0x2cc   : > { %1805 = vrot.lane.b32.xlu1 %v7733_v52, %s7034_s21 }
 0x2f6   : > { %v767_v60 = vpop.permute.xlu1 %766  ;;  %v699_v53 = vpop.permute.xlu0 %698 }
 0x2f7   : > { %6148 = vmatprep.subr.msk.bf16.mxu0 %vm629_vm1, %v699_v53  ;;  %6150 = vmatprep.subr.msk.bf16.mxu1 %vm629_vm1, %v767_v60  ;;  %v709_v54 = vsel %vm629_vm1, %v699_v53, 0  ;;  %v777_v55 = vsel %vm629_vm1, %v767_v60, 0 }
 0x2f8   : > { %5885 = vmatpush3.bf16.xpose.msra.mxu0 %v709_v54  ;;  %5893 = vmatpush3.bf16.xpose.msra.mxu1 %v777_v55 }
 0x2fa   : > { %v701_v56 = vpop.permute.xlu0 %700  ;;  %v693_v42 = vpop.permute.xlu1 %692 }
 0x2fb   : > { %6149 = vmatprep.subr.msk.bf16.mxu0 %vm629_vm1, %v701_v56  ;;  %5888 = vmatprep.mubr.msk.bf16.mxu0 %vm629_vm1, %v693_v42  ;;  %v712_v61 = vsel %vm629_vm1, %v701_v56, 0 }
 0x2fe   : > { %v835_v43 = vpop.permute.xlu0 %834  ;;  %v695_v0 = vpop.permute.xlu1 %694 }
 0x2ff   : > { %v845_v47 = vsel %vm629_vm1, %v835_v43, 0 }
 0x300   : > { %5887 = vmatpush3.bf16.xpose.msra.mxu0 %v712_v61 }
 0x301   : > { %6152 = vmatprep.subr.msk.bf16.mxu0 %vm629_vm1, %v835_v43 }
 0x302   : > { %v769_v62 = vpop.permute.xlu0 %768  ;;  %v837_v1 = vpop.permute.xlu1 %836 }
 0x303   : > { %6151 = vmatprep.subr.msk.bf16.mxu1 %vm629_vm1, %v769_v62  ;;  %v780_v44 = vsel %vm629_vm1, %v769_v62, 0  ;;  %v848_v54 = vsel %vm629_vm1, %v837_v1, 0 }
 0x304   : > { %5895 = vmatpush3.bf16.xpose.msra.mxu1 %v780_v44 }
 0x306   : > { %v765_v45 = vpop.permute.xlu0 %764  ;;  %v903_v46 = vpop.permute.xlu1 %902 }
 0x307   : > { %5889 = vmatmul.mubr.msk.bf16.vlgmr.msra.gmra.mrb[8].mxu0 %vm629_vm1, %v695_v0  ;;  %6154 = vmatprep.subr.msk.bf16.mxu1 %vm629_vm1, %v903_v46  ;;  %v913_v51 = vsel %vm629_vm1, %v903_v46, 0 }
 0x308   : > { %5901 = vmatpush3.bf16.xpose.msra.mxu0 %v845_v47 }
 0x309   : > { %6153 = vmatprep.subr.msk.bf16.mxu0 %vm629_vm1, %v837_v1 }
 0x30a   : > { %v763_v48 = vpop.permute.xlu0 %762  ;;  %v831_v49 = vpop.permute.xlu1 %830 }
 0x30b   : > { %5896 = vmatprep.mubr.msk.bf16.mxu1 %vm629_vm1, %v763_v48  ;;  %5904 = vmatprep.mubr.msk.bf16.mxu0 %vm629_vm1, %v831_v49 }
 0x30c   : > { %5897 = vmatmul.mubr.msk.bf16.vlgmr.msra.gmra.mrb[8].mxu1 %vm629_vm1, %v765_v45 }
 0x30d   : > { %5909 = vmatpush3.bf16.xpose.msra.mxu1 %v913_v51 }
 0x30e   : > { %v971_v60 = vpop.permute.xlu0 %970  ;;  %v833_v53 = vpop.permute.xlu1 %832 }
 0x30f   : > { %v981_v61 = vsel %vm629_vm1, %v971_v60, 0 }
 0x310   : > { %5903 = vmatpush3.bf16.xpose.msra.mxu0 %v848_v54 }
 0x311   : > { %6156 = vmatprep.subr.msk.bf16.mxu0 %vm629_vm1, %v971_v60 }
 0x312   : > { %v905_v55 = vpop.permute.xlu0 %904  ;;  %v973_v56 = vpop.permute.xlu1 %972 }
 0x313   : > { %6155 = vmatprep.subr.msk.bf16.mxu1 %vm629_vm1, %v905_v55  ;;  %v916_v42 = vsel %vm629_vm1, %v905_v55, 0  ;;  %v984_v47 = vsel %vm629_vm1, %v973_v56, 0 }
 0x315   : > { %5911 = vmatpush3.bf16.xpose.msra.mxu1 %v916_v42  ;;  %v1479_v42 = vsel %vm1477_vm2, %v7731_v50, 0 }
 0x316   : > { %v901_v43 = vpop.permute.xlu0 %900  ;;  %v1039_v0 = vpop.permute.xlu1 %1038 }
 0x317   : > { %5905 = vmatmul.mubr.msk.bf16.vlgmr.msra.gmra.mrb[12].mxu0 %vm629_vm1, %v833_v53  ;;  %6158 = vmatprep.subr.msk.bf16.mxu1 %vm629_vm1, %v1039_v0  ;;  %v1049_v44 = vsel %vm629_vm1, %v1039_v0, 0 }
 0x318   : > { %5917 = vmatpush3.bf16.xpose.msra.mxu0 %v981_v61 }
 0x319   : > { %6157 = vmatprep.subr.msk.bf16.mxu0 %vm629_vm1, %v973_v56 }
 0x31a   : > { %v899_v62 = vpop.permute.xlu0 %898  ;;  %v967_v1 = vpop.permute.xlu1 %966 }
 0x31b   : > { %5912 = vmatprep.mubr.msk.bf16.mxu1 %vm629_vm1, %v899_v62  ;;  %5920 = vmatprep.mubr.msk.bf16.mxu0 %vm629_vm1, %v967_v1 }
 0x31c   : > { %5913 = vmatmul.mubr.msk.bf16.vlgmr.msra.gmra.mrb[12].mxu1 %vm629_vm1, %v901_v43 }
 0x31d   : > { %5925 = vmatpush3.bf16.xpose.msra.mxu1 %v1049_v44 }
 0x31e   : > { %v1107_v45 = vpop.permute.xlu0 %1106  ;;  %v969_v46 = vpop.permute.xlu1 %968 }
 0x31f   : > { %v1117_v54 = vsel %vm629_vm1, %v1107_v45, 0 }
 0x320   : > { %5919 = vmatpush3.bf16.xpose.msra.mxu0 %v984_v47 }
 0x321   : > { %6160 = vmatprep.subr.msk.bf16.mxu0 %vm629_vm1, %v1107_v45 }
 0x322   : > { %v1041_v48 = vpop.permute.xlu0 %1040  ;;  %v1109_v49 = vpop.permute.xlu1 %1108 }
 0x323   : > { %6159 = vmatprep.subr.msk.bf16.mxu1 %vm629_vm1, %v1041_v48  ;;  %v1052_v51 = vsel %vm629_vm1, %v1041_v48, 0  ;;  %v1120_v61 = vsel %vm629_vm1, %v1109_v49, 0 }
 0x325   : > { %5927 = vmatpush3.bf16.xpose.msra.mxu1 %v1052_v51 }
 0x326   : > { %v1035_v60 = vpop.permute.xlu0 %1034  ;;  %v1037_v53 = vpop.permute.xlu1 %1036  ;;  %5940 = vmatprep.subr.bf16.mxu1 %v7733_v52 }
 0x327   : > { %5921 = vmatmul.mubr.msk.bf16.vlgmr.msra.gmra.mrb[16].mxu0 %vm629_vm1, %v969_v46  ;;  %5928 = vmatprep.mubr.msk.bf16.mxu1 %vm629_vm1, %v1035_v60 }
 0x328   : > { %5933 = vmatpush3.bf16.xpose.msra.mxu0 %v1117_v54 }
 0x329   : > { %6161 = vmatprep.subr.msk.bf16.mxu0 %vm629_vm1, %v1109_v49 }
 0x32a   : > { %v1103_v55 = vpop.permute.xlu0 %1102  ;;  %v1105_v56 = vpop.permute.xlu1 %1104 }
 0x32b   : > { %5936 = vmatprep.mubr.msk.bf16.mxu0 %vm629_vm1, %v1103_v55 }
 0x32c   : > { %5929 = vmatmul.mubr.msk.bf16.vlgmr.msra.gmra.mrb[16].mxu1 %vm629_vm1, %v1037_v53 }
 0x32d   : > { %5941 = vmatpush3.bf16.msra.mxu1 %v7733_v52 }
 0x32e   : > { %6162 = vmatprep.subr.msk.bf16.mxu1 %vm1477_vm2, %v7731_v50  ;;  %v7797_v43 = vpop.permute.xlu1 %1673  ;;  %v7799_v0 = vpop.permute.xlu0 %1539 }
 0x330   : > { %5935 = vmatpush3.bf16.xpose.msra.mxu0 %v1120_v61 }
 0x331   : > { %5943 = vmatpush3.bf16.msra.mxu1 %v1479_v42 }
 0x332   : > { %v7802_v62 = vpop.permute.xlu1 %1537  ;;  %v7804_v1 = vpop.permute.xlu0 %1606 }
 0x333   : > { %5948 = vmatprep.subr.bf16.mxu1 %v7802_v62 }
 0x336   : > { %v1739_v44 = vpop.permute.xlu0 %1738 }
 0x337   : > { %5937 = vmatmul.mubr.msk.bf16.vlgmr.msra.gmra.mrb[20].mxu0 %vm629_vm1, %v1105_v56  ;;  %5972 = vmatprep.subr.bf16.mxu0 %v1739_v44 }
 0x338   : > { %5973 = vmatpush3.bf16.msra.mxu0 %v1739_v44 }
 0x368   : > { %v5882_v45 = vpop.f32.mrb[4].mxu1 }
 0x369   : > { %v676_v46 = vpop.f32.mrb[5].mxu1 }
 0x36a   : > { %v7809_v47 = vadd.f32 %v676_v46, %v9024_v2  ;;  %v5883_v48 = vpop.f32.mrb[6].mxu1 }
 0x36b   : > { %v679_v49 = vpop.f32.mrb[7].mxu1 }
 0x36c   : > { %v7812_v51 = vadd.f32 %v679_v49, %v9025_v4  ;;  %v1264_v60 = vsel %vm1263_vm3, %v7809_v47, -inf }
 0x36d   : > { %1265 = vmax.xlane.f32.xlu0 %v1264_v60 }
 0x36e   : > { %v1267_v53 = vsel %vm1263_vm3, %v7812_v51, -inf }
 0x36f   : > { %1268 = vmax.xlane.f32.xlu1 %v1267_v53 }
 0x3da   : > { %v5890_v54 = vpop.f32.mrb[8].mxu0 }
 0x3db   : > { %v748_v55 = vpop.f32.mrb[9].mxu0  ;;  %v1177_v44 = vrot.slane %v5890_v54, 6 }
 0x3dc   : > { %v1174_v56 = vrot.slane %v748_v55, 6  ;;  %v5891_v42 = vpop.f32.mrb[10].mxu0 }
 0x3dd   : > { %v751_v61 = vpop.f32.mrb[11].mxu0 }
 0x3de   : > { %v1175_v46 = vrot.slane %v751_v61, 6  ;;  %v1239_v48 = vsel %vm1173_vm4, %v5882_v45, %v1174_v56 }
 0x3df   : > { %v5898_v49 = vpop.f32.mrb[8].mxu1  ;;  %v7820_v2 = vadd.f32 %v1239_v48, %v9026_v5 }
 0x3e0   : > { %v816_v4 = vpop.f32.mrb[9].mxu1  ;;  %v1176_v60 = vsel %vm1173_vm4, %v1174_v56, %v1175_v46  ;;  %v1178_v57 = vsel %vm1173_vm4, %v1175_v46, %v1177_v44  ;;  %v1189_v42 = vrot.slane %v5898_v49, 4 }
 0x3e1   : > { %v1186_v53 = vrot.slane %v816_v4, 4  ;;  %v5899_v38 = vpop.f32.mrb[10].mxu1  ;;  %v1270_v55 = vsel %vm1263_vm3, %v7820_v2, -inf  ;;  %v7827_v54 = vadd.f32 %v1176_v60, %v9027_v6 }
 0x3e2   : > { %1271 = vmax.xlane.f32.xlu0 %v1270_v55  ;;  %v819_v45 = vpop.f32.mrb[11].mxu1  ;;  %v7844_v55 = vpop.permute.xlu1 %1604 }
 0x3e3   : > { %v1187_v61 = vrot.slane %v819_v45, 4  ;;  %v1240_v48 = vsel %vm1185_vm5, %v1178_v57, %v1186_v53  ;;  %v1273_v56 = vsel %vm1263_vm3, %v7827_v54, -inf }
 0x3e4   : > { %v7831_v5 = vadd.f32 %v1240_v48, %v9028_v7 }
 0x3e5   : > { %v1188_v4 = vsel %vm1185_vm5, %v1186_v53, %v1187_v61  ;;  %v1190_v38 = vsel %vm1185_vm5, %v1187_v61, %v1189_v42 }
 0x3e6   : > { %1274 = vmax.xlane.f32.xlu0 %v1273_v56  ;;  %v1276_v44 = vsel %vm1263_vm3, %v7831_v5, -inf  ;;  %v7840_v46 = vadd.f32 %v1188_v4, %v9029_v8  ;;  %v7852_v37 = vpop.permute.xlu1 %1671 }
 0x3e7   : > { %1277 = vmax.xlane.f32.xlu1 %v1276_v44 }
 0x3e8   : > { %v1279_v57 = vsel %vm1263_vm3, %v7840_v46, -inf }
 0x3ea   : > { %v5906_v49 = vpop.f32.mrb[12].mxu0  ;;  %1280 = vmax.xlane.f32.xlu0 %v1279_v57 }
 0x3eb   : > { %v884_v60 = vpop.f32.mrb[13].mxu0  ;;  %v1201_v61 = vrot.slane %v5906_v49, 2 }
 0x3ec   : > { %v1198_v53 = vrot.slane %v884_v60, 2  ;;  %v5907_v45 = vpop.f32.mrb[14].mxu0 }
 0x3ed   : > { %v887_v42 = vpop.f32.mrb[15].mxu0 }
 0x3ee   : > { %v1199_v48 = vrot.slane %v887_v42, 2  ;;  %v1241_v56 = vsel %vm1197_vm6, %v1190_v38, %v1198_v53 }
 0x3ef   : > { %v5914_v6 = vpop.f32.mrb[12].mxu1  ;;  %v7865_v45 = vadd.f32 %v1241_v56, %v9033_v9 }
 0x3f0   : > { %v952_v4 = vpop.f32.mrb[13].mxu1  ;;  %v1200_v44 = vsel %vm1197_vm6, %v1198_v53, %v1199_v48  ;;  %v1202_v7 = vsel %vm1197_vm6, %v1199_v48, %v1201_v61  ;;  %v7869_v61 = vpop.permute.xlu1 %1805 }
 0x3f1   : > { %v7850_v8 = vadd.f32 %v952_v4, %v9030_v12  ;;  %v5915_v57 = vpop.f32.mrb[14].mxu1  ;;  %v7860_v38 = vadd.f32 %v1200_v44, %v9032_v10  ;;  %v7874_v48 = vadd.f32 %v1202_v7, %v9034_v11 }
 0x3f2   : > { %v955_v36 = vpop.f32.mrb[15].mxu1 }
 0x3f3   : > { %v7855_v60 = vadd.f32 %v955_v36, %v9031_v13  ;;  %v1291_v49 = vsel %vm1263_vm3, %v7850_v8, -inf  ;;  %v1285_v42 = vsel %vm1263_vm3, %v7860_v38, -inf  ;;  %v1282_v36 = vsel %vm1263_vm3, %v7865_v45, -inf }
 0x3f4   : > { %1292 = vmax.xlane.f32.xlu0 %v1291_v49 }
 0x3f5   : > { %v1294_v53 = vsel %vm1263_vm3, %v7855_v60, -inf }
 0x3f6   : > { %1295 = vmax.xlane.f32.xlu1 %v1294_v53 }
 0x3f8   : > { %1286 = vmax.xlane.f32.xlu0 %v1285_v42  ;;  %v1288_v42 = vsel %vm1263_vm3, %v7874_v48, -inf }
 0x3fa   : > { %v1266_v4 = vpop.xlane.xlu0 %1265  ;;  %v5922_v44 = vpop.f32.mrb[16].mxu0  ;;  %1283 = vmax.xlane.f32.xlu1 %v1282_v36 }
 0x3fb   : > { %v1318_v57 = vsub.f32 %v7809_v47, %v1266_v4  ;;  %v1020_v56 = vpop.f32.mrb[17].mxu0  ;;  %v1212_v35 = vrot.slane %v5922_v44, 6 }
 0x3fc   : > { %v1209_v49 = vrot.slane %v1020_v56, 6  ;;  %v1269_v53 = vpop.xlane.xlu1 %1268  ;;  %v5923_v9 = vpop.f32.mrb[18].mxu0 }
 0x3fd   : > { %v1336_v10 = vmul.f32 1.442695, %v1318_v57  ;;  %v1319_v12 = vsub.f32 %v7812_v51, %v1269_v53  ;;  %v1023_v13 = vpop.f32.mrb[19].mxu0 }
 0x3fe   : > { %v1210_v34 = vrot.slane %v1023_v13, 6  ;;  %1289 = vmax.xlane.f32.xlu1 %v1288_v42  ;;  %v1242_v7 = vsel %vm1173_vm4, %v5914_v6, %v1209_v49 }
 0x3ff   : > { %6347 = vpow2.f32 %v1336_v10  ;;  %v1338_v36 = vmul.f32 1.442695, %v1319_v12  ;;  %v5930_v11 = vpop.f32.mrb[16].mxu1  ;;  %v7882_v47 = vadd.f32 %v1242_v7, %v9035_v14 }
 0x400   : > { %v1088_v4 = vpop.f32.mrb[17].mxu1  ;;  %v1211_v9 = vsel %vm1173_vm4, %v1209_v49, %v1210_v34  ;;  %v1213_v51 = vsel %vm1173_vm4, %v1210_v34, %v1212_v35  ;;  %v1223_v10 = vrot.slane %v5930_v11, 4 }
 0x401   : > { %6349 = vpow2.f32 %v1338_v36  ;;  %v1220_v57 = vrot.slane %v1088_v4, 4  ;;  %v5931_v56 = vpop.f32.mrb[18].mxu1  ;;  %v1297_v13 = vsel %vm1263_vm3, %v7882_v47, -inf  ;;  %v7889_v44 = vadd.f32 %v1211_v9, %v9036_v15 }
 0x402   : > { %v1091_v6 = vpop.f32.mrb[19].mxu1  ;;  %1298 = vmax.xlane.f32.xlu0 %v1297_v13 }
 0x403   : > { %v1221_v12 = vrot.slane %v1091_v6, 4  ;;  %v1300_v53 = vsel %vm1263_vm3, %v7889_v44, -inf  ;;  %v1243_v49 = vsel %vm1185_vm5, %v1213_v51, %v1220_v57 }
 0x404   : > { %1301 = vmax.xlane.f32.xlu1 %v1300_v53  ;;  %v7895_v34 = vadd.f32 %v1243_v49, %v9037_v16 }
 0x405   : > { %v1222_v35 = vsel %vm1185_vm5, %v1220_v57, %v1221_v12  ;;  %v1224_v42 = vsel %vm1185_vm5, %v1221_v12, %v1223_v10 }
 0x406   : > { %v1303_v7 = vsel %vm1263_vm3, %v7895_v34, -inf  ;;  %v7902_v36 = vadd.f32 %v1222_v35, %v9038_v17 }
 0x407   : > { %1304 = vmax.xlane.f32.xlu0 %v1303_v7 }
 0x408   : > { %v1306_v11 = vsel %vm1263_vm3, %v7902_v36, -inf }
 0x409   : > { %v7906_v4 = vpop.eup %6347  ;;  %1307 = vmax.xlane.f32.xlu1 %v1306_v11 }
 0x40a   : > { %v5938_v9 = vpop.f32.mrb[20].mxu0  ;;  %v1372_v10 = vsel %vm1263_vm3, %v7906_v4, 0.0 }
 0x40b   : > { %v7908_v51 = vpop.eup %6349  ;;  %v1156_v56 = vpop.f32.mrb[21].mxu0  ;;  %v1234_v53 = vrot.slane %v5938_v9, 2 }
 0x40c   : > { %v1231_v57 = vrot.slane %v1156_v56, 2  ;;  %v5939_v13 = vpop.f32.mrb[22].mxu0  ;;  %v1375_v6 = vsel %vm1263_vm3, %v7908_v51, 0.0 }
 0x40d   : > { %1376 = vadd.xlane.f32.xlu0 %v1375_v6  ;;  %1373 = vadd.xlane.f32.xlu1 %v1372_v10  ;;  %v1159_v12 = vpop.f32.mrb[23].mxu0 }
 0x40e   : > { %v1232_v49 = vrot.slane %v1159_v12, 2  ;;  %v1244_v35 = vsel %vm1197_vm6, %v1224_v42, %v1231_v57 }
 0x40f   : > { %v7916_v7 = vadd.f32 %v1244_v35, %v9039_v18 }
 0x410   : > { %v1233_v11 = vsel %vm1197_vm6, %v1231_v57, %v1232_v49  ;;  %v1235_v56 = vsel %vm1197_vm6, %v1232_v49, %v1234_v53 }
 0x411   : > { %v1309_v13 = vsel %vm1263_vm3, %v7916_v7, -inf  ;;  %v7923_v14 = vadd.f32 %v1233_v11, %v9040_v19  ;;  %v7926_v6 = vadd.f32 %v1235_v56, %v7529_v20 }
 0x412   : > { %1310 = vmax.xlane.f32.xlu0 %v1309_v13 }
 0x413   : > { %v1312_v42 = vsel %vm1263_vm3, %v7923_v14, -inf  ;;  %v1315_v9 = vsel %vm1263_vm3, %v7926_v6, -inf }
 0x414   : > { %1313 = vmax.xlane.f32.xlu1 %v1312_v42 }
 0x416   : > { %1316 = vmax.xlane.f32.xlu0 %v1315_v9 }
 0x425   : > { %1807 = vrot.lane.b32.xlu1 %v7731_v50, %s7034_s21 }
 0x42c   : > { %1740 = vrot.lane.b32.xlu0 %v7731_v50, %s7033_s28 }
 0x46f   : > { %v1272_v57 = vpop.xlane.xlu0 %1271 }
 0x470   : > { %v1320_v10 = vsub.f32 %v7820_v2, %v1272_v57 }
 0x472   : > { %v1340_v12 = vmul.f32 1.442695, %v1320_v10 }
 0x473   : > { %v1275_v53 = vpop.xlane.xlu0 %1274 }
 0x474   : > { %6351 = vpow2.f32 %v1340_v12  ;;  %v1321_v49 = vsub.f32 %v7827_v54, %v1275_v53  ;;  %v1278_v35 = vpop.xlane.xlu1 %1277 }
 0x475   : > { %v1322_v11 = vsub.f32 %v7831_v5, %v1278_v35 }
 0x476   : > { %v1342_v56 = vmul.f32 1.442695, %v1321_v49 }
 0x477   : > { %v1344_v13 = vmul.f32 1.442695, %v1322_v11  ;;  %v1281_v42 = vpop.xlane.xlu0 %1280 }
 0x478   : > { %6353 = vpow2.f32 %v1342_v56  ;;  %v1323_v9 = vsub.f32 %v7840_v46, %v1281_v42 }
 0x479   : > { %6355 = vpow2.f32 %v1344_v13 }
 0x47a   : > { %v1346_v15 = vmul.f32 1.442695, %v1323_v9 }
 0x47c   : > { %6357 = vpow2.f32 %v1346_v15 }
 0x47e   : > { %v7940_v16 = vpop.eup %6351 }
 0x47f   : > { %v1378_v2 = vsel %vm1263_vm3, %v7940_v16, 0.0 }
 0x480   : > { %1379 = vadd.xlane.f32.xlu1 %v1378_v2 }
 0x481   : > { %v1293_v57 = vpop.xlane.xlu0 %1292 }
 0x482   : > { %v7944_v54 = vpop.eup %6353  ;;  %v1327_v5 = vsub.f32 %v7850_v8, %v1293_v57 }
 0x483   : > { %v7947_v10 = vpop.eup %6355  ;;  %v1296_v12 = vpop.xlane.xlu1 %1295  ;;  %v1381_v46 = vsel %vm1263_vm3, %v7944_v54, 0.0 }
 0x484   : > { %v1354_v53 = vmul.f32 1.442695, %v1327_v5  ;;  %v1328_v15 = vsub.f32 %v7855_v60, %v1296_v12  ;;  %1382 = vadd.xlane.f32.xlu0 %v1381_v46  ;;  %v1384_v49 = vsel %vm1263_vm3, %v7947_v10, 0.0 }
 0x485   : > { %v1287_v35 = vpop.xlane.xlu0 %1286  ;;  %1385 = vadd.xlane.f32.xlu1 %v1384_v49 }
 0x486   : > { %v7954_v11 = vpop.eup %6357  ;;  %6359 = vpow2.f32 %v1354_v53  ;;  %v1356_v56 = vmul.f32 1.442695, %v1328_v15  ;;  %v1325_v8 = vsub.f32 %v7860_v38, %v1287_v35 }
 0x487   : > { %v1284_v13 = vpop.xlane.xlu1 %1283  ;;  %v1387_v42 = vsel %vm1263_vm3, %v7954_v11, 0.0 }
 0x488   : > { %6361 = vpow2.f32 %v1356_v56  ;;  %v1350_v9 = vmul.f32 1.442695, %v1325_v8  ;;  %v1324_v60 = vsub.f32 %v7865_v45, %v1284_v13  ;;  %1388 = vadd.xlane.f32.xlu0 %v1387_v42 }
 0x48a   : > { %6363 = vpow2.f32 %v1350_v9  ;;  %v1348_v2 = vmul.f32 1.442695, %v1324_v60 }
 0x48b   : > { %v1290_v57 = vpop.xlane.xlu1 %1289 }
 0x48c   : > { %6365 = vpow2.f32 %v1348_v2 }
 0x48f   : > { %v1299_v12 = vpop.xlane.xlu0 %1298 }
 0x490   : > { %v7960_v5 = vpop.eup %6359 }
 0x491   : > { %v1302_v46 = vpop.xlane.xlu1 %1301  ;;  %v1399_v38 = vsel %vm1263_vm3, %v7960_v5, 0.0 }
 0x492   : > { %v7964_v53 = vpop.eup %6361  ;;  %1400 = vadd.xlane.f32.xlu0 %v1399_v38 }
 0x493   : > { %v1402_v15 = vsel %vm1263_vm3, %v7964_v53, 0.0 }
 0x494   : > { %v7968_v49 = vpop.eup %6363  ;;  %1403 = vadd.xlane.f32.xlu1 %v1402_v15  ;;  %v1305_v56 = vpop.xlane.xlu0 %1304 }
 0x495   : > { %v1393_v45 = vsel %vm1263_vm3, %v7968_v49, 0.0 }
 0x496   : > { %v7972_v35 = vpop.eup %6365  ;;  %v1308_v8 = vpop.xlane.xlu1 %1307  ;;  %1394 = vadd.xlane.f32.xlu0 %v1393_v45 }
 0x497   : > { %v1390_v13 = vsel %vm1263_vm3, %v7972_v35, 0.0 }
 0x498   : > { %1391 = vadd.xlane.f32.xlu1 %v1390_v13 }
 0x49a   : > { %v1377_v42 = vpop.xlane.xlu0 %1376  ;;  %v1374_v9 = vpop.xlane.xlu1 %1373 }
 0x49b   : > { %6367 = vrcp.f32 %v1377_v42  ;;  %v1329_v42 = vsub.f32 %v7882_v47, %v1299_v12 }
 0x49c   : > { %6369 = vrcp.f32 %v1374_v9 }
 0x49d   : > { %v1358_v9 = vmul.f32 1.442695, %v1329_v42 }
 0x49f   : > { %v1311_v60 = vpop.xlane.xlu0 %1310  ;;  %6371 = vpow2.f32 %v1358_v9 }
 0x4a3   : > { %v1317_v2 = vpop.xlane.xlu0 %1316 }
 0x4a4   : > { %v1335_v47 = vsub.f32 %v7926_v6, %v1317_v2 }
 0x4a5   : > { %v6368_v38 = vpop.eup %6367 }
 0x4a6   : > { %v6370_v15 = vpop.eup %6369  ;;  %v1429_v18 = vmul.f32 %v6368_v38, %v7908_v51  ;;  %v1326_v51 = vsub.f32 %v7874_v48, %v1290_v57  ;;  %v1331_v38 = vsub.f32 %v7895_v34, %v1305_v56  ;;  %v1370_v57 = vmul.f32 1.442695, %v1335_v47 }
 0x4a7   : > { %v1741_v17 = vpop.permute.xlu0 %1740  ;;  %v1427_v45 = vmul.f32 %v6370_v15, %v7906_v4  ;;  %v1330_v4 = vsub.f32 %v7889_v44, %v1302_v46  ;;  %v1333_v15 = vsub.f32 %v7916_v7, %v1311_v60 }
 0x4a8   : > { %6166 = vmatprep.subr.msk.bf16.mxu0 %vm1477_vm2, %v1741_v17  ;;  %v1750_v19 = vsel %vm1477_vm2, %v1741_v17, 0  ;;  %v1352_v17 = vmul.f32 1.442695, %v1326_v51 }
 0x4a9   : > { %5975 = vmatpush3.bf16.msra.mxu0 %v1750_v19  ;;  %1939 = vrot.lane.b32.xlu1 %v7733_v52, %s7036_s2  ;;  %v1462_v13 = vpack.c.bf16 %v1429_v18, %v1427_v45  ;;  %v1362_v19 = vmul.f32 1.442695, %v1331_v38  ;;  %v1360_v18 = vmul.f32 1.442695, %v1330_v4  ;;  %v1332_v45 = vsub.f32 %v7902_v36, %v1308_v8  ;;  %v7993_v44 = vpop.eup %6371 }
 0x4aa   : > { %6373 = vpow2.f32 %v1352_v17  ;;  %v1405_v36 = vsel %vm1263_vm3, %v7993_v44, 0.0 }
 0x4ab   : > { %5944 = vmatprep.mubr.msk.bf16.mxu1 %vm1263_vm3, %v1462_v13  ;;  %v1314_v13 = vpop.xlane.xlu1 %1313  ;;  %6375 = vpow2.f32 %v1362_v19  ;;  %v1364_v48 = vmul.f32 1.442695, %v1332_v45 }
 0x4ac   : > { %1872 = vrot.lane.b32.xlu0 %v7733_v52, %s7035_s16  ;;  %v1366_v52 = vmul.f32 1.442695, %v1333_v15  ;;  %6377 = vpow2.f32 %v1360_v18  ;;  %v1334_v34 = vsub.f32 %v7923_v14, %v1314_v13 }
 0x4ae   : > { %6379 = vpow2.f32 %v1366_v52  ;;  %v1368_v12 = vmul.f32 1.442695, %v1334_v34 }
 0x4af   : > { %6381 = vpow2.f32 %v1364_v48  ;;  %v8029_v19 = vpop.permute.xlu1 %1807 }
 0x4b0   : > { %6383 = vpow2.f32 %v1370_v57 }
 0x4b1   : > { %6385 = vpow2.f32 %v1368_v12 }
 0x4b4   : > { %v7995_v7 = vpop.eup %6373 }
 0x4b5   : > { %v7999_v46 = vpop.eup %6375  ;;  %v1396_v6 = vsel %vm1263_vm3, %v7995_v7, 0.0 }
 0x4b6   : > { %v8003_v14 = vpop.eup %6377  ;;  %v1411_v56 = vsel %vm1263_vm3, %v7999_v46, 0.0 }
 0x4b7   : > { %v1408_v60 = vsel %vm1263_vm3, %v8003_v14, 0.0 }
 0x4b8   : > { %v8007_v8 = vpop.eup %6379 }
 0x4b9   : > { %v8011_v2 = vpop.eup %6381  ;;  %v1417_v42 = vsel %vm1263_vm3, %v8007_v8, 0.0 }
 0x4ba   : > { %v8015_v51 = vpop.eup %6383  ;;  %v1414_v9 = vsel %vm1263_vm3, %v8011_v2, 0.0 }
 0x4bb   : > { %v8019_v38 = vpop.eup %6385  ;;  %v1423_v17 = vsel %vm1263_vm3, %v8015_v51, 0.0 }
 0x4bc   : > { %v1420_v4 = vsel %vm1263_vm3, %v8019_v38, 0.0 }
 0x4cb   : > { %1406 = vadd.xlane.f32.xlu0 %v1405_v36 }
 0x4cd   : > { %1397 = vadd.xlane.f32.xlu1 %v1396_v6 }
 0x4cf   : > { %1412 = vadd.xlane.f32.xlu0 %v1411_v56 }
 0x4d1   : > { %1409 = vadd.xlane.f32.xlu1 %v1408_v60 }
 0x4d3   : > { %1418 = vadd.xlane.f32.xlu0 %v1417_v42 }
 0x4d5   : > { %1415 = vadd.xlane.f32.xlu1 %v1414_v9 }
 0x4d7   : > { %1424 = vadd.xlane.f32.xlu0 %v1423_v17 }
 0x4d9   : > { %1421 = vadd.xlane.f32.xlu1 %v1420_v4 }
 0x4ea   : > { %1941 = vrot.lane.b32.xlu1 %v7731_v50, %s7036_s2 }
 0x4ed   : > { %1874 = vrot.lane.b32.xlu0 %v7731_v50, %s7035_s16 }
 0x50d   : > { %v1380_v15 = vpop.xlane.xlu1 %1379 }
 0x50e   : > { %6387 = vrcp.f32 %v1380_v15 }
 0x511   : > { %v1383_v18 = vpop.xlane.xlu0 %1382 }
 0x512   : > { %6389 = vrcp.f32 %v1383_v18  ;;  %v1386_v45 = vpop.xlane.xlu1 %1385 }
 0x513   : > { %6391 = vrcp.f32 %v1386_v45 }
 0x515   : > { %v1389_v13 = vpop.xlane.xlu0 %1388 }
 0x516   : > { %6393 = vrcp.f32 %v1389_v13 }
 0x518   : > { %v6388_v52 = vpop.eup %6387 }
 0x519   : > { %v1431_v48 = vmul.f32 %v6388_v52, %v7940_v16 }
 0x51c   : > { %v6390_v47 = vpop.eup %6389 }
 0x51d   : > { %v1433_v34 = vmul.f32 %v6390_v47, %v7944_v54  ;;  %v6392_v57 = vpop.eup %6391  ;;  %v1549_v54 = vsel %vm1477_vm2, %v7799_v0, 0 }
 0x51e   : > { %v1435_v56 = vmul.f32 %v6392_v57, %v7947_v10 }
 0x51f   : > { %v1401_v12 = vpop.xlane.xlu0 %1400  ;;  %v1463_v36 = vpack.c.bf16 %v1433_v34, %v1431_v48 }
 0x520   : > { %v6394_v50 = vpop.eup %6393 }
 0x521   : > { %5945 = vmatmul.mubr.msk.bf16.vlgmr.msra.gmra.mrb[20].mxu1 %vm1263_vm3, %v1463_v36  ;;  %v1404_v6 = vpop.xlane.xlu1 %1403  ;;  %v1437_v60 = vmul.f32 %v6394_v50, %v7954_v11  ;;  %v1532_v17 = vrot.slane %v1463_v36, 1 }
 0x522   : > { %5949 = vmatpush3.bf16.msra.mxu1 %v7802_v62 }
 0x523   : > { %6163 = vmatprep.subr.msk.bf16.mxu1 %vm1477_vm2, %v7799_v0  ;;  %v1395_v42 = vpop.xlane.xlu0 %1394  ;;  %v1464_v16 = vpack.c.bf16 %v1437_v60, %v1435_v56  ;;  %v1616_v0 = vsel %vm1477_vm2, %v7804_v1, 0 }
 0x524   : > { %6395 = vrcp.f32 %v1395_v42 }
 0x525   : > { %v1392_v9 = vpop.xlane.xlu1 %1391  ;;  %v1533_v4 = vrot.slane %v1464_v16, 1  ;;  %v1601_v52 = vrot.slane %v1464_v16, 2 }
 0x526   : > { %5951 = vmatpush3.bf16.msra.mxu1 %v1549_v54  ;;  %6397 = vrcp.f32 %v1392_v9 }
 0x527   : > { %5956 = vmatprep.subr.bf16.mxu1 %v7844_v55  ;;  %v8042_v10 = vpop.permute.xlu0 %1872  ;;  %v1534_v62 = vsel %vm1531_vm7, %v1532_v17, %v1533_v4  ;;  %6399 = vrcp.f32 %v1404_v6 }
 0x528   : > { %5952 = vmatprep.mubr.msk.bf16.mxu1 %vm1263_vm3, %v1534_v62  ;;  %5988 = vmatprep.subr.bf16.mxu0 %v8042_v10  ;;  %6401 = vrcp.f32 %v1401_v12 }
 0x529   : > { %5953 = vmatmul.mubr.msk.bf16.vlgmr.msra.gmra.mrb[24].mxu1 %vm1263_vm3, %v1533_v4 }
 0x52a   : > { %5957 = vmatpush3.bf16.msra.mxu1 %v7844_v55 }
 0x52b   : > { %6164 = vmatprep.subr.msk.bf16.mxu1 %vm1477_vm2, %v7804_v1  ;;  %v1683_v1 = vsel %vm1477_vm2, %v7797_v43, 0 }
 0x52e   : > { %v6396_v11 = vpop.eup %6395  ;;  %5959 = vmatpush3.bf16.msra.mxu1 %v1616_v0 }
 0x52f   : > { %5964 = vmatprep.subr.bf16.mxu1 %v7852_v37  ;;  %v1441_v45 = vmul.f32 %v6396_v11, %v7968_v49  ;;  %v8065_v49 = vpop.permute.xlu1 %1939 }
 0x530   : > { %v6398_v15 = vpop.eup %6397 }
 0x531   : > { %v1439_v18 = vmul.f32 %v6398_v15, %v7972_v35  ;;  %v6400_v36 = vpop.eup %6399 }
 0x532   : > { %v6402_v50 = vpop.eup %6401  ;;  %v1447_v42 = vmul.f32 %v6400_v36, %v7964_v53 }
 0x533   : > { %v1465_v13 = vpack.c.bf16 %v1441_v45, %v1439_v18  ;;  %v1445_v9 = vmul.f32 %v6402_v50, %v7960_v5 }
 0x535   : > { %v1602_v47 = vrot.slane %v1465_v13, 2  ;;  %v1668_v11 = vrot.slane %v1465_v13, 3 }
 0x537   : > { %v1603_v55 = vsel %vm1197_vm6, %v1601_v52, %v1602_v47 }
 0x538   : > { %5960 = vmatprep.mubr.msk.bf16.mxu1 %vm1263_vm3, %v1603_v55 }
 0x539   : > { %5961 = vmatmul.mubr.msk.bf16.vlgmr.msra.gmra.mrb[28].mxu1 %vm1263_vm3, %v1602_v47 }
 0x53a   : > { %5965 = vmatpush3.bf16.msra.mxu1 %v7852_v37 }
 0x53b   : > { %6165 = vmatprep.subr.msk.bf16.mxu1 %vm1477_vm2, %v7797_v43 }
 0x53e   : > { %5967 = vmatpush3.bf16.msra.mxu1 %v1683_v1 }
 0x53f   : > { %5980 = vmatprep.subr.bf16.mxu1 %v7869_v61 }
 0x558   : > { %v1407_v35 = vpop.xlane.xlu0 %1406 }
 0x559   : > { %6403 = vrcp.f32 %v1407_v35 }
 0x55a   : > { %v1398_v48 = vpop.xlane.xlu1 %1397 }
 0x55b   : > { %6405 = vrcp.f32 %v1398_v48 }
 0x55c   : > { %v1413_v34 = vpop.xlane.xlu0 %1412 }
 0x55d   : > { %6407 = vrcp.f32 %v1413_v34 }
 0x55e   : > { %v1410_v37 = vpop.xlane.xlu1 %1409 }
 0x55f   : > { %6409 = vrcp.f32 %v1410_v37 }
 0x560   : > { %v1419_v57 = vpop.xlane.xlu0 %1418 }
 0x561   : > { %6411 = vrcp.f32 %v1419_v57 }
 0x562   : > { %v1416_v43 = vpop.xlane.xlu1 %1415 }
 0x563   : > { %v6404_v56 = vpop.eup %6403  ;;  %6413 = vrcp.f32 %v1416_v43 }
 0x564   : > { %v1425_v60 = vpop.xlane.xlu0 %1424  ;;  %v1449_v12 = vmul.f32 %v6404_v56, %v7993_v44 }
 0x565   : > { %v6406_v6 = vpop.eup %6405  ;;  %6415 = vrcp.f32 %v1425_v60 }
 0x566   : > { %v1422_v16 = vpop.xlane.xlu1 %1421  ;;  %v1443_v54 = vmul.f32 %v6406_v6, %v7995_v7  ;;  %v1467_v17 = vpack.c.bf16 %v1449_v12, %v1447_v42 }
 0x567   : > { %v6408_v4 = vpop.eup %6407  ;;  %6417 = vrcp.f32 %v1422_v16 }
 0x568   : > { %v1466_v62 = vpack.c.bf16 %v1445_v9, %v1443_v54  ;;  %v1736_v15 = vrot.slane %v1467_v17, 4  ;;  %v1453_v44 = vmul.f32 %v6408_v4, %v7999_v46  ;;  %v1875_v13 = vpop.permute.xlu0 %1874 }
 0x569   : > { %v6410_v0 = vpop.eup %6409 }
 0x56a   : > { %v1669_v18 = vrot.slane %v1466_v62, 3  ;;  %v1735_v45 = vrot.slane %v1466_v62, 4  ;;  %v1451_v53 = vmul.f32 %v6410_v0, %v8003_v14  ;;  %v1802_v14 = vrot.slane %v1467_v17, 5  ;;  %v1942_v42 = vpop.permute.xlu1 %1941 }
 0x56b   : > { %v6412_v52 = vpop.eup %6411 }
 0x56c   : > { %v1670_v47 = vsel %vm1667_vm8, %v1668_v11, %v1669_v18  ;;  %v1737_v7 = vsel %vm1185_vm5, %v1735_v45, %v1736_v15  ;;  %v1468_v5 = vpack.c.bf16 %v1453_v44, %v1451_v53  ;;  %v1457_v35 = vmul.f32 %v6412_v52, %v8007_v8 }
 0x56d   : > { %v6414_v55 = vpop.eup %6413  ;;  %5968 = vmatprep.mubr.msk.bf16.mxu1 %vm1263_vm3, %v1670_v47  ;;  %5976 = vmatprep.mubr.msk.bf16.mxu0 %vm1263_vm3, %v1737_v7  ;;  %v1884_v8 = vsel %vm1477_vm2, %v1875_v13, 0  ;;  %v6337_v7 = vld [vmem:[%s402_s6] sm:$0xff]  }
 0x56e   : > { %5969 = vmatmul.mubr.msk.bf16.vlgmr.msra.gmra.mrb[32].mxu1 %vm1263_vm3, %v1669_v18  ;;  %5977 = vmatmul.mubr.msk.bf16.vlgmr.msra.gmra.mrb[24].mxu0 %vm1263_vm3, %v1736_v15  ;;  %v1803_v1 = vrot.slane %v1468_v5, 5  ;;  %v1455_v46 = vmul.f32 %v6414_v55, %v8011_v2  ;;  %v1817_v2 = vsel %vm1477_vm2, %v8029_v19, 0  ;;  %v1869_v36 = vrot.slane %v1468_v5, 6 }
 0x56f   : > { %v6416_v48 = vpop.eup %6415  ;;  %5981 = vmatpush3.bf16.msra.mxu1 %v7869_v61  ;;  %5989 = vmatpush3.bf16.msra.mxu0 %v8042_v10 }
 0x570   : > { %6167 = vmatprep.subr.msk.bf16.mxu1 %vm1477_vm2, %v8029_v19  ;;  %6168 = vmatprep.subr.msk.bf16.mxu0 %vm1477_vm2, %v1875_v13  ;;  %v1804_v34 = vsel %vm1801_vm9, %v1802_v14, %v1803_v1  ;;  %v1469_v37 = vpack.c.bf16 %v1457_v35, %v1455_v46  ;;  %v1461_v50 = vmul.f32 %v6416_v48, %v8015_v51  ;;  %v6338_v48 = vld [vmem:[%s402_s6 + $0x8] sm:$0xff]  }
 0x571   : > { %v6418_v57 = vpop.eup %6417  ;;  %5984 = vmatprep.mubr.msk.bf16.mxu1 %vm1263_vm3, %v1804_v34 }
 0x572   : > { %v1870_v61 = vrot.slane %v1469_v37, 6  ;;  %v1459_v10 = vmul.f32 %v6418_v57, %v8019_v38  ;;  %v1936_v19 = vrot.slane %v1469_v37, 7  ;;  %v1951_v38 = vsel %vm1477_vm2, %v1942_v42, 0 }
 0x573   : > { %5983 = vmatpush3.bf16.msra.mxu1 %v1817_v2  ;;  %5991 = vmatpush3.bf16.msra.mxu0 %v1884_v8  ;;  %v2140_v8 = vsel %vm423_vm0, %v6338_v48, 0 }
 0x574   : > { %5996 = vmatprep.subr.bf16.mxu1 %v8065_v49  ;;  %v1871_v43 = vsel %vm1173_vm4, %v1869_v36, %v1870_v61  ;;  %v1470_v56 = vpack.c.bf16 %v1461_v50, %v1459_v10  ;;  %6170 = vmatprep.subr.msk.bf16.mxu0 %vm423_vm0, %v6337_v7 }
 0x575   : > { %5992 = vmatprep.mubr.msk.bf16.mxu0 %vm1263_vm3, %v1871_v43 }
 0x576   : > { %5985 = vmatmul.mubr.msk.bf16.vlgmr.msra.gmra.mrb[36].mxu1 %vm1263_vm3, %v1803_v1  ;;  %5993 = vmatmul.mubr.msk.bf16.vlgmr.msra.gmra.mrb[28].mxu0 %vm1263_vm3, %v1870_v61  ;;  %v1937_v60 = vrot.slane %v1470_v56, 7  ;;  %v2137_v1 = vsel %vm423_vm0, %v6337_v7, 0 }
 0x577   : > { %5997 = vmatpush3.bf16.msra.mxu1 %v8065_v49 }
 0x578   : > { %6169 = vmatprep.subr.msk.bf16.mxu1 %vm1477_vm2, %v1942_v42  ;;  %v1938_v51 = vsel %vm1477_vm2, %v1936_v19, %v1937_v60 }
 0x579   : > { %6000 = vmatprep.mubr.msk.bf16.mxu1 %vm1263_vm3, %v1938_v51 }
 0x57b   : > { %5999 = vmatpush3.bf16.msra.mxu1 %v1951_v38 }
 0x57c   : > { %6005 = vmatpush3.bf16.xpose.msra.mxu0 %v2137_v1 }
 0x57d   : > { %6171 = vmatprep.subr.msk.bf16.mxu0 %vm423_vm0, %v6338_v48 }
 0x57e   : > { %6001 = vmatmul.mubr.msk.bf16.vlgmr.msra.gmra.mrb[40].mxu1 %vm1263_vm3, %v1937_v60  ;;  %vm2203_vm3 = vcmask 254976  }
 0x584   : > { %6007 = vmatpush3.bf16.xpose.msra.mxu0 %v2140_v8 }
 0x5f4   : > { %v8104_v12 = vpop.f32.mrb[20].mxu1 }
 0x5f5   : > { %v8106_v6 = vpop.f32.mrb[21].mxu1 }
 0x5f6   : > { %v5947_v16 = vpop.f32.mrb[22].mxu1 }
 0x5f7   : > { %v8108_v54 = vpop.f32.mrb[23].mxu1 }
 0x5fc   : > { %v5954_v9 = vpop.f32.mrb[24].mxu1 }
 0x5fd   : > { %2008 = vrot.lane.b32.xlu1 %v5954_v9, %s7037_s10  ;;  %v1585_v49 = vpop.f32.mrb[25].mxu1 }
 0x5fe   : > { %v5955_v17 = vpop.f32.mrb[26].mxu1 }
 0x5ff   : > { %v1588_v4 = vpop.f32.mrb[27].mxu1 }
 0x600   : > { %v6261_v62 = vpack.i.bf16 %v1588_v4, %v1585_v49 }
 0x602   : > { %6262 = vrot.lane.b32.xlu0 %v6261_v62, %s7037_s10 }
 0x60c   : > { %v5962_v0 = vpop.f32.mrb[28].mxu1 }
 0x60d   : > { %2020 = vrot.lane.b32.xlu1 %v5962_v0, %s7038_s3  ;;  %v1652_v11 = vpop.f32.mrb[29].mxu1 }
 0x60e   : > { %v5963_v15 = vpop.f32.mrb[30].mxu1 }
 0x60f   : > { %v1655_v18 = vpop.f32.mrb[31].mxu1 }
 0x610   : > { %v6266_v45 = vpack.i.bf16 %v1655_v18, %v1652_v11 }
 0x612   : > { %6267 = vrot.lane.b32.xlu0 %v6266_v45, %s7038_s3 }
 0x641   : > { %v5970_v53 = vpop.f32.mrb[32].mxu1  ;;  %v5978_v44 = vpop.f32.mrb[24].mxu0 }
 0x642   : > { %v1786_v52 = vpop.f32.mrb[25].mxu0  ;;  %2032 = vrot.lane.b32.xlu1 %v5970_v53, %s7039_s27  ;;  %v1719_v47 = vpop.f32.mrb[33].mxu1 }
 0x643   : > { %v5971_v5 = vpop.f32.mrb[34].mxu1  ;;  %v5979_v55 = vpop.f32.mrb[26].mxu0 }
 0x644   : > { %v1722_v13 = vpop.f32.mrb[35].mxu1  ;;  %v1789_v14 = vpop.f32.mrb[27].mxu0 }
 0x645   : > { %v6271_v46 = vpack.i.bf16 %v1722_v13, %v1719_v47  ;;  %v6276_v35 = vpack.i.bf16 %v1789_v14, %v1786_v52 }
 0x646   : > { %2044 = vrot.lane.b32.xlu1 %v5978_v44, %s7040_s11 }
 0x647   : > { %6272 = vrot.lane.b32.xlu0 %v6271_v46, %s7039_s27 }
 0x649   : > { %v5986_v34 = vpop.f32.mrb[36].mxu1  ;;  %v5994_v37 = vpop.f32.mrb[28].mxu0 }
 0x64a   : > { %2056 = vrot.lane.b32.xlu1 %v5986_v34, %s7041_s22  ;;  %v1853_v57 = vpop.f32.mrb[37].mxu1  ;;  %v1920_v2 = vpop.f32.mrb[29].mxu0 }
 0x64b   : > { %6277 = vrot.lane.b32.xlu0 %v6276_v35, %s7040_s11  ;;  %v5987_v36 = vpop.f32.mrb[38].mxu1  ;;  %v5995_v61 = vpop.f32.mrb[30].mxu0 }
 0x64c   : > { %v1856_v10 = vpop.f32.mrb[39].mxu1  ;;  %v1923_v50 = vpop.f32.mrb[31].mxu0 }
 0x64d   : > { %v6281_v43 = vpack.i.bf16 %v1856_v10, %v1853_v57  ;;  %v6286_v56 = vpack.i.bf16 %v1923_v50, %v1920_v2 }
 0x64e   : > { %2068 = vrot.lane.b32.xlu1 %v5994_v37, %s7042_s8 }
 0x64f   : > { %6282 = vrot.lane.b32.xlu0 %v6281_v43, %s7041_s22 }
 0x651   : > { %v6002_v19 = vpop.f32.mrb[40].mxu1 }
 0x652   : > { %2080 = vrot.lane.b32.xlu1 %v6002_v19, %s7043_s12  ;;  %v1987_v60 = vpop.f32.mrb[41].mxu1 }
 0x653   : > { %6287 = vrot.lane.b32.xlu0 %v6286_v56, %s7042_s8  ;;  %v6003_v42 = vpop.f32.mrb[42].mxu1 }
 0x654   : > { %v1990_v51 = vpop.f32.mrb[43].mxu1 }
 0x655   : > { %v6291_v38 = vpack.i.bf16 %v1990_v51, %v1987_v60 }
 0x657   : > { %6292 = vrot.lane.b32.xlu0 %v6291_v38, %s7043_s12 }
 0x66f   : > { %v2009_v16 = vpop.permute.xlu1 %2008 }
 0x670   : > { %v2087_v7 = vsel %vm629_vm1, %v8104_v12, %v2009_v16 }
 0x674   : > { %v6263_v49 = vpop.permute.xlu0 %6262 }
 0x675   : > { %v6265_v18 = vunpack.i.h.bf16 %v6263_v49  ;;  %v6264_v45 = vunpack.i.l.bf16 %v6263_v49 }
 0x677   : > { %v2086_v5 = vsel %vm629_vm1, %v8108_v54, %v6265_v18  ;;  %v2085_v14 = vsel %vm629_vm1, %v8106_v6, %v6264_v45 }
 0x67f   : > { %v2021_v9 = vpop.permute.xlu1 %2020 }
 0x680   : > { %v2091_v1 = vsel %vm2088_vm10, %v2087_v7, %v2021_v9 }
 0x684   : > { %v6268_v4 = vpop.permute.xlu0 %6267 }
 0x685   : > { %v6270_v44 = vunpack.i.h.bf16 %v6268_v4  ;;  %v6269_v47 = vunpack.i.l.bf16 %v6268_v4 }
 0x687   : > { %v2090_v34 = vsel %vm2088_vm10, %v2086_v5, %v6270_v44  ;;  %v2089_v12 = vsel %vm2088_vm10, %v2085_v14, %v6269_v47 }
 0x6b4   : > { %v2033_v17 = vpop.permute.xlu1 %2032 }
 0x6b5   : > { %v2095_v37 = vsel %vm2092_vm11, %v2091_v1, %v2033_v17 }
 0x6b8   : > { %v2045_v62 = vpop.permute.xlu1 %2044 }
 0x6b9   : > { %v6273_v0 = vpop.permute.xlu0 %6272  ;;  %v2099_v54 = vsel %vm2096_vm12, %v2095_v37, %v2045_v62 }
 0x6ba   : > { %v6275_v55 = vunpack.i.h.bf16 %v6273_v0  ;;  %v6274_v13 = vunpack.i.l.bf16 %v6273_v0 }
 0x6bc   : > { %v2057_v11 = vpop.permute.xlu1 %2056  ;;  %v2094_v61 = vsel %vm2092_vm11, %v2090_v34, %v6275_v55  ;;  %v2093_v6 = vsel %vm2092_vm11, %v2089_v12, %v6274_v13 }
 0x6bd   : > { %v6278_v15 = vpop.permute.xlu0 %6277  ;;  %v2103_v10 = vsel %vm2100_vm13, %v2099_v54, %v2057_v11 }
 0x6be   : > { %v6280_v46 = vunpack.i.h.bf16 %v6278_v15  ;;  %v6279_v35 = vunpack.i.l.bf16 %v6278_v15  ;;  %v5559_v15 = vld [vmem:[%s407_s23] ss:$0 sm:$0xff] }
 0x6c0   : > { %v2069_v52 = vpop.permute.xlu1 %2068  ;;  %v2097_v43 = vsel %vm2096_vm12, %v2093_v6, %v6279_v35  ;;  %v2098_v56 = vsel %vm2096_vm12, %v2094_v61, %v6280_v46  ;;  %v7044_v35 = vmov 0.0  }
 0x6c1   : > { %v6283_v53 = vpop.permute.xlu0 %6282  ;;  %v2107_v19 = vsel %vm2104_vm14, %v2103_v10, %v2069_v52  ;;  %6020 = vmatprep.subr.bf16.mxu0 %v7044_v35 }
 0x6c2   : > { %v6285_v57 = vunpack.i.h.bf16 %v6283_v53  ;;  %v6284_v2 = vunpack.i.l.bf16 %v6283_v53 }
 0x6c4   : > { %v2081_v50 = vpop.permute.xlu1 %2080  ;;  %v2102_v42 = vsel %vm2100_vm13, %v2098_v56, %v6285_v57  ;;  %v2101_v51 = vsel %vm2100_vm13, %v2097_v43, %v6284_v2 }
 0x6c5   : > { %v6288_v48 = vpop.permute.xlu0 %6287  ;;  %v2111_v9 = vsel %vm8981_vm15, %v2107_v19, %v2081_v50 }
 0x6c6   : > { %v6290_v8 = vunpack.i.h.bf16 %v6288_v48  ;;  %v6289_v36 = vunpack.i.l.bf16 %v6288_v48  ;;  %v2113_v11 = vpack.c.bf16 %v2111_v9, %v2111_v9 }
 0x6c8   : > { %v2106_v49 = vsel %vm2104_vm14, %v2102_v42, %v6290_v8  ;;  %v2105_v17 = vsel %vm2104_vm14, %v2101_v51, %v6289_v36  ;;  %v6342_v51 = vld [vmem:[%s8168_s30 + $0x8] sm:$0xff]  }
 0x6c9   : > { %v6293_v60 = vpop.permute.xlu0 %6292 }
 0x6ca   : > { %v6295_v38 = vunpack.i.h.bf16 %v6293_v60  ;;  %v6294_v16 = vunpack.i.l.bf16 %v6293_v60  ;;  %v6341_v60 = vld [vmem:[%s8168_s30] sm:$0xff]  }
 0x6cb   : > { %6172 = vmatprep.subr.msk.bf16.mxu1 %vm423_vm0, %v6341_v60  ;;  %v2303_v42 = vsel %vm423_vm0, %v6341_v60, 0 }
 0x6cc   : > { %v2110_v4 = vsel %vm8981_vm15, %v2106_v49, %v6295_v38  ;;  %v2109_v62 = vsel %vm8981_vm15, %v2105_v17, %v6294_v16  ;;  %vm7045_vm15 = vmmov 0   ;;  %6013 = vmatpush3.bf16.xpose.msra.mxu1 %v2303_v42  ;;  %v2306_v38 = vsel %vm423_vm0, %v6342_v51, 0 }
 0x6cd   : > { %v2112_v0 = vpack.c.bf16 %v2110_v4, %v2109_v62  ;;  %6173 = vmatprep.subr.msk.bf16.mxu1 %vm423_vm0, %v6342_v51 }
 0x6cf   : > { %6008 = vmatprep.mubr.msk.bf16.mxu0 %vm423_vm0, %v2112_v0 }
 0x6d0   : > { %6009 = vmatmul.mubr.msk.bf16.vlgmr.msra.gmra.mrb[32].mxu0 %vm423_vm0, %v2113_v11 }
 0x6d1   : > { %6024 = vmatprep.mubr.msk.bf16.mxu0 %vm7045_vm15, %v7044_v35 }
 0x6d4   : > { %6015 = vmatpush3.bf16.xpose.msra.mxu1 %v2306_v38 }
 0x6d5   : > { %6028 = vmatprep.subr.bf16.mxu1 %v7044_v35 }
 0x7a3   : > { %v6010_v18 = vpop.f32.mrb[32].mxu0 }
 0x7a4   : > { %v2176_v45 = vpop.f32.mrb[33].mxu0  ;;  %v2185_v53 = vadd.f32 %v6010_v18, %v5559_v15 }
 0x7a5   : > { %v2177_v44 = vadd.f32 %v5559_v15, %v2176_v45  ;;  %v6011_v52 = vpop.f32.mrb[34].mxu0  ;;  %v5564_v45 = vld [vmem:[%s2193_s14] ss:$0 sm:$0xff] }
 0x7a6   : > { %v2179_v47 = vpop.f32.mrb[35].mxu0  ;;  %v2192_v14 = vadd.f32 %v6989_v41, %v2185_v53  ;;  %v6340_v41 = vld [vmem:[%s8168_s30 + $0x18] sm:$0xff]  }
 0x7a7   : > { %v2180_v7 = vadd.f32 %v5559_v15, %v2179_v47  ;;  %v2190_v5 = vadd.f32 %v6997_v39, %v2177_v44  ;;  %v6339_v39 = vld [vmem:[%s8168_s30 + $0x10] sm:$0xff]   ;;  %v2377_v48 = vsel %vm423_vm0, %v6340_v41, 0 }
 0x7a8   : > { %v2204_v46 = vsel %vm2203_vm3, %v2192_v14, 0.0 }
 0x7a9   : > { %v2197_v55 = vsel %vm423_vm0, %v2190_v5, 0.0  ;;  %v2191_v13 = vadd.f32 %v6993_v40, %v2180_v7  ;;  %v2374_v40 = vsel %vm423_vm0, %v6339_v39, 0 }
 0x7aa   : > { %2198 = vadd.xlane.f32.xlu0 %v2197_v55  ;;  %6021 = vmatpush3.bf16.xpose.msra.mxu0 %v2374_v40 }
 0x7ab   : > { %v2200_v1 = vsel %vm423_vm0, %v2191_v13, 0.0  ;;  %6022 = vmatprep.subr.bf16.mxu0 %v7044_v35 }
 0x7ac   : > { %2201 = vadd.xlane.f32.xlu1 %v2200_v1 }
 0x7ae   : > { %2205 = vadd.xlane.f32.xlu0 %v2204_v46 }
 0x7b2   : > { %6023 = vmatpush3.bf16.xpose.msra.mxu0 %v2377_v48  ;;  %v8207_v48 = vld [vmem:[%s2272_s29] sm:$0x7] }
 0x7b9   : > { %6025 = vmatmul.mubr.msk.bf16.vlgmr.msra.gmra.mrb[36].mxu0 %vm423_vm0, %v7444_v3 }
 0x837   : > { %v2199_v34 = vpop.xlane.xlu0 %2198 }
 0x838   : > { %v2208_v37 = vmul.f32 0.03125, %v2199_v34  ;;  %v2359_v34 = vrot.slane %v8207_v48, %v7682_v59 }
 0x839   : > { %v2202_v57 = vpop.xlane.xlu1 %2201 }
 0x83a   : > { %v2211_v2 = vsub.f32 %v2190_v5, %v2208_v37  ;;  %v2209_v12 = vmul.f32 0.03125, %v2202_v57  ;;  %v5565_v5 = vld [vmem:[%s2195_s1] ss:$0 sm:$0xff] }
 0x83b   : > { %v2206_v54 = vpop.xlane.xlu0 %2205 }
 0x83c   : > { %v2212_v8 = vsub.f32 %v2191_v13, %v2209_v12  ;;  %v2210_v36 = vmul.f32 0.03125, %v2206_v54  ;;  %v2214_v61 = vmul.f32 %v2211_v2, %v2211_v2 }
 0x83e   : > { %v2213_v6 = vsub.f32 %v2192_v14, %v2210_v36  ;;  %v2217_v10 = vsel %vm423_vm0, %v2214_v61, 0.0  ;;  %v2215_v50 = vmul.f32 %v2212_v8, %v2212_v8 }
 0x83f   : > { %2218 = vadd.xlane.f32.xlu0 %v2217_v10 }
 0x840   : > { %v2220_v43 = vsel %vm423_vm0, %v2215_v50, 0.0  ;;  %v2216_v56 = vmul.f32 %v2213_v6, %v2213_v6  ;;  %v6344_v50 = vld [vmem:[%s8168_s30 + $0x28] sm:$0xff]  }
 0x841   : > { %2221 = vadd.xlane.f32.xlu1 %v2220_v43  ;;  %v2438_v43 = vsel %vm423_vm0, %v6344_v50, 0 }
 0x842   : > { %v2223_v19 = vsel %vm2203_vm3, %v2216_v56, 0.0 }
 0x843   : > { %2224 = vadd.xlane.f32.xlu0 %v2223_v19 }
 0x88c   : > { %v2413_v37 = vpop.f32.mrb[36].mxu0 }
 0x88d   : > { %v2414_v57 = vadd.f32 %v2413_v37, %v2359_v34 }
 0x8cc   : > { %v2219_v16 = vpop.xlane.xlu0 %2218 }
 0x8cd   : > { %v2226_v9 = vmul.f32 0.03125, %v2219_v16 }
 0x8ce   : > { %v2222_v49 = vpop.xlane.xlu1 %2221 }
 0x8cf   : > { %v2229_v17 = vadd.f32 1e-05, %v2226_v9  ;;  %v2227_v4 = vmul.f32 0.03125, %v2222_v49 }
 0x8d0   : > { %v2225_v62 = vpop.xlane.xlu0 %2224 }
 0x8d1   : > { %6419 = vrsqrt.f32 %v2229_v17  ;;  %v2230_v0 = vadd.f32 1e-05, %v2227_v4  ;;  %v2228_v11 = vmul.f32 0.03125, %v2225_v62 }
 0x8d3   : > { %6421 = vrsqrt.f32 %v2230_v0  ;;  %v2231_v15 = vadd.f32 1e-05, %v2228_v11 }
 0x8d5   : > { %6423 = vrsqrt.f32 %v2231_v15 }
 0x8db   : > { %v6420_v18 = vpop.eup %6419 }
 0x8dc   : > { %v2235_v53 = vmul.f32 %v6420_v18, %v2211_v2  ;;  %v6026_v2 = vpop.f32.mrb[37].mxu0 }
 0x8dd   : > { %v6422_v44 = vpop.eup %6421  ;;  %v2416_v12 = vpop.f32.mrb[38].mxu0 }
 0x8de   : > { %v2236_v52 = vmul.f32 %v6422_v44, %v2212_v8  ;;  %v2244_v47 = vmul.f32 %v5564_v45, %v2235_v53  ;;  %v2417_v54 = vadd.f32 %v2416_v12, %v2359_v34  ;;  %v6027_v8 = vpop.f32.mrb[39].mxu0 }
 0x8df   : > { %v6424_v7 = vpop.eup %6423 }
 0x8e0   : > { %v2237_v55 = vmul.f32 %v6424_v7, %v2213_v6  ;;  %v2245_v13 = vmul.f32 %v5564_v45, %v2236_v52  ;;  %v8191_v14 = vadd.f32 %v5565_v5, %v2244_v47  ;;  %v2486_v36 = vpack.c.bf16 %v2417_v54, %v2414_v57  ;;  %v6343_v6 = vld [vmem:[%s8168_s30 + $0x20] sm:$0xff]  }
 0x8e1   : > { %v2435_v10 = vsel %vm423_vm0, %v6343_v6, 0  ;;  %v2423_v57 = vrot.slane %v8207_v48, %v7723_v63 }
 0x8e2   : > { %v8193_v1 = vadd.f32 %v5565_v5, %v2245_v13  ;;  %v2246_v46 = vmul.f32 %v5564_v45, %v2237_v55  ;;  %2552 = vrot.lane.b32.xlu1 %v2486_v36, %s7031_s19  ;;  %2615 = vrot.lane.b32.xlu0 %v2486_v36, %s7030_s26  ;;  %v2495_v61 = vsel %vm629_vm1, %v2486_v36, 0 }
 0x8e3   : > { %6174 = vmatprep.subr.msk.bf16.mxu0 %vm629_vm1, %v2486_v36 }
 0x8e4   : > { %v2256_v39 = vpack.c.bf16 %v8193_v1, %v8191_v14  ;;  %v8197_v40 = vadd.f32 %v5565_v5, %v2246_v46  ;;  %6037 = vmatpush3.bf16.xpose.msra.mxu0 %v2495_v61 }
 0x8e6   : > { %6016 = vmatprep.mubr.msk.bf16.mxu1 %vm423_vm0, %v2256_v39  ;;  %v2257_v41 = vpack.c.bf16 %v8197_v40, %v8197_v40  ;;  %2678 = vrot.lane.b32.xlu1 %v2486_v36, %s7032_s4 }
 0x8e8   : > { %6017 = vmatmul.mubr.msk.bf16.vlgmr.msra.gmra.mrb[44].mxu1 %vm423_vm0, %v2257_v41 }
 0x8e9   : > { %6032 = vmatprep.mubr.msk.bf16.mxu1 %vm7045_vm15, %v7044_v35  ;;  %6029 = vmatpush3.bf16.xpose.msra.mxu1 %v2435_v10 }
 0x8ea   : > { %2741 = vrot.lane.b32.xlu1 %v2486_v36, %s7033_s28  ;;  %6030 = vmatprep.subr.bf16.mxu1 %v7044_v35  ;;  %v2285_v35 = vrot.slane %v8207_v48, %v7679_v58 }
 0x8f1   : > { %6031 = vmatpush3.bf16.xpose.msra.mxu1 %v2438_v43 }
 0x8f8   : > { %6033 = vmatmul.mubr.msk.bf16.vlgmr.msra.gmra.mrb[48].mxu1 %vm423_vm0, %v7444_v3 }
 0x954   : > { %v2553_v56 = vpop.permute.xlu1 %2552  ;;  %v2616_v19 = vpop.permute.xlu0 %2615 }
 0x955   : > { %v2561_v60 = vsel %vm629_vm1, %v2553_v56, 0  ;;  %6175 = vmatprep.subr.msk.bf16.mxu1 %vm629_vm1, %v2553_v56  ;;  %6176 = vmatprep.subr.msk.bf16.mxu0 %vm629_vm1, %v2616_v19  ;;  %v2624_v45 = vsel %vm629_vm1, %v2616_v19, 0 }
 0x956   : > { %6043 = vmatpush3.bf16.xpose.msra.mxu1 %v2561_v60 }
 0x958   : > { %v2679_v42 = vpop.permute.xlu1 %2678 }
 0x959   : > { %6177 = vmatprep.subr.msk.bf16.mxu1 %vm629_vm1, %v2679_v42  ;;  %v2687_v5 = vsel %vm629_vm1, %v2679_v42, 0 }
 0x95c   : > { %v2742_v53 = vpop.permute.xlu1 %2741 }
 0x95d   : > { %v2750_v46 = vsel %vm629_vm1, %v2742_v53, 0 }
 0x9bb   : > { %v6018_v51 = vpop.f32.mrb[44].mxu1 }
 0x9bc   : > { %v2351_v38 = vadd.f32 %v6018_v51, %v2285_v35  ;;  %v2342_v16 = vpop.f32.mrb[45].mxu1 }
 0x9bd   : > { %v2343_v9 = vadd.f32 %v2342_v16, %v2285_v35  ;;  %v6019_v49 = vpop.f32.mrb[46].mxu1 }
 0x9be   : > { %v2483_v17 = vmul.f32 0.5, %v2351_v38  ;;  %v2345_v4 = vpop.f32.mrb[47].mxu1 }
 0x9bf   : > { %v2346_v62 = vadd.f32 %v2345_v4, %v2285_v35  ;;  %v2481_v11 = vmul.f32 0.5, %v2343_v9 }
 0x9c0   : > { %v2485_v0 = vpack.c.bf16 %v2483_v17, %v2483_v17 }
 0x9c1   : > { %v2482_v15 = vmul.f32 0.5, %v2346_v62 }
 0x9c2   : > { %2613 = vrot.lane.b32.xlu0 %v2485_v0, %s7030_s26  ;;  %2549 = vrot.lane.b32.xlu1 %v2485_v0, %s7031_s19 }
 0x9c3   : > { %v2484_v18 = vpack.c.bf16 %v2482_v15, %v2481_v11 }
 0x9c5   : > { %6038 = vmatprep.mubr.msk.bf16.mxu0 %vm629_vm1, %v2484_v18 }
 0x9c6   : > { %2804 = vrot.lane.b32.xlu0 %v2486_v36, %s7034_s21  ;;  %2547 = vrot.lane.b32.xlu1 %v2484_v18, %s7031_s19 }
 0x9c7   : > { %6039 = vmatmul.mubr.msk.bf16.vlgmr.msra.gmra.mrb[40].mxu0 %vm629_vm1, %v2485_v0 }
 0x9c8   : > { %6049 = vmatpush3.bf16.xpose.msra.mxu0 %v2624_v45 }
 0x9c9   : > { %6178 = vmatprep.subr.msk.bf16.mxu0 %vm629_vm1, %v2742_v53 }
 0x9ca   : > { %2611 = vrot.lane.b32.xlu0 %v2484_v18, %s7030_s26  ;;  %2676 = vrot.lane.b32.xlu1 %v2485_v0, %s7032_s4 }
 0x9cb   : > { %v2474_v54 = vpop.f32.mrb[48].mxu1 }
 0x9cc   : > { %v2475_v61 = vadd.f32 %v2474_v54, %v2423_v57  ;;  %v6034_v6 = vpop.f32.mrb[49].mxu1 }
 0x9cd   : > { %v2477_v10 = vpop.f32.mrb[50].mxu1 }
 0x9ce   : > { %2739 = vrot.lane.b32.xlu0 %v2485_v0, %s7033_s28  ;;  %2867 = vrot.lane.b32.xlu1 %v2486_v36, %s7035_s16  ;;  %v2478_v50 = vadd.f32 %v2477_v10, %v2423_v57  ;;  %v6035_v48 = vpop.f32.mrb[51].mxu1 }
 0x9d0   : > { %v8270_v19 = vpack.c.bf16 %v2478_v50, %v2475_v61 }
 0x9d2   : > { %2674 = vrot.lane.b32.xlu0 %v2484_v18, %s7032_s4  ;;  %2737 = vrot.lane.b32.xlu1 %v2484_v18, %s7033_s28 }
 0x9d6   : > { %2930 = vrot.lane.b32.xlu0 %v2486_v36, %s7036_s2  ;;  %2802 = vrot.lane.b32.xlu1 %v2485_v0, %s7034_s21 }
 0x9da   : > { %2800 = vrot.lane.b32.xlu0 %v2484_v18, %s7034_s21  ;;  %2863 = vrot.lane.b32.xlu1 %v2484_v18, %s7035_s16 }
 0x9de   : > { %2865 = vrot.lane.b32.xlu0 %v2485_v0, %s7035_s16  ;;  %2926 = vrot.lane.b32.xlu1 %v2484_v18, %s7036_s2 }
 0x9e2   : > { %2928 = vrot.lane.b32.xlu0 %v2485_v0, %s7036_s2 }
 0xa34   : > { %v2550_v44 = vpop.permute.xlu1 %2549  ;;  %v2614_v52 = vpop.permute.xlu0 %2613 }
 0xa38   : > { %v2548_v47 = vpop.permute.xlu1 %2547  ;;  %v2805_v7 = vpop.permute.xlu0 %2804 }
 0xa39   : > { %6044 = vmatprep.mubr.msk.bf16.mxu1 %vm629_vm1, %v2548_v47  ;;  %v2813_v2 = vsel %vm629_vm1, %v2805_v7, 0 }
 0xa3a   : > { %6045 = vmatmul.mubr.msk.bf16.vlgmr.msra.gmra.mrb[52].mxu1 %vm629_vm1, %v2550_v44 }
 0xa3b   : > { %6055 = vmatpush3.bf16.xpose.msra.mxu1 %v2687_v5 }
 0xa3c   : > { %6179 = vmatprep.subr.msk.bf16.mxu1 %vm629_vm1, %v2805_v7  ;;  %v2677_v55 = vpop.permute.xlu1 %2676  ;;  %v2612_v13 = vpop.permute.xlu0 %2611 }
 0xa3d   : > { %6050 = vmatprep.mubr.msk.bf16.mxu0 %vm629_vm1, %v2612_v13 }
 0xa3e   : > { %6051 = vmatmul.mubr.msk.bf16.vlgmr.msra.gmra.mrb[44].mxu0 %vm629_vm1, %v2614_v52 }
 0xa3f   : > { %6061 = vmatpush3.bf16.xpose.msra.mxu0 %v2750_v46 }
 0xa40   : > { %v2868_v39 = vpop.permute.xlu1 %2867  ;;  %v2740_v41 = vpop.permute.xlu0 %2739 }
 0xa41   : > { %6180 = vmatprep.subr.msk.bf16.mxu0 %vm629_vm1, %v2868_v39  ;;  %v2876_v12 = vsel %vm629_vm1, %v2868_v39, 0 }
 0xa44   : > { %v2738_v34 = vpop.permute.xlu1 %2737  ;;  %v2675_v37 = vpop.permute.xlu0 %2674 }
 0xa45   : > { %6056 = vmatprep.mubr.msk.bf16.mxu1 %vm629_vm1, %v2675_v37  ;;  %6062 = vmatprep.mubr.msk.bf16.mxu0 %vm629_vm1, %v2738_v34 }
 0xa46   : > { %6057 = vmatmul.mubr.msk.bf16.vlgmr.msra.gmra.mrb[56].mxu1 %vm629_vm1, %v2677_v55  ;;  %6063 = vmatmul.mubr.msk.bf16.vlgmr.msra.gmra.mrb[48].mxu0 %vm629_vm1, %v2740_v41 }
 0xa47   : > { %6067 = vmatpush3.bf16.xpose.msra.mxu1 %v2813_v2  ;;  %6073 = vmatpush3.bf16.xpose.msra.mxu0 %v2876_v12 }
 0xa48   : > { %v2803_v8 = vpop.permute.xlu1 %2802  ;;  %v2931_v36 = vpop.permute.xlu0 %2930  ;;  %6084 = vmatprep.subr.bf16.mxu0 %v8270_v19 }
 0xa49   : > { %6181 = vmatprep.subr.msk.bf16.mxu1 %vm629_vm1, %v2931_v36  ;;  %v2939_v60 = vsel %vm629_vm1, %v2931_v36, 0 }
 0xa4c   : > { %v2864_v43 = vpop.permute.xlu1 %2863  ;;  %v2801_v56 = vpop.permute.xlu0 %2800 }
 0xa4d   : > { %6068 = vmatprep.mubr.msk.bf16.mxu1 %vm629_vm1, %v2801_v56  ;;  %6074 = vmatprep.mubr.msk.bf16.mxu0 %vm629_vm1, %v2864_v43 }
 0xa4e   : > { %6069 = vmatmul.mubr.msk.bf16.vlgmr.msra.gmra.mrb[60].mxu1 %vm629_vm1, %v2803_v8 }
 0xa4f   : > { %6079 = vmatpush3.bf16.xpose.msra.mxu1 %v2939_v60 }
 0xa50   : > { %v2927_v42 = vpop.permute.xlu1 %2926  ;;  %v2866_v35 = vpop.permute.xlu0 %2865 }
 0xa51   : > { %6075 = vmatmul.mubr.msk.bf16.vlgmr.msra.gmra.mrb[52].mxu0 %vm629_vm1, %v2866_v35  ;;  %6080 = vmatprep.mubr.msk.bf16.mxu1 %vm629_vm1, %v2927_v42 }
 0xa52   : > { %6085 = vmatpush3.bf16.msra.mxu0 %v8270_v19 }
 0xa54   : > { %v2929_v51 = vpop.permute.xlu0 %2928 }
 0xa56   : > { %6081 = vmatmul.mubr.msk.bf16.vlgmr.msra.gmra.mrb[64].mxu1 %vm629_vm1, %v2929_v51 }
 0xa9a   : > { %v6040_v38 = vpop.f32.mrb[40].mxu0 }
 0xa9b   : > { %v2531_v16 = vpop.f32.mrb[41].mxu0 }
 0xa9c   : > { %v8280_v9 = vadd.f32 %v2531_v16, %v7534_v21  ;;  %v6041_v49 = vpop.f32.mrb[42].mxu0 }
 0xa9d   : > { %v2534_v17 = vpop.f32.mrb[43].mxu0 }
 0xa9e   : > { %v8283_v4 = vadd.f32 %v2534_v17, %v7539_v22  ;;  %v3079_v62 = vsel %vm2096_vm12, %v8280_v9, -inf }
 0xa9f   : > { %3080 = vmax.xlane.f32.xlu0 %v3079_v62 }
 0xaa0   : > { %v3082_v0 = vsel %vm2096_vm12, %v8283_v4, -inf }
 0xaa1   : > { %3083 = vmax.xlane.f32.xlu1 %v3082_v0 }
 0xb0d   : > { %v6046_v11 = vpop.f32.mrb[52].mxu1 }
 0xb0e   : > { %v2597_v15 = vpop.f32.mrb[53].mxu1  ;;  %v2995_v44 = vrot.slane %v6046_v11, 6 }
 0xb0f   : > { %v2992_v18 = vrot.slane %v2597_v15, 6  ;;  %v6047_v45 = vpop.f32.mrb[54].mxu1 }
 0xb10   : > { %v2600_v53 = vpop.f32.mrb[55].mxu1 }
 0xb11   : > { %v2993_v52 = vrot.slane %v2600_v53, 6  ;;  %v6052_v47 = vpop.f32.mrb[44].mxu0  ;;  %v3055_v7 = vsel %vm1173_vm4, %v6040_v38, %v2992_v18 }
 0xb12   : > { %v2660_v5 = vpop.f32.mrb[45].mxu0  ;;  %v8291_v55 = vadd.f32 %v3055_v7, %v7544_v23  ;;  %v3006_v2 = vrot.slane %v6052_v47, 4 }
 0xb13   : > { %v2996_v13 = vsel %vm1173_vm4, %v2993_v52, %v2995_v44  ;;  %v3003_v46 = vrot.slane %v2660_v5, 4  ;;  %v6053_v39 = vpop.f32.mrb[46].mxu0  ;;  %v2994_v41 = vsel %vm1173_vm4, %v2992_v18, %v2993_v52 }
 0xb14   : > { %v2663_v34 = vpop.f32.mrb[47].mxu0  ;;  %v3085_v37 = vsel %vm2096_vm12, %v8291_v55, -inf  ;;  %v8298_v57 = vadd.f32 %v2994_v41, %v7549_v24 }
 0xb15   : > { %v3004_v12 = vrot.slane %v2663_v34, 4  ;;  %3086 = vmax.xlane.f32.xlu1 %v3085_v37  ;;  %v3056_v54 = vsel %vm1185_vm5, %v2996_v13, %v3003_v46 }
 0xb16   : > { %v3088_v8 = vsel %vm2096_vm12, %v8298_v57, -inf  ;;  %v8304_v36 = vadd.f32 %v3056_v54, %v7554_v25 }
 0xb17   : > { %v3007_v61 = vsel %vm1185_vm5, %v3004_v12, %v3006_v2  ;;  %3089 = vmax.xlane.f32.xlu0 %v3088_v8  ;;  %v3005_v6 = vsel %vm1185_vm5, %v3003_v46, %v3004_v12 }
 0xb18   : > { %v8309_v10 = vadd.f32 %v3005_v6, %v7559_v26  ;;  %v3091_v60 = vsel %vm2096_vm12, %v8304_v36, -inf }
 0xb19   : > { %v6058_v50 = vpop.f32.mrb[56].mxu1  ;;  %v6064_v48 = vpop.f32.mrb[48].mxu0 }
 0xb1a   : > { %v2723_v43 = vpop.f32.mrb[57].mxu1  ;;  %v2786_v56 = vpop.f32.mrb[49].mxu0  ;;  %v3094_v42 = vsel %vm2096_vm12, %v8309_v10, -inf  ;;  %v3017_v49 = vrot.slane %v6058_v50, 2 }
 0xb1b   : > { %v3014_v35 = vrot.slane %v2723_v43, 2  ;;  %v8316_v51 = vadd.f32 %v2786_v56, %v7579_v30  ;;  %3092 = vmax.xlane.f32.xlu0 %v3091_v60  ;;  %3095 = vmax.xlane.f32.xlu1 %v3094_v42  ;;  %v6059_v38 = vpop.f32.mrb[58].mxu1  ;;  %v6065_v16 = vpop.f32.mrb[50].mxu0 }
 0xb1c   : > { %v2726_v17 = vpop.f32.mrb[59].mxu1  ;;  %v2789_v62 = vpop.f32.mrb[51].mxu0 }
 0xb1d   : > { %v3015_v0 = vrot.slane %v2726_v17, 2  ;;  %v8319_v11 = vadd.f32 %v2789_v62, %v7584_v31  ;;  %v3106_v15 = vsel %vm2096_vm12, %v8316_v51, -inf  ;;  %v3057_v18 = vsel %vm1197_vm6, %v3007_v61, %v3014_v35 }
 0xb1e   : > { %v8328_v44 = vadd.f32 %v3057_v18, %v7564_v27 }
 0xb1f   : > { %3107 = vmax.xlane.f32.xlu1 %v3106_v15  ;;  %v3109_v45 = vsel %vm2096_vm12, %v8319_v11, -inf  ;;  %v3016_v53 = vsel %vm1197_vm6, %v3014_v35, %v3015_v0  ;;  %v3018_v52 = vsel %vm1197_vm6, %v3015_v0, %v3017_v49 }
 0xb20   : > { %3110 = vmax.xlane.f32.xlu0 %v3109_v45  ;;  %v8332_v47 = vadd.f32 %v3016_v53, %v7569_v28  ;;  %v3097_v41 = vsel %vm2096_vm12, %v8328_v44, -inf  ;;  %v8339_v34 = vadd.f32 %v3018_v52, %v7574_v29 }
 0xb21   : > { %v6070_v7 = vpop.f32.mrb[60].mxu1 }
 0xb22   : > { %v2849_v5 = vpop.f32.mrb[61].mxu1  ;;  %v3100_v13 = vsel %vm2096_vm12, %v8332_v47, -inf  ;;  %v3028_v12 = vrot.slane %v6070_v7, 6  ;;  %v3103_v60 = vsel %vm2096_vm12, %v8339_v34, -inf }
 0xb23   : > { %v3025_v46 = vrot.slane %v2849_v5, 6  ;;  %3101 = vmax.xlane.f32.xlu1 %v3100_v13  ;;  %v6071_v39 = vpop.f32.mrb[62].mxu1 }
 0xb24   : > { %3098 = vmax.xlane.f32.xlu0 %v3097_v41  ;;  %v2852_v37 = vpop.f32.mrb[63].mxu1  ;;  %v6076_v2 = vpop.f32.mrb[52].mxu0 }
 0xb25   : > { %v3026_v54 = vrot.slane %v2852_v37, 6  ;;  %v2912_v8 = vpop.f32.mrb[53].mxu0  ;;  %v3058_v61 = vsel %vm1173_vm4, %v6064_v48, %v3025_v46  ;;  %v3039_v35 = vrot.slane %v6076_v2, 4 }
 0xb26   : > { %v3036_v6 = vrot.slane %v2912_v8, 4  ;;  %v6077_v50 = vpop.f32.mrb[54].mxu0  ;;  %v8361_v2 = vadd.f32 %v3058_v61, %v7589_v32 }
 0xb27   : > { %v3029_v43 = vsel %vm1173_vm4, %v3026_v54, %v3028_v12  ;;  %v2915_v56 = vpop.f32.mrb[55].mxu0  ;;  %v3027_v42 = vsel %vm1173_vm4, %v3025_v46, %v3026_v54 }
 0xb28   : > { %v3037_v38 = vrot.slane %v2915_v56, 4  ;;  %3104 = vmax.xlane.f32.xlu0 %v3103_v60  ;;  %v3059_v16 = vsel %vm1185_vm5, %v3029_v43, %v3036_v6  ;;  %v8364_v12 = vadd.f32 %v3027_v42, %v7594_v33  ;;  %v3112_v8 = vsel %vm2096_vm12, %v8361_v2, -inf  ;;  %v9043_v56 = vld [vmem:[#allocation63_spill] sm:$0xff] }
 0xb29   : > { %v6082_v49 = vpop.f32.mrb[64].mxu1 }
 0xb2a   : > { %v3040_v17 = vsel %vm1185_vm5, %v3037_v38, %v3039_v35  ;;  %v2975_v62 = vpop.f32.mrb[65].mxu1  ;;  %v3038_v48 = vsel %vm1185_vm5, %v3036_v6, %v3037_v38  ;;  %v3050_v45 = vrot.slane %v6082_v49, 2  ;;  %v9041_v6 = vld [vmem:[#allocation61_spill] sm:$0xff]  ;;  %v9044_v35 = vld [vmem:[#allocation64_spill] sm:$0xff] }
 0xb2b   : > { %v3047_v0 = vrot.slane %v2975_v62, 2  ;;  %v6083_v15 = vpop.f32.mrb[66].mxu1  ;;  %v8369_v50 = vadd.f32 %v3059_v16, %v9041_v6  ;;  %v9045_v49 = vld [vmem:[#allocation65_spill] sm:$0xff] }
 0xb2c   : > { %v2978_v18 = vpop.f32.mrb[67].mxu1  ;;  %v3081_v13 = vpop.xlane.xlu0 %3080 }
 0xb2d   : > { %v3048_v53 = vrot.slane %v2978_v18, 2  ;;  %v3060_v52 = vsel %vm1197_vm6, %v3040_v17, %v3047_v0  ;;  %v3133_v46 = vsub.f32 %v8280_v9, %v3081_v13  ;;  %v3115_v9 = vsel %vm2096_vm12, %v8364_v12, -inf }
 0xb2e   : > { %v3084_v39 = vpop.xlane.xlu1 %3083  ;;  %v3118_v61 = vsel %vm2096_vm12, %v8369_v50, -inf  ;;  %v8379_v60 = vadd.f32 %v3060_v52, %v9043_v56 }
 0xb2f   : > { %v3049_v7 = vsel %vm1197_vm6, %v3047_v0, %v3048_v53  ;;  %v3051_v5 = vsel %vm1197_vm6, %v3048_v53, %v3050_v45  ;;  %v3134_v41 = vsub.f32 %v8283_v4, %v3084_v39  ;;  %v3151_v37 = vmul.f32 1.442695, %v3133_v46  ;;  %v9042_v4 = vld [vmem:[#allocation62_spill] sm:$0xff] }
 0xb30   : > { %v8374_v43 = vadd.f32 %v3038_v48, %v9042_v4  ;;  %v8384_v38 = vadd.f32 %v3049_v7, %v9044_v35  ;;  %v3124_v16 = vsel %vm2096_vm12, %v8379_v60, -inf  ;;  %v8389_v17 = vadd.f32 %v3051_v5, %v9045_v49 }
 0xb31   : > { %v3153_v54 = vmul.f32 1.442695, %v3134_v41  ;;  %6425 = vpow2.f32 %v3151_v37 }
 0xb32   : > { %v3121_v42 = vsel %vm2096_vm12, %v8374_v43, -inf  ;;  %v3127_v62 = vsel %vm2096_vm12, %v8384_v38, -inf  ;;  %v3130_v0 = vsel %vm2096_vm12, %v8389_v17, -inf }
 0xb33   : > { %6427 = vpow2.f32 %v3153_v54 }
 0xb34   : > { %3407 = vrot.lane.b32.xlu1 %v8270_v19, %s7030_s26  ;;  %s5382_s26 = scalar_lea.vmem [#allocation29], %s7001_s7 }
 0xb38   : > { %3468 = vrot.lane.b32.xlu1 %v8270_v19, %s7032_s4 }
 0xb3b   : > { %v8393_v48 = vpop.eup %6425 }
 0xb3c   : > { %v3187_v18 = vsel %vm2096_vm12, %v8393_v48, 0.0 }
 0xb3d   : > { %v8397_v15 = vpop.eup %6427 }
 0xb3e   : > { %3346 = vrot.lane.b32.xlu0 %v8270_v19, %s7031_s19  ;;  %v3190_v45 = vsel %vm2096_vm12, %v8397_v15, 0.0  ;;  %s5384_s19 = scalar_lea.vmem [#allocation31], %s7001_s7  ;;  %s377_s7 = sadd.s32 1, %s7001_s7  }
 0xb3f   : > { %p374_p12 = scmp.ge.s32.totalorder %s377_s7, 12  }
 0xb40   :  { %s7047_s4 = smov (%p374_p12), [#allocation32]  }
 0xb5c   : > { %3113 = vmax.xlane.f32.xlu1 %v3112_v8 }
 0xb5d   : > { %3116 = vmax.xlane.f32.xlu0 %v3115_v9 }
 0xb60   : > { %3119 = vmax.xlane.f32.xlu1 %v3118_v61 }
 0xb61   : > { %3122 = vmax.xlane.f32.xlu0 %v3121_v42 }
 0xb64   : > { %3125 = vmax.xlane.f32.xlu1 %v3124_v16 }
 0xb65   : > { %3128 = vmax.xlane.f32.xlu0 %v3127_v62 }
 0xb68   : > { %3131 = vmax.xlane.f32.xlu1 %v3130_v0 }
 0xb69   : > { %3188 = vadd.xlane.f32.xlu0 %v3187_v18 }
 0xb6c   : > { %3191 = vadd.xlane.f32.xlu1 %v3190_v45 }
 0xba2   : > { %v3087_v53 = vpop.xlane.xlu1 %3086 }
 0xba3   : > { %v3135_v52 = vsub.f32 %v8291_v55, %v3087_v53 }
 0xba4   : > { %v3090_v7 = vpop.xlane.xlu0 %3089 }
 0xba5   : > { %v3155_v5 = vmul.f32 1.442695, %v3135_v52  ;;  %v3136_v13 = vsub.f32 %v8298_v57, %v3090_v7 }
 0xba7   : > { %6429 = vpow2.f32 %v3155_v5  ;;  %v3157_v46 = vmul.f32 1.442695, %v3136_v13 }
 0xba8   : > { %v3096_v39 = vpop.xlane.xlu1 %3095  ;;  %v3093_v41 = vpop.xlane.xlu0 %3092 }
 0xba9   : > { %6431 = vpow2.f32 %v3157_v46  ;;  %v3138_v37 = vsub.f32 %v8309_v10, %v3096_v39  ;;  %v3137_v54 = vsub.f32 %v8304_v36, %v3093_v41 }
 0xbab   : > { %v3161_v8 = vmul.f32 1.442695, %v3138_v37  ;;  %v3159_v6 = vmul.f32 1.442695, %v3137_v54 }
 0xbac   : > { %v3108_v9 = vpop.xlane.xlu1 %3107 }
 0xbad   : > { %6433 = vpow2.f32 %v3161_v8  ;;  %v3142_v4 = vsub.f32 %v8316_v51, %v3108_v9  ;;  %v3111_v55 = vpop.xlane.xlu0 %3110 }
 0xbae   : > { %6435 = vpow2.f32 %v3159_v6  ;;  %v3143_v61 = vsub.f32 %v8319_v11, %v3111_v55 }
 0xbaf   : > { %v3169_v57 = vmul.f32 1.442695, %v3142_v4 }
 0xbb0   : > { %v3171_v56 = vmul.f32 1.442695, %v3143_v61  ;;  %v3102_v42 = vpop.xlane.xlu1 %3101 }
 0xbb1   : > { %v8409_v35 = vpop.eup %6429  ;;  %6437 = vpow2.f32 %v3169_v57  ;;  %v3140_v10 = vsub.f32 %v8332_v47, %v3102_v42  ;;  %v3099_v16 = vpop.xlane.xlu0 %3098 }
 0xbb2   : > { %6439 = vpow2.f32 %v3171_v56  ;;  %v3139_v36 = vsub.f32 %v8328_v44, %v3099_v16  ;;  %v3193_v49 = vsel %vm2096_vm12, %v8409_v35, 0.0 }
 0xbb3   : > { %v8415_v51 = vpop.eup %6431  ;;  %v3165_v62 = vmul.f32 1.442695, %v3140_v10  ;;  %3194 = vadd.xlane.f32.xlu0 %v3193_v49 }
 0xbb4   : > { %v3163_v11 = vmul.f32 1.442695, %v3139_v36  ;;  %v8417_v0 = vpop.permute.xlu1 %3407  ;;  %v3196_v18 = vsel %vm2096_vm12, %v8415_v51, 0.0 }
 0xbb5   : > { %6441 = vpow2.f32 %v3165_v62  ;;  %6096 = vmatprep.subr.bf16.mxu0 %v8417_v0  ;;  %3197 = vadd.xlane.f32.xlu1 %v3196_v18  ;;  %v3105_v47 = vpop.xlane.xlu0 %3104 }
 0xbb6   : > { %6443 = vpow2.f32 %v3163_v11  ;;  %v3141_v44 = vsub.f32 %v8339_v34, %v3105_v47 }
 0xbb7   : > { %v8423_v45 = vpop.eup %6433 }
 0xbb8   : > { %v8425_v53 = vpop.eup %6435  ;;  %v3167_v52 = vmul.f32 1.442695, %v3141_v44  ;;  %v3202_v7 = vsel %vm2096_vm12, %v8423_v45, 0.0  ;;  %v8433_v39 = vpop.permute.xlu1 %3468 }
 0xbb9   : > { %3203 = vadd.xlane.f32.xlu1 %v3202_v7  ;;  %v3199_v5 = vsel %vm2096_vm12, %v8425_v53, 0.0  ;;  %v3347_v13 = vpop.permute.xlu0 %3346 }
 0xbba   : > { %6445 = vpow2.f32 %v3167_v52  ;;  %3200 = vadd.xlane.f32.xlu0 %v3199_v5  ;;  %6090 = vmatprep.subr.bf16.mxu1 %v3347_v13 }
 0xbbb   : > { %v8431_v46 = vpop.eup %6437  ;;  %6091 = vmatpush3.bf16.msra.mxu1 %v3347_v13 }
 0xbbc   : > { %v8435_v34 = vpop.eup %6439  ;;  %6102 = vmatprep.subr.bf16.mxu1 %v8433_v39  ;;  %v3214_v41 = vsel %vm2096_vm12, %v8431_v46, 0.0 }
 0xbbd   : > { %3215 = vadd.xlane.f32.xlu1 %v3214_v41  ;;  %v3217_v37 = vsel %vm2096_vm12, %v8435_v34, 0.0 }
 0xbbe   : > { %3218 = vadd.xlane.f32.xlu0 %v3217_v37 }
 0xbbf   : > { %v8442_v54 = vpop.eup %6441 }
 0xbc0   : > { %v8444_v8 = vpop.eup %6443  ;;  %v3208_v6 = vsel %vm2096_vm12, %v8442_v54, 0.0 }
 0xbc1   : > { %3209 = vadd.xlane.f32.xlu1 %v3208_v6  ;;  %v3205_v9 = vsel %vm2096_vm12, %v8444_v8, 0.0 }
 0xbc2   : > { %3206 = vadd.xlane.f32.xlu0 %v3205_v9 }
 0xbc4   : > { %v8450_v4 = vpop.eup %6445 }
 0xbc5   : > { %v3211_v55 = vsel %vm2096_vm12, %v8450_v4, 0.0 }
 0xbc6   : > { %3212 = vadd.xlane.f32.xlu0 %v3211_v55 }
 0xbd2   : > { %3590 = vrot.lane.b32.xlu1 %v8270_v19, %s7034_s21 }
 0xbdc   : > { %3529 = vrot.lane.b32.xlu0 %v8270_v19, %s7033_s28  ;;  %s5453_s28 = sshll.u32 (%p374_p12), %s7047_s4, 4  ;;  %s5454_s28 = int_to_ptr.vmem [resolvable:$true] %s5453_s28 }
 0xbdd   :  { %s6927_s21 = scalar_lea.vmem (%p374_p12), %s5454_s28, 32  ;;  %p6932_p0 = scmp.lt.s32.totalorder (%p374_p12), %s5454_s28, %s5454_s28 }
 0xbde   :  { %p6928_p13 = scmp.ne.s32.totalorder (%p374_p12), %s5454_s28, %s6927_s21  ;;  %p6933_p1 = scmp.lt.s32.totalorder (%p374_p12), %s6927_s21, %s6927_s21 }
 0xbe0   :  { %p6934_p2 = por (%p374_p12), %p6933_p1, %p6932_p0 }
 0xbe2   :  { %p6935_p3 = pnand (%p374_p12), %p6934_p2, %p6928_p13 }
 0xbe9   : > { %v3114_v61 = vpop.xlane.xlu1 %3113 }
 0xbea   : > { %v3144_v57 = vsub.f32 %v8361_v2, %v3114_v61  ;;  %v3117_v56 = vpop.xlane.xlu0 %3116 }
 0xbeb   : > { %v3145_v42 = vsub.f32 %v8364_v12, %v3117_v56 }
 0xbec   : > { %v3173_v10 = vmul.f32 1.442695, %v3144_v57 }
 0xbed   : > { %v3175_v16 = vmul.f32 1.442695, %v3145_v42  ;;  %v3120_v36 = vpop.xlane.xlu1 %3119 }
 0xbee   : > { %6447 = vpow2.f32 %v3173_v10  ;;  %v3146_v49 = vsub.f32 %v8369_v50, %v3120_v36  ;;  %v3123_v62 = vpop.xlane.xlu0 %3122 }
 0xbef   : > { %6449 = vpow2.f32 %v3175_v16  ;;  %v3147_v11 = vsub.f32 %v8374_v43, %v3123_v62 }
 0xbf0   : > { %v3177_v18 = vmul.f32 1.442695, %v3146_v49 }
 0xbf1   : > { %v3179_v47 = vmul.f32 1.442695, %v3147_v11  ;;  %v3126_v44 = vpop.xlane.xlu1 %3125 }
 0xbf2   : > { %6451 = vpow2.f32 %v3177_v18  ;;  %v3148_v52 = vsub.f32 %v8379_v60, %v3126_v44  ;;  %v3129_v2 = vpop.xlane.xlu0 %3128 }
 0xbf3   : > { %6453 = vpow2.f32 %v3179_v47  ;;  %v3149_v12 = vsub.f32 %v8384_v38, %v3129_v2 }
 0xbf4   : > { %v3181_v7 = vmul.f32 1.442695, %v3148_v52 }
 0xbf5   : > { %v3183_v5 = vmul.f32 1.442695, %v3149_v12  ;;  %v3132_v13 = vpop.xlane.xlu1 %3131 }
 0xbf6   : > { %6455 = vpow2.f32 %v3181_v7  ;;  %v3150_v50 = vsub.f32 %v8389_v17, %v3132_v13  ;;  %v3189_v41 = vpop.xlane.xlu0 %3188 }
 0xbf7   : > { %6457 = vpow2.f32 %v3183_v5 }
 0xbf8   : > { %v8465_v37 = vpop.eup %6447  ;;  %v3185_v43 = vmul.f32 1.442695, %v3150_v50  ;;  %6459 = vrcp.f32 %v3189_v41 }
 0xbf9   : > { %v8467_v6 = vpop.eup %6449  ;;  %v3192_v9 = vpop.xlane.xlu1 %3191  ;;  %v3220_v60 = vsel %vm2096_vm12, %v8465_v37, 0.0 }
 0xbfa   : > { %6461 = vpow2.f32 %v3185_v43  ;;  %3221 = vadd.xlane.f32.xlu1 %v3220_v60  ;;  %v3223_v38 = vsel %vm2096_vm12, %v8467_v6, 0.0 }
 0xbfb   : > { %6463 = vrcp.f32 %v3192_v9  ;;  %3224 = vadd.xlane.f32.xlu0 %v3223_v38 }
 0xbfc   : > { %v8473_v17 = vpop.eup %6451 }
 0xbfd   : > { %v8475_v55 = vpop.eup %6453  ;;  %v3226_v61 = vsel %vm2096_vm12, %v8473_v17, 0.0 }
 0xbfe   : > { %3227 = vadd.xlane.f32.xlu1 %v3226_v61  ;;  %v3229_v57 = vsel %vm2096_vm12, %v8475_v55, 0.0 }
 0xbff   : > { %3230 = vadd.xlane.f32.xlu0 %v3229_v57 }
 0xc00   : > { %v8481_v56 = vpop.eup %6455 }
 0xc01   : > { %v8483_v42 = vpop.eup %6457  ;;  %v3232_v10 = vsel %vm2096_vm12, %v8481_v56, 0.0 }
 0xc02   : > { %3233 = vadd.xlane.f32.xlu1 %v3232_v10  ;;  %v3235_v16 = vsel %vm2096_vm12, %v8483_v42, 0.0  ;;  %v6460_v36 = vpop.eup %6459 }
 0xc03   : > { %3236 = vadd.xlane.f32.xlu0 %v3235_v16  ;;  %v3242_v18 = vmul.f32 %v6460_v36, %v8393_v48 }
 0xc04   : > { %v8489_v49 = vpop.eup %6461 }
 0xc05   : > { %v6464_v62 = vpop.eup %6463  ;;  %v3238_v11 = vsel %vm2096_vm12, %v8489_v49, 0.0 }
 0xc06   : > { %3239 = vadd.xlane.f32.xlu1 %v3238_v11  ;;  %v3244_v47 = vmul.f32 %v6464_v62, %v8397_v15 }
 0xc08   : > { %v3277_v44 = vpack.c.bf16 %v3244_v47, %v3242_v18 }
 0xc0a   : > { %6086 = vmatprep.mubr.msk.bf16.mxu0 %vm2096_vm12, %v3277_v44 }
 0xc17   : > { %3712 = vrot.lane.b32.xlu1 %v8270_v19, %s7036_s2 }
 0xc19   : > { %3651 = vrot.lane.b32.xlu0 %v8270_v19, %s7035_s16 }
 0xc40   : > { %v3195_v52 = vpop.xlane.xlu0 %3194 }
 0xc41   : > { %6465 = vrcp.f32 %v3195_v52 }
 0xc42   : > { %v3198_v2 = vpop.xlane.xlu1 %3197 }
 0xc43   : > { %6467 = vrcp.f32 %v3198_v2 }
 0xc46   : > { %v3204_v12 = vpop.xlane.xlu1 %3203 }
 0xc47   : > { %6469 = vrcp.f32 %v3204_v12  ;;  %v3201_v7 = vpop.xlane.xlu0 %3200 }
 0xc48   : > { %6471 = vrcp.f32 %v3201_v7 }
 0xc4a   : > { %v3216_v48 = vpop.xlane.xlu1 %3215 }
 0xc4b   : > { %v6466_v5 = vpop.eup %6465  ;;  %v3219_v15 = vpop.xlane.xlu0 %3218 }
 0xc4c   : > { %v3246_v50 = vmul.f32 %v6466_v5, %v8409_v35 }
 0xc4d   : > { %v6468_v13 = vpop.eup %6467 }
 0xc4e   : > { %v3248_v41 = vmul.f32 %v6468_v13, %v8415_v51  ;;  %v3210_v43 = vpop.xlane.xlu1 %3209 }
 0xc4f   : > { %6473 = vrcp.f32 %v3210_v43  ;;  %v3207_v9 = vpop.xlane.xlu0 %3206 }
 0xc50   : > { %6475 = vrcp.f32 %v3207_v9  ;;  %v3278_v19 = vpack.c.bf16 %v3248_v41, %v3246_v50 }
 0xc51   : > { %v6470_v60 = vpop.eup %6469  ;;  %6477 = vrcp.f32 %v3216_v48 }
 0xc52   : > { %v6472_v38 = vpop.eup %6471  ;;  %v3252_v61 = vmul.f32 %v6470_v60, %v8423_v45  ;;  %6087 = vmatmul.mubr.msk.bf16.vlgmr.msra.gmra.mrb[56].mxu0 %vm2096_vm12, %v3278_v19  ;;  %v3342_v16 = vrot.slane %v3278_v19, 1 }
 0xc53   : > { %v3250_v57 = vmul.f32 %v6472_v38, %v8425_v53  ;;  %6097 = vmatpush3.bf16.msra.mxu0 %v8417_v0  ;;  %v3213_v10 = vpop.xlane.xlu0 %3212  ;;  %v3591_v53 = vpop.permute.xlu1 %3590 }
 0xc54   : > { %6479 = vrcp.f32 %v3213_v10 }
 0xc55   : > { %v3279_v35 = vpack.c.bf16 %v3252_v61, %v3250_v57  ;;  %6481 = vrcp.f32 %v3219_v15 }
 0xc57   : > { %v3530_v51 = vpop.permute.xlu0 %3529  ;;  %v3343_v36 = vrot.slane %v3279_v35, 1  ;;  %v3404_v7 = vrot.slane %v3279_v35, 2 }
 0xc58   : > { %6108 = vmatprep.subr.bf16.mxu0 %v3530_v51 }
 0xc59   : > { %v6474_v62 = vpop.eup %6473  ;;  %v3344_v11 = vsel %vm1531_vm7, %v3342_v16, %v3343_v36 }
 0xc5a   : > { %v6476_v18 = vpop.eup %6475  ;;  %v3256_v45 = vmul.f32 %v6474_v62, %v8442_v54  ;;  %6092 = vmatprep.mubr.msk.bf16.mxu1 %vm2096_vm12, %v3344_v11 }
 0xc5b   : > { %v3254_v47 = vmul.f32 %v6476_v18, %v8444_v8  ;;  %6093 = vmatmul.mubr.msk.bf16.vlgmr.msra.gmra.mrb[68].mxu1 %vm2096_vm12, %v3343_v36  ;;  %v6478_v0 = vpop.eup %6477 }
 0xc5c   : > { %6103 = vmatpush3.bf16.msra.mxu1 %v8433_v39  ;;  %v3260_v2 = vmul.f32 %v6478_v0, %v8431_v46 }
 0xc5d   : > { %6114 = vmatprep.subr.bf16.mxu1 %v3591_v53  ;;  %v3280_v44 = vpack.c.bf16 %v3256_v45, %v3254_v47 }
 0xc5e   : > { %v6480_v52 = vpop.eup %6479 }
 0xc5f   : > { %v3258_v12 = vmul.f32 %v6480_v52, %v8450_v4  ;;  %v3405_v48 = vrot.slane %v3280_v44, 2  ;;  %v3465_v8 = vrot.slane %v3280_v44, 3  ;;  %v6482_v9 = vpop.eup %6481 }
 0xc60   : > { %v3262_v38 = vmul.f32 %v6482_v9, %v8435_v34 }
 0xc61   : > { %v3406_v54 = vsel %vm1197_vm6, %v3404_v7, %v3405_v48  ;;  %v3281_v5 = vpack.c.bf16 %v3260_v2, %v3258_v12 }
 0xc62   : > { %6098 = vmatprep.mubr.msk.bf16.mxu0 %vm2096_vm12, %v3406_v54 }
 0xc63   : > { %6099 = vmatmul.mubr.msk.bf16.vlgmr.msra.gmra.mrb[60].mxu0 %vm2096_vm12, %v3405_v48  ;;  %v3466_v13 = vrot.slane %v3281_v5, 3  ;;  %v3526_v11 = vrot.slane %v3281_v5, 4 }
 0xc64   : > { %6109 = vmatpush3.bf16.msra.mxu0 %v3530_v51 }
 0xc65   : > { %v3467_v39 = vsel %vm1667_vm8, %v3465_v8, %v3466_v13 }
 0xc66   : > { %6104 = vmatprep.mubr.msk.bf16.mxu1 %vm2096_vm12, %v3467_v39 }
 0xc67   : > { %6105 = vmatmul.mubr.msk.bf16.vlgmr.msra.gmra.mrb[72].mxu1 %vm2096_vm12, %v3466_v13 }
 0xc68   : > { %6115 = vmatpush3.bf16.msra.mxu1 %v3591_v53 }
 0xc87   : > { %v3222_v46 = vpop.xlane.xlu1 %3221 }
 0xc88   : > { %6483 = vrcp.f32 %v3222_v46  ;;  %v3225_v4 = vpop.xlane.xlu0 %3224 }
 0xc89   : > { %6485 = vrcp.f32 %v3225_v4 }
 0xc8b   : > { %v3228_v50 = vpop.xlane.xlu1 %3227 }
 0xc8c   : > { %6487 = vrcp.f32 %v3228_v50  ;;  %v3231_v41 = vpop.xlane.xlu0 %3230 }
 0xc8d   : > { %6489 = vrcp.f32 %v3231_v41 }
 0xc8f   : > { %v3234_v43 = vpop.xlane.xlu1 %3233 }
 0xc90   : > { %6491 = vrcp.f32 %v3234_v43  ;;  %v3237_v19 = vpop.xlane.xlu0 %3236 }
 0xc91   : > { %6493 = vrcp.f32 %v3237_v19 }
 0xc92   : > { %v6484_v60 = vpop.eup %6483 }
 0xc93   : > { %v3264_v61 = vmul.f32 %v6484_v60, %v8465_v37  ;;  %v3240_v57 = vpop.xlane.xlu1 %3239  ;;  %v6486_v15 = vpop.eup %6485 }
 0xc94   : > { %6495 = vrcp.f32 %v3240_v57  ;;  %v3652_v10 = vpop.permute.xlu0 %3651  ;;  %v3266_v16 = vmul.f32 %v6486_v15, %v8467_v6 }
 0xc95   : > { %6120 = vmatprep.subr.bf16.mxu0 %v3652_v10  ;;  %v3282_v35 = vpack.c.bf16 %v3264_v61, %v3262_v38 }
 0xc96   : > { %v6488_v51 = vpop.eup %6487 }
 0xc97   : > { %v3268_v36 = vmul.f32 %v6488_v51, %v8473_v17  ;;  %v3713_v62 = vpop.permute.xlu1 %3712  ;;  %v3527_v18 = vrot.slane %v3282_v35, 4  ;;  %v6490_v45 = vpop.eup %6489  ;;  %v3587_v6 = vrot.slane %v3282_v35, 5 }
 0xc98   : > { %6126 = vmatprep.subr.bf16.mxu1 %v3713_v62  ;;  %v3270_v0 = vmul.f32 %v6490_v45, %v8475_v55 }
 0xc99   : > { %v3528_v34 = vsel %vm1185_vm5, %v3526_v11, %v3527_v18  ;;  %v3283_v47 = vpack.c.bf16 %v3268_v36, %v3266_v16 }
 0xc9a   : > { %v6492_v37 = vpop.eup %6491  ;;  %6110 = vmatprep.mubr.msk.bf16.mxu0 %vm2096_vm12, %v3528_v34 }
 0xc9b   : > { %v3272_v53 = vmul.f32 %v6492_v37, %v8481_v56  ;;  %6111 = vmatmul.mubr.msk.bf16.vlgmr.msra.gmra.mrb[64].mxu0 %vm2096_vm12, %v3527_v18  ;;  %v3588_v44 = vrot.slane %v3283_v47, 5  ;;  %v6494_v17 = vpop.eup %6493  ;;  %v3648_v7 = vrot.slane %v3283_v47, 6  ;;  %v6346_v37 = vld [vmem:[%s2275_s0 + $0x8] sm:$0xff]  }
 0xc9c   : > { %6121 = vmatpush3.bf16.msra.mxu0 %v3652_v10  ;;  %v3274_v55 = vmul.f32 %v6494_v17, %v8483_v42 }
 0xc9d   : > { %v3589_v52 = vsel %vm1801_vm9, %v3587_v6, %v3588_v44  ;;  %v3284_v2 = vpack.c.bf16 %v3272_v53, %v3270_v0 }
 0xc9e   : > { %v6496_v12 = vpop.eup %6495  ;;  %6116 = vmatprep.mubr.msk.bf16.mxu1 %vm2096_vm12, %v3589_v52 }
 0xc9f   : > { %6117 = vmatmul.mubr.msk.bf16.vlgmr.msra.gmra.mrb[76].mxu1 %vm2096_vm12, %v3588_v44  ;;  %v3649_v48 = vrot.slane %v3284_v2, 6  ;;  %v3276_v56 = vmul.f32 %v6496_v12, %v8489_v49  ;;  %v3709_v8 = vrot.slane %v3284_v2, 7  ;;  %v3902_v44 = vsel %vm423_vm0, %v6346_v37, 0 }
 0xca0   : > { %6127 = vmatpush3.bf16.msra.mxu1 %v3713_v62  ;;  %v6345_v62 = vld [vmem:[%s2275_s0] sm:$0xff]  }
 0xca1   : > { %v3650_v54 = vsel %vm1173_vm4, %v3648_v7, %v3649_v48  ;;  %v3285_v5 = vpack.c.bf16 %v3276_v56, %v3274_v55  ;;  %6182 = vmatprep.subr.msk.bf16.mxu0 %vm423_vm0, %v6345_v62  ;;  %v3899_v11 = vsel %vm423_vm0, %v6345_v62, 0 }
 0xca2   : > { %6122 = vmatprep.mubr.msk.bf16.mxu0 %vm2096_vm12, %v3650_v54 }
 0xca3   : > { %6123 = vmatmul.mubr.msk.bf16.vlgmr.msra.gmra.mrb[68].mxu0 %vm2096_vm12, %v3649_v48  ;;  %v3710_v13 = vrot.slane %v3285_v5, 7 }
 0xca5   : > { %v3711_v39 = vsel %vm1477_vm2, %v3709_v8, %v3710_v13  ;;  %6133 = vmatpush3.bf16.xpose.msra.mxu0 %v3899_v11 }
 0xca6   : > { %6128 = vmatprep.mubr.msk.bf16.mxu1 %vm2096_vm12, %v3711_v39  ;;  %6183 = vmatprep.subr.msk.bf16.mxu0 %vm423_vm0, %v6346_v37 }
 0xca7   : > { %6129 = vmatmul.mubr.msk.bf16.vlgmr.msra.gmra.mrb[80].mxu1 %vm2096_vm12, %v3710_v13 }
 0xcad   : > { %6135 = vmatpush3.bf16.xpose.msra.mxu0 %v3902_v44 }
 0xd25   : > { %v8540_v46 = vpop.f32.mrb[56].mxu0 }
 0xd26   : > { %v8542_v42 = vpop.f32.mrb[57].mxu0 }
 0xd27   : > { %v6089_v49 = vpop.f32.mrb[58].mxu0 }
 0xd28   : > { %v8544_v4 = vpop.f32.mrb[59].mxu0 }
 0xd2e   : > { %v6094_v50 = vpop.f32.mrb[68].mxu1 }
 0xd2f   : > { %3776 = vrot.lane.b32.xlu1 %v6094_v50, %s7037_s10  ;;  %v3389_v41 = vpop.f32.mrb[69].mxu1 }
 0xd30   : > { %v6095_v43 = vpop.f32.mrb[70].mxu1 }
 0xd31   : > { %v3392_v9 = vpop.f32.mrb[71].mxu1 }
 0xd32   : > { %v6296_v19 = vpack.i.bf16 %v3392_v9, %v3389_v41 }
 0xd34   : > { %6297 = vrot.lane.b32.xlu0 %v6296_v19, %s7037_s10 }
 0xd36   : > { %v6100_v60 = vpop.f32.mrb[60].mxu0 }
 0xd37   : > { %3788 = vrot.lane.b32.xlu1 %v6100_v60, %s7038_s3  ;;  %v3450_v38 = vpop.f32.mrb[61].mxu0 }
 0xd38   : > { %v6101_v61 = vpop.f32.mrb[62].mxu0 }
 0xd39   : > { %v3453_v57 = vpop.f32.mrb[63].mxu0 }
 0xd3a   : > { %v6301_v15 = vpack.i.bf16 %v3453_v57, %v3450_v38  ;;  %v6106_v10 = vpop.f32.mrb[72].mxu1 }
 0xd3b   : > { %3800 = vrot.lane.b32.xlu1 %v6106_v10, %s7039_s27  ;;  %v3511_v35 = vpop.f32.mrb[73].mxu1 }
 0xd3c   : > { %6302 = vrot.lane.b32.xlu0 %v6301_v15, %s7038_s3  ;;  %v6107_v51 = vpop.f32.mrb[74].mxu1 }
 0xd3d   : > { %v3514_v16 = vpop.f32.mrb[75].mxu1 }
 0xd3e   : > { %v6306_v36 = vpack.i.bf16 %v3514_v16, %v3511_v35 }
 0xd40   : > { %6307 = vrot.lane.b32.xlu0 %v6306_v36, %s7039_s27 }
 0xd6e   : > { %v6112_v18 = vpop.f32.mrb[64].mxu0 }
 0xd6f   : > { %3812 = vrot.lane.b32.xlu1 %v6112_v18, %s7040_s11  ;;  %v3572_v45 = vpop.f32.mrb[65].mxu0 }
 0xd70   : > { %v6113_v34 = vpop.f32.mrb[66].mxu0 }
 0xd71   : > { %v3575_v47 = vpop.f32.mrb[67].mxu0 }
 0xd72   : > { %v6311_v0 = vpack.i.bf16 %v3575_v47, %v3572_v45  ;;  %v6118_v53 = vpop.f32.mrb[76].mxu1 }
 0xd73   : > { %3824 = vrot.lane.b32.xlu1 %v6118_v53, %s7041_s22  ;;  %v3633_v6 = vpop.f32.mrb[77].mxu1 }
 0xd74   : > { %6312 = vrot.lane.b32.xlu0 %v6311_v0, %s7040_s11  ;;  %v6119_v17 = vpop.f32.mrb[78].mxu1 }
 0xd75   : > { %v3636_v52 = vpop.f32.mrb[79].mxu1 }
 0xd76   : > { %v6316_v2 = vpack.i.bf16 %v3636_v52, %v3633_v6  ;;  %v6124_v12 = vpop.f32.mrb[68].mxu0 }
 0xd77   : > { %3836 = vrot.lane.b32.xlu1 %v6124_v12, %s7042_s8  ;;  %v3694_v7 = vpop.f32.mrb[69].mxu0 }
 0xd78   : > { %6317 = vrot.lane.b32.xlu0 %v6316_v2, %s7041_s22  ;;  %v6125_v48 = vpop.f32.mrb[70].mxu0 }
 0xd79   : > { %v3697_v55 = vpop.f32.mrb[71].mxu0 }
 0xd7a   : > { %v6321_v56 = vpack.i.bf16 %v3697_v55, %v3694_v7  ;;  %v6130_v54 = vpop.f32.mrb[80].mxu1 }
 0xd7b   : > { %v3755_v5 = vpop.f32.mrb[81].mxu1  ;;  %3848 = vrot.lane.b32.xlu1 %v6130_v54, %s7043_s12 }
 0xd7c   : > { %v6131_v8 = vpop.f32.mrb[82].mxu1  ;;  %6322 = vrot.lane.b32.xlu0 %v6321_v56, %s7042_s8 }
 0xd7d   : > { %v3758_v13 = vpop.f32.mrb[83].mxu1 }
 0xd7e   : > { %v6326_v39 = vpack.i.bf16 %v3758_v13, %v3755_v5 }
 0xd80   : > { %6327 = vrot.lane.b32.xlu0 %v6326_v39, %s7043_s12 }
 0xda1   : > { %v3777_v49 = vpop.permute.xlu1 %3776 }
 0xda2   : > { %v3855_v36 = vsel %vm629_vm1, %v8540_v46, %v3777_v49 }
 0xda6   : > { %v6298_v41 = vpop.permute.xlu0 %6297 }
 0xda7   : > { %v6300_v57 = vunpack.i.h.bf16 %v6298_v41  ;;  %v6299_v15 = vunpack.i.l.bf16 %v6298_v41 }
 0xda9   : > { %v3789_v50 = vpop.permute.xlu1 %3788  ;;  %v3854_v62 = vsel %vm629_vm1, %v8544_v4, %v6300_v57  ;;  %v3853_v45 = vsel %vm629_vm1, %v8542_v42, %v6299_v15  ;;  %vm9046_vm1 = vcmask 228352  }
 0xdaa   : > { %v3858_v34 = vsel %vm2088_vm10, %v3855_v36, %v3789_v50  ;;  %vm9047_vm4 = vmmov %vm9046_vm1 }
 0xdab   : > { %vm9048_vm5 = vmmov %vm9046_vm1 }
 0xdad   : > { %v3801_v9 = vpop.permute.xlu1 %3800 }
 0xdae   : > { %v6303_v43 = vpop.permute.xlu0 %6302  ;;  %v3861_v53 = vsel %vm2092_vm11, %v3858_v34, %v3801_v9 }
 0xdaf   : > { %v6304_v35 = vunpack.i.l.bf16 %v6303_v43  ;;  %v6305_v16 = vunpack.i.h.bf16 %v6303_v43 }
 0xdb1   : > { %v3856_v6 = vsel %vm2088_vm10, %v3853_v45, %v6304_v35  ;;  %v3857_v46 = vsel %vm2088_vm10, %v3854_v62, %v6305_v16 }
 0xdb2   : > { %v6308_v60 = vpop.permute.xlu0 %6307 }
 0xdb3   : > { %v6310_v11 = vunpack.i.h.bf16 %v6308_v60  ;;  %v6309_v18 = vunpack.i.l.bf16 %v6308_v60 }
 0xdb5   : > { %v3859_v12 = vsel %vm2092_vm11, %v3856_v6, %v6309_v18  ;;  %v3860_v42 = vsel %vm2092_vm11, %v3857_v46, %v6310_v11 }
 0xde1   : > { %v3813_v19 = vpop.permute.xlu1 %3812 }
 0xde2   : > { %v3864_v4 = vsel %vm2096_vm12, %v3861_v53, %v3813_v19 }
 0xde5   : > { %v3825_v38 = vpop.permute.xlu1 %3824 }
 0xde6   : > { %v6313_v61 = vpop.permute.xlu0 %6312  ;;  %v3867_v7 = vsel %vm2100_vm13, %v3864_v4, %v3825_v38 }
 0xde7   : > { %v6315_v47 = vunpack.i.h.bf16 %v6313_v61  ;;  %v6314_v37 = vunpack.i.l.bf16 %v6313_v61  ;;  %v5610_v61 = vld [vmem:[%s2280_s24] ss:$0 sm:$0xff] }
 0xde9   : > { %v3837_v51 = vpop.permute.xlu1 %3836  ;;  %v3862_v55 = vsel %vm2096_vm12, %v3859_v12, %v6314_v37  ;;  %v3863_v56 = vsel %vm2096_vm12, %v3860_v42, %v6315_v47 }
 0xdea   : > { %v6318_v10 = vpop.permute.xlu0 %6317  ;;  %v3870_v54 = vsel %vm2104_vm14, %v3867_v7, %v3837_v51  ;;  %v4021_v7 = vld [vmem:[%s8616_s20] sm:$0xff] }
 0xdeb   : > { %v6320_v44 = vunpack.i.h.bf16 %v6318_v10  ;;  %v6319_v17 = vunpack.i.l.bf16 %v6318_v10 }
 0xded   : > { %v3849_v48 = vpop.permute.xlu1 %3848  ;;  %v3865_v8 = vsel %vm2100_vm13, %v3862_v55, %v6319_v17  ;;  %v3866_v13 = vsel %vm2100_vm13, %v3863_v56, %v6320_v44  ;;  %v4022_v55 = vld [vmem:[%s8616_s20 + $0x8] sm:$0xff] }
 0xdee   : > { %v6323_v0 = vpop.permute.xlu0 %6322  ;;  %v3873_v50 = vsel %vm9046_vm1, %v3870_v54, %v3849_v48  ;;  %v4029_v48 = vld [vmem:[%s8616_s20 + $0x40] sm:$0xff]  ;;  %v4030_v54 = vld [vmem:[%s8616_s20 + $0x48] sm:$0xff] }
 0xdef   : > { %v6325_v52 = vunpack.i.h.bf16 %v6323_v0  ;;  %v6324_v2 = vunpack.i.l.bf16 %v6323_v0  ;;  %v3875_v38 = vpack.c.bf16 %v3873_v50, %v3873_v50  ;;  %v5621_v56 = vcombine.high %v4021_v7, %v4029_v48  ;;  %v4038_v50 = vld [vmem:[%s8616_s20 + $0x88] sm:$0xff] }
 0xdf1   : > { %v3868_v41 = vsel %vm2104_vm14, %v3865_v8, %v6324_v2  ;;  %v3869_v43 = vsel %vm2104_vm14, %v3866_v13, %v6325_v52  ;;  %v5622_v8 = vcombine.low %v4022_v55, %v4030_v54  ;;  %v5623_v13 = vcombine.high %v4022_v55, %v4030_v54  ;;  %4305 = vmatprep.subr.bf16.mxu1 %v5621_v56  ;;  %v4040_v54 = vld [vmem:[%s8616_s20 + $0x98] sm:$0xff] }
 0xdf2   : > { %v6328_v5 = vpop.permute.xlu0 %6327 }
 0xdf3   : > { %v6330_v39 = vunpack.i.h.bf16 %v6328_v5  ;;  %v6329_v49 = vunpack.i.l.bf16 %v6328_v5  ;;  %v5620_v5 = vcombine.low %v4021_v7, %v4029_v48  ;;  %4356 = vmatprep.subr.bf16.mxu0 %v5623_v13  ;;  %v4039_v48 = vld [vmem:[%s8616_s20 + $0x90] sm:$0xff]  ;;  %v4025_v13 = vld [vmem:[%s8616_s20 + $0x20] sm:$0xff] }
 0xdf5   : > { %v3871_v9 = vsel %vm9047_vm4, %v3868_v41, %v6329_v49  ;;  %v3872_v19 = vsel %vm9048_vm5, %v3869_v43, %v6330_v39  ;;  %4306 = vmatpush1.bf16.msra.mxu1 %v5620_v5  ;;  %v4037_v39 = vld [vmem:[%s8616_s20 + $0x80] sm:$0xff]  ;;  %v4046_v43 = vld [vmem:[%s8616_s20 + $0xc8] sm:$0xff]  ;;  %v4048_v5 = vld [vmem:[%s8616_s20 + $0xd8] sm:$0xff] }
 0xdf6   : > { %v3874_v60 = vpack.c.bf16 %v3872_v19, %v3871_v9  ;;  %v4045_v49 = vld [vmem:[%s8616_s20 + $0xc0] sm:$0xff]  ;;  %v5638_v19 = vcombine.low %v4038_v50, %v4046_v43 }
 0xdf7   : > { %v5637_v41 = vcombine.high %v4037_v39, %v4045_v49  ;;  %v5636_v9 = vcombine.low %v4037_v39, %v4045_v49  ;;  %v5643_v49 = vcombine.high %v4040_v54, %v4048_v5 }
 0xdf8   : > { %6136 = vmatprep.mubr.msk.bf16.mxu0 %vm423_vm0, %v3874_v60  ;;  %v5639_v60 = vcombine.high %v4038_v50, %v4046_v43  ;;  %v4033_v50 = vld [vmem:[%s8616_s20 + $0x60] sm:$0xff]  ;;  %v4034_v43 = vld [vmem:[%s8616_s20 + $0x68] sm:$0xff] }
 0xdf9   : > { %6137 = vmatmul.mubr.msk.bf16.vlgmr.msra.gmra.mrb[72].mxu0 %vm423_vm0, %v3875_v38  ;;  %4307 = vmatprep.subr.bf16.mxu1 %v5637_v41  ;;  %v4023_v38 = vld [vmem:[%s8616_s20 + $0x10] sm:$0xff]  ;;  %v4026_v41 = vld [vmem:[%s8616_s20 + $0x28] sm:$0xff] }
 0xdfa   : > { %4357 = vmatpush1.bf16.msra.mxu0 %v5622_v8  ;;  %4308 = vmatpush1.bf16.msra.mxu1 %v5636_v9  ;;  %v5642_v9 = vcombine.low %v4040_v54, %v4048_v5  ;;  %v4804_v54 = vld [vmem:[%s8697_s13 + $0x48] sm:$0xff] }
 0xdfb   : > { %4358 = vmatprep.subr.bf16.mxu0 %v5639_v60  ;;  %v5629_v60 = vcombine.high %v4025_v13, %v4033_v50 }
 0xdfe   : > { %4359 = vmatpush1.bf16.msra.mxu0 %v5638_v19 }
 0xecc   : > { %v6138_v57 = vpop.f32.mrb[72].mxu0 }
 0xecd   : > { %v3938_v15 = vpop.f32.mrb[73].mxu0  ;;  %v3947_v10 = vadd.f32 %v6138_v57, %v5610_v61  ;;  %v7046_v57 = vmov 0  }
 0xece   : > { %v3939_v35 = vadd.f32 %v5610_v61, %v3938_v15  ;;  %v6139_v51 = vpop.f32.mrb[74].mxu0  ;;  %4337 = vmatprep.mubr.bf16.mxu1 %v7046_v57  ;;  %4388 = vmatprep.mubr.bf16.mxu0 %v7046_v57 }
 0xecf   : > { %v3941_v16 = vpop.f32.mrb[75].mxu0  ;;  %v3954_v11 = vadd.f32 %v3947_v10, %v8197_v40  ;;  %v4032_v51 = vld [vmem:[%s8616_s20 + $0x58] sm:$0xff] }
 0xed0   : > { %v3952_v36 = vadd.f32 %v3939_v35, %v8191_v14  ;;  %v3942_v62 = vadd.f32 %v5610_v61, %v3941_v16  ;;  %v4031_v61 = vld [vmem:[%s8616_s20 + $0x50] sm:$0xff]  ;;  %v4024_v35 = vld [vmem:[%s8616_s20 + $0x18] sm:$0xff] }
 0xed1   : > { %v3965_v47 = vsel %vm2203_vm3, %v3954_v11, 0.0  ;;  %v5624_v15 = vcombine.low %v4023_v38, %v4031_v61  ;;  %v5625_v10 = vcombine.high %v4023_v38, %v4031_v61  ;;  %v5626_v16 = vcombine.low %v4024_v35, %v4032_v51 }
 0xed2   : > { %v3953_v18 = vadd.f32 %v3942_v62, %v8193_v1  ;;  %v3959_v45 = vsel %vm423_vm0, %v3952_v36, 0.0  ;;  %v5631_v38 = vcombine.high %v4026_v41, %v4034_v43 }
 0xed3   : > { %3960 = vadd.xlane.f32.xlu0 %v3959_v45  ;;  %4407 = vmatprep.subr.bf16.mxu1 %v5625_v10  ;;  %v4049_v10 = vld [vmem:[%s8616_s20 + $0xe0] sm:$0xff] }
 0xed4   : > { %v3962_v34 = vsel %vm423_vm0, %v3953_v18, 0.0 }
 0xed5   : > { %3963 = vadd.xlane.f32.xlu1 %v3962_v34 }
 0xed7   : > { %3966 = vadd.xlane.f32.xlu0 %v3965_v47 }
 0xf60   : > { %v3961_v37 = vpop.xlane.xlu0 %3960 }
 0xf61   : > { %v3968_v0 = vmul.f32 0.03125, %v3961_v37 }
 0xf62   : > { %v3964_v53 = vpop.xlane.xlu1 %3963 }
 0xf63   : > { %v8598_v6 = vsub.f32 %v3952_v36, %v3968_v0  ;;  %v3969_v14 = vmul.f32 0.03125, %v3964_v53  ;;  %v5627_v36 = vcombine.high %v4024_v35, %v4032_v51  ;;  %v4042_v35 = vld [vmem:[%s8616_s20 + $0xa8] sm:$0xff] }
 0xf64   : > { %v3967_v40 = vpop.xlane.xlu0 %3966  ;;  %v4050_v51 = vld [vmem:[%s8616_s20 + $0xe8] sm:$0xff] }
 0xf65   : > { %v8600_v44 = vsub.f32 %v3953_v18, %v3969_v14  ;;  %v3970_v1 = vmul.f32 0.03125, %v3967_v40  ;;  %v3974_v17 = vmul.f32 %v8598_v6, %v8598_v6  ;;  %4458 = vmatprep.subr.bf16.mxu0 %v5627_v36  ;;  %v5615_v40 = vld [vmem:[%s3955_s5] ss:$0 sm:$0xff]  ;;  %v5630_v36 = vcombine.low %v4026_v41, %v4034_v43 }
 0xf66   : > { %v4811_v41 = vld [vmem:[%s8697_s13 + $0x80] sm:$0xff] }
 0xf67   : > { %v8604_v46 = vsub.f32 %v3954_v11, %v3970_v1  ;;  %v3977_v4 = vsel %vm423_vm0, %v3974_v17, 0.0  ;;  %v3975_v52 = vmul.f32 %v8600_v44, %v8600_v44  ;;  %v4819_v43 = vld [vmem:[%s8697_s13 + $0xc0] sm:$0xff] }
 0xf68   : > { %3978 = vadd.xlane.f32.xlu0 %v3977_v4 }
 0xf69   : > { %v3980_v2 = vsel %vm423_vm0, %v3975_v52, 0.0  ;;  %v3976_v12 = vmul.f32 %v8604_v46, %v8604_v46 }
 0xf6a   : > { %3981 = vadd.xlane.f32.xlu1 %v3980_v2 }
 0xf6b   : > { %v3983_v42 = vsel %vm2203_vm3, %v3976_v12, 0.0  ;;  %v5616_v12 = vld [vmem:[%s3957_s18] ss:$0 sm:$0xff] }
 0xf6c   : > { %3984 = vadd.xlane.f32.xlu0 %v3983_v42 }
 0xff5   : > { %v3979_v62 = vpop.xlane.xlu0 %3978 }
 0xff6   : > { %v3986_v11 = vmul.f32 0.03125, %v3979_v62  ;;  %v4027_v62 = vld [vmem:[%s8616_s20 + $0x30] sm:$0xff] }
 0xff7   : > { %v3982_v18 = vpop.xlane.xlu1 %3981 }
 0xff8   : > { %v3989_v45 = vadd.f32 1e-05, %v3986_v11  ;;  %v3987_v34 = vmul.f32 0.03125, %v3982_v18  ;;  %v5647_v18 = vcombine.high %v4042_v35, %v4050_v51 }
 0xff9   : > { %v3985_v47 = vpop.xlane.xlu0 %3984 }
 0xffa   : > { %6497 = vrsqrt.f32 %v3989_v45  ;;  %v3990_v37 = vadd.f32 1e-05, %v3987_v34  ;;  %v3988_v0 = vmul.f32 0.03125, %v3985_v47  ;;  %v4035_v45 = vld [vmem:[%s8616_s20 + $0x70] sm:$0xff]  ;;  %v4028_v34 = vld [vmem:[%s8616_s20 + $0x38] sm:$0xff] }
 0xffb   : > { %v4036_v47 = vld [vmem:[%s8616_s20 + $0x78] sm:$0xff] }
 0xffc   : > { %6499 = vrsqrt.f32 %v3990_v37  ;;  %v3991_v53 = vadd.f32 1e-05, %v3988_v0  ;;  %v5646_v0 = vcombine.low %v4042_v35, %v4050_v51  ;;  %v8741_v51 = vld [vmem:[%s8697_s13 + $0x58] sm:$0xff] }
 0xffe   : > { %6501 = vrsqrt.f32 %v3991_v53  ;;  %v5633_v53 = vcombine.high %v4027_v62, %v4035_v45 }
0x1004   : > { %v6498_v14 = vpop.eup %6497 }
0x1005   : > { %v3995_v1 = vmul.f32 %v6498_v14, %v8598_v6  ;;  %v4047_v6 = vld [vmem:[%s8616_s20 + $0xd0] sm:$0xff]  ;;  %v5635_v14 = vcombine.high %v4028_v34, %v4036_v47 }
0x1006   : > { %v6500_v17 = vpop.eup %6499  ;;  %v5641_v39 = vcombine.high %v4039_v48, %v4047_v6 }
0x1007   : > { %v4004_v4 = vmul.f32 %v5615_v40, %v3995_v1  ;;  %v3996_v52 = vmul.f32 %v6500_v17, %v8600_v44  ;;  %v4051_v1 = vld [vmem:[%s8616_s20 + $0xf0] sm:$0xff]  ;;  %v4044_v17 = vld [vmem:[%s8616_s20 + $0xb8] sm:$0xff] }
0x1008   : > { %v6502_v2 = vpop.eup %6501 }
0x1009   : > { %v4005_v42 = vmul.f32 %v5615_v40, %v3996_v52  ;;  %v3997_v7 = vmul.f32 %v6502_v2, %v8604_v46  ;;  %v8638_v55 = vadd.f32 %v5616_v12, %v4004_v4  ;;  %v5640_v46 = vcombine.low %v4039_v48, %v4047_v6  ;;  %v4052_v4 = vld [vmem:[%s8616_s20 + $0xf8] sm:$0xff]  ;;  %v4803_v48 = vld [vmem:[%s8697_s13 + $0x40] sm:$0xff]  ;;  %v4796_v6 = vld [vmem:[%s8697_s13 + $0x8] sm:$0xff] }
0x100a   : > { %v5632_v52 = vcombine.low %v4027_v62, %v4035_v45  ;;  %v5634_v2 = vcombine.low %v4028_v34, %v4036_v47 }
0x100b   : > { %v8640_v56 = vadd.f32 %v5616_v12, %v4005_v42  ;;  %v4006_v8 = vmul.f32 %v5615_v40, %v3997_v7  ;;  %v4043_v40 = vld [vmem:[%s8616_s20 + $0xb0] sm:$0xff]  ;;  %v5651_v7 = vcombine.high %v4044_v17, %v4052_v4 }
0x100c   : > { %v5649_v42 = vcombine.high %v4043_v40, %v4051_v1  ;;  %v5648_v5 = vcombine.low %v4043_v40, %v4051_v1 }
0x100d   : > { %v8647_v44 = vpack.c.bf16 %v8640_v56, %v8638_v55  ;;  %v8657_v19 = vadd.f32 %v5616_v12, %v4006_v8  ;;  %v4795_v12 = vld [vmem:[%s8697_s13] sm:$0xff]  ;;  %v5650_v8 = vcombine.low %v4044_v17, %v4052_v4 }
0x100f   : > { %5652 = vmatmul.mubr.msk.bf16.vlgmr.msra.gmra.mrb[84].mxu1 %vm423_vm0, %v8647_v44  ;;  %5654 = vmatmul.mubr.msk.bf16.vlgmr.msra.gmra.mrb[76].mxu0 %vm423_vm0, %v8647_v44  ;;  %v8663_v61 = vpack.c.bf16 %v8657_v19, %v8657_v19 }
0x1010   : > { %4408 = vmatpush1.bf16.msra.mxu1 %v5624_v15  ;;  %4459 = vmatpush1.bf16.msra.mxu0 %v5626_v16  ;;  %v4041_v15 = vld [vmem:[%s8616_s20 + $0xa0] sm:$0xff]  ;;  %v5628_v16 = vcombine.low %v4025_v13, %v4033_v50  ;;  %v5671_v13 = vcombine.high %v4795_v12, %v4803_v48  ;;  %v5672_v50 = vcombine.low %v4796_v6, %v4804_v54 }
0x1011   : > { %4347 = vmatprep.mubr.bf16.mxu1 %v7046_v57  ;;  %4398 = vmatprep.mubr.bf16.mxu0 %v7046_v57  ;;  %v5645_v11 = vcombine.high %v4041_v15, %v4049_v10  ;;  %v5644_v37 = vcombine.low %v4041_v15, %v4049_v10  ;;  %v8730_v15 = vld [vmem:[%s8697_s13 + $0x10] sm:$0xff] }
0x1012   : > { %4409 = vmatprep.subr.bf16.mxu1 %v5641_v39  ;;  %4460 = vmatprep.subr.bf16.mxu0 %v5643_v49  ;;  %v5673_v39 = vcombine.high %v4796_v6, %v4804_v54  ;;  %v5670_v49 = vcombine.low %v4795_v12, %v4803_v48  ;;  %v8733_v10 = vld [vmem:[%s8697_s13 + $0x50] sm:$0xff] }
0x1013   : > { %v5675_v35 = vcombine.high %v8730_v15, %v8733_v10 }
0x1014   : > { %4410 = vmatpush1.bf16.msra.mxu1 %v5640_v46  ;;  %4461 = vmatpush1.bf16.msra.mxu0 %v5642_v9  ;;  %v4812_v46 = vld [vmem:[%s8697_s13 + $0x88] sm:$0xff] }
0x1015   : > { %4509 = vmatprep.subr.bf16.mxu1 %v5629_v60  ;;  %4560 = vmatprep.subr.bf16.mxu0 %v5631_v38  ;;  %v4820_v9 = vld [vmem:[%s8697_s13 + $0xc8] sm:$0xff]  ;;  %v5686_v60 = vcombine.low %v4811_v41, %v4819_v43 }
0x1016   : > { %v5688_v38 = vcombine.low %v4812_v46, %v4820_v9 }
0x1017   : > { %5653 = vmatmul.mubr.msk.bf16.gmra.mrb[88].mxu1 %vm423_vm0, %v8663_v61  ;;  %5655 = vmatmul.mubr.msk.bf16.gmra.mrb[80].mxu0 %vm423_vm0, %v8663_v61 }
0x1018   : > { %4439 = vmatprep.mubr.bf16.mxu1 %v7046_v57  ;;  %4490 = vmatprep.mubr.bf16.mxu0 %v7046_v57 }
0x101f   : > { %5656 = vmatmul.mubr.msk.bf16.vlgmr.msra.gmra.mrb[92].mxu1 %vm423_vm0, %v8647_v44  ;;  %5658 = vmatmul.mubr.msk.bf16.vlgmr.msra.gmra.mrb[84].mxu0 %vm423_vm0, %v8647_v44 }
0x1020   : > { %4510 = vmatpush1.bf16.msra.mxu1 %v5628_v16  ;;  %4561 = vmatpush1.bf16.msra.mxu0 %v5630_v36  ;;  %v5674_v16 = vcombine.low %v8730_v15, %v8733_v10  ;;  %v8800_v15 = vld [vmem:[%s8697_s13 + $0x60] sm:$0xff]  ;;  %v8803_v10 = vld [vmem:[%s8697_s13 + $0x28] sm:$0xff] }
0x1021   : > { %4449 = vmatprep.mubr.bf16.mxu1 %v7046_v57  ;;  %4500 = vmatprep.mubr.bf16.mxu0 %v7046_v57 }
0x1022   : > { %4511 = vmatprep.subr.bf16.mxu1 %v5645_v11  ;;  %4562 = vmatprep.subr.bf16.mxu0 %v5647_v18  ;;  %v8752_v11 = vld [vmem:[%s4054_s9] sm:$0xff]  ;;  %v9049_v18 = vld [vmem:[#allocation66_spill] sm:$0xff] }
0x1023   : > { %v4073_v45 = vsub.s32 3, %v9049_v18  ;;  %v4062_v34 = vrot.slane %v8752_v11, %v7679_v58  ;;  %v4070_v47 = vrot.slane %v8752_v11, %v7723_v63 }
0x1024   : > { %4512 = vmatpush1.bf16.msra.mxu1 %v5644_v37  ;;  %4563 = vmatpush1.bf16.msra.mxu0 %v5646_v0  ;;  %v4066_v37 = vrot.slane %v8752_v11, %v7682_v59 }
0x1025   : > { %4611 = vmatprep.subr.bf16.mxu1 %v5633_v53  ;;  %4662 = vmatprep.subr.bf16.mxu0 %v5635_v14  ;;  %v4074_v0 = vrot.slane %v8752_v11, %v4073_v45 }
0x1027   : > { %5657 = vmatmul.mubr.msk.bf16.gmra.mrb[96].mxu1 %vm423_vm0, %v8663_v61  ;;  %5659 = vmatmul.mubr.msk.bf16.gmra.mrb[88].mxu0 %vm423_vm0, %v8663_v61 }
0x1028   : > { %4541 = vmatprep.mubr.bf16.mxu1 %v7046_v57  ;;  %4592 = vmatprep.mubr.bf16.mxu0 %v7046_v57 }
0x102f   : > { %5660 = vmatmul.mubr.msk.bf16.vlgmr.msra.gmra.mrb[100].mxu1 %vm423_vm0, %v8647_v44  ;;  %5662 = vmatmul.mubr.msk.bf16.vlgmr.msra.gmra.mrb[92].mxu0 %vm423_vm0, %v8647_v44 }
0x1030   : > { %4612 = vmatpush1.bf16.msra.mxu1 %v5632_v52  ;;  %4663 = vmatpush1.bf16.msra.mxu0 %v5634_v2 }
0x1031   : > { %4551 = vmatprep.mubr.bf16.mxu1 %v7046_v57  ;;  %4602 = vmatprep.mubr.bf16.mxu0 %v7046_v57 }
0x1032   : > { %4613 = vmatprep.subr.bf16.mxu1 %v5649_v42  ;;  %4664 = vmatprep.subr.bf16.mxu0 %v5651_v7 }
0x1034   : > { %4614 = vmatpush1.bf16.msra.mxu1 %v5648_v5  ;;  %4665 = vmatpush1.bf16.msra.mxu0 %v5650_v8 }
0x1035   : > { %4995 = vmatprep.subr.bf16.mxu1 %v5671_v13  ;;  %5043 = vmatprep.subr.bf16.mxu0 %v5673_v39 }
0x1037   : > { %5661 = vmatmul.mubr.msk.bf16.gmra.mrb[104].mxu1 %vm423_vm0, %v8663_v61  ;;  %5663 = vmatmul.mubr.msk.bf16.gmra.mrb[96].mxu0 %vm423_vm0, %v8663_v61 }
0x1038   : > { %4643 = vmatprep.mubr.bf16.mxu1 %v7046_v57  ;;  %4694 = vmatprep.mubr.bf16.mxu0 %v7046_v57 }
0x103f   : > { %5664 = vmatmul.mubr.msk.bf16.vlgmr.msra.gmra.mrb[108].mxu1 %vm423_vm0, %v8647_v44  ;;  %5666 = vmatmul.mubr.msk.bf16.vlgmr.msra.gmra.mrb[100].mxu0 %vm423_vm0, %v8647_v44  ;;  %v5687_v44 = vcombine.high %v4811_v41, %v4819_v43  ;;  %v8765_v41 = vld [vmem:[%s8697_s13 + $0x90] sm:$0xff] }
0x1040   : > { %4653 = vmatprep.mubr.bf16.mxu1 %v7046_v57  ;;  %4704 = vmatprep.mubr.bf16.mxu0 %v7046_v57  ;;  %v5689_v57 = vcombine.high %v4812_v46, %v4820_v9  ;;  %v8768_v43 = vld [vmem:[%s8697_s13 + $0xd0] sm:$0xff] }
0x1041   : > { %4996 = vmatpush1.bf16.xpose.msra.mxu1 %v5670_v49  ;;  %5044 = vmatpush1.bf16.xpose.msra.mxu0 %v5672_v50 }
0x1042   : > { %4997 = vmatprep.subr.bf16.mxu1 %v5687_v44  ;;  %5045 = vmatprep.subr.bf16.mxu0 %v5689_v57  ;;  %v8774_v57 = vld [vmem:[%s8697_s13 + $0xd8] sm:$0xff] }
0x1047   : > { %5665 = vmatmul.mubr.msk.bf16.gmra.mrb[112].mxu1 %vm423_vm0, %v8663_v61  ;;  %5667 = vmatmul.mubr.msk.bf16.gmra.mrb[104].mxu0 %vm423_vm0, %v8663_v61  ;;  %v8736_v61 = vld [vmem:[%s8697_s13 + $0x18] sm:$0xff] }
0x1048   : > { %v5676_v36 = vcombine.low %v8736_v61, %v8741_v51  ;;  %v5677_v62 = vcombine.high %v8736_v61, %v8741_v51  ;;  %v8806_v61 = vld [vmem:[%s8697_s13 + $0x68] sm:$0xff] }
0x1049   : > { %4998 = vmatpush1.bf16.xpose.msra.mxu1 %v5686_v60  ;;  %5046 = vmatpush1.bf16.xpose.msra.mxu0 %v5688_v38  ;;  %v8771_v38 = vld [vmem:[%s8697_s13 + $0x98] sm:$0xff] }
0x104a   : > { %5091 = vmatprep.subr.bf16.mxu1 %v5675_v35  ;;  %5139 = vmatprep.subr.bf16.mxu0 %v5677_v62 }
0x10e2   : > { %v4339_v53 = vpop.f32.mrb[84].mxu1  ;;  %v4390_v14 = vpop.f32.mrb[76].mxu0 }
0x10e3   : > { %v4340_v40 = vadd.f32 %v4339_v53, %v4062_v34  ;;  %v4391_v1 = vadd.f32 %v4390_v14, %v4070_v47  ;;  %v4341_v17 = vpop.f32.mrb[85].mxu1  ;;  %v4392_v4 = vpop.f32.mrb[77].mxu0 }
0x10e4   : > { %v4342_v52 = vadd.f32 %v4341_v17, %v4066_v37  ;;  %v4393_v2 = vadd.f32 %v4392_v4, %v4074_v0  ;;  %v4343_v12 = vpop.f32.mrb[86].mxu1  ;;  %v4394_v42 = vpop.f32.mrb[78].mxu0  ;;  %v4077_v17 = vsub.s32 4, %v9049_v18  ;;  %v4085_v4 = vsub.s32 6, %v9049_v18 }
0x10e5   : > { %v4344_v7 = vadd.f32 %v4343_v12, %v4062_v34  ;;  %v4395_v48 = vadd.f32 %v4394_v42, %v4070_v47  ;;  %v4345_v6 = vpop.f32.mrb[87].mxu1  ;;  %v4396_v54 = vpop.f32.mrb[79].mxu0  ;;  %v4713_v13 = vmax.f32 %v4340_v40, 0.0  ;;  %v4715_v39 = vmax.f32 %v4391_v1, 0.0 }
0x10e6   : > { %v4346_v5 = vadd.f32 %v4345_v6, %v4066_v37  ;;  %v4397_v8 = vadd.f32 %v4396_v54, %v4074_v0  ;;  %v4714_v46 = vmax.f32 %v4342_v52, 0.0  ;;  %v4716_v44 = vmax.f32 %v4393_v2, 0.0 }
0x10e7   : > { %v4729_v49 = vmax.f32 %v4344_v7, 0.0  ;;  %v4731_v50 = vmax.f32 %v4395_v48, 0.0  ;;  %v5691_v7 = vcombine.high %v8765_v41, %v8768_v43  ;;  %v5693_v48 = vcombine.high %v8771_v38, %v8774_v57 }
0x10e8   : > { %v4730_v9 = vmax.f32 %v4346_v5, 0.0  ;;  %v4732_v60 = vmax.f32 %v4397_v8, 0.0 }
0x10e9   : > { %v4761_v35 = vpack.c.bf16 %v4729_v49, %v4713_v13  ;;  %v4763_v62 = vpack.c.bf16 %v4731_v50, %v4715_v39  ;;  %v4081_v13 = vsub.s32 5, %v9049_v18 }
0x10ea   : > { %v4762_v53 = vpack.c.bf16 %v4730_v9, %v4714_v46  ;;  %v4764_v14 = vpack.c.bf16 %v4732_v60, %v4716_v44  ;;  %v4349_v40 = vpop.f32.mrb[88].mxu1  ;;  %v4400_v1 = vpop.f32.mrb[80].mxu0  ;;  %v4078_v44 = vrot.slane %v8752_v11, %v4077_v17  ;;  %v4086_v9 = vrot.slane %v8752_v11, %v4085_v4 }
0x10eb   : > { %v4350_v12 = vadd.f32 %v4349_v40, %v4062_v34  ;;  %v4401_v42 = vadd.f32 %v4400_v1, %v4070_v47  ;;  %v4351_v52 = vpop.f32.mrb[89].mxu1  ;;  %v4402_v2 = vpop.f32.mrb[81].mxu0  ;;  %v4089_v34 = vsub.s32 7, %v9049_v18  ;;  %v5681_v1 = vcombine.high %v8803_v10, %v8806_v61 }
0x10ec   : > { %v4352_v6 = vadd.f32 %v4351_v52, %v4066_v37  ;;  %v4403_v54 = vadd.f32 %v4402_v2, %v4074_v0  ;;  %v4353_v5 = vpop.f32.mrb[90].mxu1  ;;  %v4404_v8 = vpop.f32.mrb[82].mxu0  ;;  %5027 = vmatprep.mubr.bf16.mxu1 %v4762_v53  ;;  %5075 = vmatprep.mubr.bf16.mxu0 %v4764_v14  ;;  %v8791_v37 = vld [vmem:[%s8697_s13 + $0x20] sm:$0xff]  ;;  %v5692_v14 = vcombine.low %v8771_v38, %v8774_v57 }
0x10ed   : > { %v4354_v47 = vpop.f32.mrb[91].mxu1  ;;  %v4405_v39 = vpop.f32.mrb[83].mxu0  ;;  %5028 = vmatmul.mubr.bf16.vlgmr.msra.gmra.mrb[116].mxu1 %v4761_v35  ;;  %5076 = vmatmul.mubr.bf16.vlgmr.msra.gmra.mrb[108].mxu0 %v4763_v62  ;;  %v4745_v0 = vmax.f32 %v4350_v12, 0.0  ;;  %v4747_v46 = vmax.f32 %v4401_v42, 0.0  ;;  %v4090_v60 = vrot.slane %v8752_v11, %v4089_v34  ;;  %v5690_v35 = vcombine.low %v8765_v41, %v8768_v43 }
0x10ee   : > { %v4746_v49 = vmax.f32 %v4352_v6, 0.0  ;;  %v4748_v50 = vmax.f32 %v4403_v54, 0.0  ;;  %5092 = vmatpush1.bf16.xpose.msra.mxu1 %v5674_v16  ;;  %5140 = vmatpush1.bf16.xpose.msra.mxu0 %v5676_v36  ;;  %v4082_v36 = vrot.slane %v8752_v11, %v4081_v13  ;;  %v5679_v40 = vcombine.high %v8791_v37, %v8800_v15 }
0x10ef   : > { %5093 = vmatprep.subr.bf16.mxu1 %v5691_v7  ;;  %5141 = vmatprep.subr.bf16.mxu0 %v5693_v48  ;;  %v4777_v12 = vpack.c.bf16 %v4745_v0, %v4745_v0  ;;  %v4779_v42 = vpack.c.bf16 %v4747_v46, %v4747_v46  ;;  %v8823_v46 = vld [vmem:[%s8697_s13 + $0xa0] sm:$0xff] }
0x10f0   : > { %v4778_v51 = vpack.c.bf16 %v4746_v49, %v4746_v49  ;;  %v4780_v16 = vpack.c.bf16 %v4748_v50, %v4748_v50 }
0x10f2   : > { %v4441_v62 = vpop.f32.mrb[92].mxu1  ;;  %v4492_v53 = vpop.f32.mrb[84].mxu0  ;;  %5035 = vmatprep.mubr.bf16.mxu1 %v4778_v51  ;;  %5083 = vmatprep.mubr.bf16.mxu0 %v4780_v16  ;;  %v8826_v51 = vld [vmem:[%s8697_s13 + $0xe0] sm:$0xff] }
0x10f3   : > { %v4442_v52 = vadd.f32 %v4441_v62, %v4078_v44  ;;  %v4493_v11 = vadd.f32 %v4492_v53, %v4086_v9  ;;  %v4443_v2 = vpop.f32.mrb[93].mxu1  ;;  %v4494_v7 = vpop.f32.mrb[85].mxu0 }
0x10f4   : > { %v4444_v41 = vadd.f32 %v4443_v2, %v4082_v36  ;;  %v4495_v43 = vadd.f32 %v4494_v7, %v4090_v60  ;;  %v4445_v48 = vpop.f32.mrb[94].mxu1  ;;  %v4496_v6 = vpop.f32.mrb[86].mxu0  ;;  %v8832_v2 = vld [vmem:[%s8697_s13 + $0xe8] sm:$0xff] }
0x10f5   : > { %v4446_v54 = vadd.f32 %v4445_v48, %v4078_v44  ;;  %v4497_v5 = vadd.f32 %v4496_v6, %v4086_v9  ;;  %v4447_v38 = vpop.f32.mrb[95].mxu1  ;;  %v4498_v57 = vpop.f32.mrb[87].mxu0  ;;  %5036 = vmatmul.mubr.bf16.gmra.mrb[120].mxu1 %v4777_v12  ;;  %5084 = vmatmul.mubr.bf16.gmra.mrb[112].mxu0 %v4779_v42  ;;  %v4717_v39 = vmax.f32 %v4442_v52, 0.0  ;;  %v4719_v49 = vmax.f32 %v4493_v11, 0.0  ;;  %v8829_v42 = vld [vmem:[%s8697_s13 + $0xa8] sm:$0xff] }
0x10f6   : > { %v4448_v8 = vadd.f32 %v4447_v38, %v4082_v36  ;;  %v4499_v47 = vadd.f32 %v4498_v57, %v4090_v60  ;;  %5094 = vmatpush1.bf16.xpose.msra.mxu1 %v5690_v35  ;;  %5142 = vmatpush1.bf16.xpose.msra.mxu0 %v5692_v14  ;;  %v4718_v16 = vmax.f32 %v4444_v41, 0.0  ;;  %v4720_v62 = vmax.f32 %v4495_v43, 0.0  ;;  %v8844_v57 = vld [vmem:[%s4054_s9 + $0x8] sm:$0xff] }
0x10f7   : > { %v4733_v50 = vmax.f32 %v4446_v54, 0.0  ;;  %v4735_v0 = vmax.f32 %v4497_v5, 0.0  ;;  %5187 = vmatprep.subr.bf16.mxu1 %v5679_v40  ;;  %5235 = vmatprep.subr.bf16.mxu0 %v5681_v1  ;;  %v5678_v1 = vcombine.low %v8791_v37, %v8800_v15  ;;  %v5680_v41 = vcombine.low %v8803_v10, %v8806_v61 }
0x10f8   : > { %v4734_v53 = vmax.f32 %v4448_v8, 0.0  ;;  %v4736_v12 = vmax.f32 %v4499_v47, 0.0  ;;  %v5695_v5 = vcombine.high %v8823_v46, %v8826_v51  ;;  %v5697_v38 = vcombine.high %v8829_v42, %v8832_v2 }
0x10f9   : > { %v4765_v35 = vpack.c.bf16 %v4733_v50, %v4717_v39  ;;  %v4767_v14 = vpack.c.bf16 %v4735_v0, %v4719_v49  ;;  %v8847_v39 = vld [vmem:[%s8697_s13 + $0x30] sm:$0xff]  ;;  %v4102_v50 = vrot.slane %v8844_v57, %v7723_v63  ;;  %v5694_v63 = vcombine.low %v8823_v46, %v8826_v51 }
0x10fa   : > { %v4766_v52 = vpack.c.bf16 %v4734_v53, %v4718_v16  ;;  %v4768_v11 = vpack.c.bf16 %v4736_v12, %v4720_v62  ;;  %v4451_v7 = vpop.f32.mrb[96].mxu1  ;;  %v4502_v40 = vpop.f32.mrb[88].mxu0  ;;  %v8854_v0 = vld [vmem:[%s8697_s13 + $0x70] sm:$0xff]  ;;  %v8857_v16 = vld [vmem:[%s8697_s13 + $0x38] sm:$0xff] }
0x10fb   : > { %v4452_v43 = vadd.f32 %v4451_v7, %v4078_v44  ;;  %v4503_v48 = vadd.f32 %v4502_v40, %v4086_v9  ;;  %v4453_v6 = vpop.f32.mrb[97].mxu1  ;;  %v4504_v54 = vpop.f32.mrb[89].mxu0  ;;  %v8860_v62 = vld [vmem:[%s8697_s13 + $0x78] sm:$0xff]  ;;  %v5683_v7 = vcombine.high %v8847_v39, %v8854_v0 }
0x10fc   : > { %v4454_v8 = vadd.f32 %v4453_v6, %v4082_v36  ;;  %v4505_v47 = vadd.f32 %v4504_v54, %v4090_v60  ;;  %v4455_v37 = vpop.f32.mrb[98].mxu1  ;;  %v4506_v15 = vpop.f32.mrb[90].mxu0  ;;  %5123 = vmatprep.mubr.bf16.mxu1 %v4766_v52  ;;  %5171 = vmatprep.mubr.bf16.mxu0 %v4768_v11  ;;  %v4094_v60 = vrot.slane %v8844_v57, %v7679_v58 }
0x10fd   : > { %v4456_v44 = vpop.f32.mrb[99].mxu1  ;;  %v4507_v9 = vpop.f32.mrb[91].mxu0  ;;  %5124 = vmatmul.mubr.bf16.vlgmr.msra.gmra.mrb[124].mxu1 %v4765_v35  ;;  %5172 = vmatmul.mubr.bf16.vlgmr.msra.gmra.mrb[116].mxu0 %v4767_v14  ;;  %v4749_v49 = vmax.f32 %v4452_v43, 0.0  ;;  %v4751_v36 = vmax.f32 %v4503_v48, 0.0  ;;  %v4098_v35 = vrot.slane %v8844_v57, %v7682_v59  ;;  %v4106_v58 = vrot.slane %v8844_v57, %v4073_v45 }
0x10fe   : > { %v4750_v10 = vmax.f32 %v4454_v8, 0.0  ;;  %v4752_v61 = vmax.f32 %v4505_v47, 0.0  ;;  %5188 = vmatpush1.bf16.xpose.msra.mxu1 %v5678_v1  ;;  %5236 = vmatpush1.bf16.xpose.msra.mxu0 %v5680_v41  ;;  %v5696_v11 = vcombine.low %v8829_v42, %v8832_v2  ;;  %v5685_v59 = vcombine.high %v8857_v16, %v8860_v62 }
0x10ff   : > { %5189 = vmatprep.subr.bf16.mxu1 %v5695_v5  ;;  %5237 = vmatprep.subr.bf16.mxu0 %v5697_v38  ;;  %v4781_v40 = vpack.c.bf16 %v4749_v49, %v4749_v49  ;;  %v4783_v1 = vpack.c.bf16 %v4751_v36, %v4751_v36 }
0x1100   : > { %v4782_v53 = vpack.c.bf16 %v4750_v10, %v4750_v10  ;;  %v4784_v12 = vpack.c.bf16 %v4752_v61, %v4752_v61  ;;  %v8876_v10 = vld [vmem:[%s8697_s13 + $0xb0] sm:$0xff] }
0x1101   : > { %v8879_v61 = vld [vmem:[%s8697_s13 + $0xf0] sm:$0xff] }
0x1102   : > { %v4543_v14 = vpop.f32.mrb[100].mxu1  ;;  %v4594_v52 = vpop.f32.mrb[92].mxu0  ;;  %5131 = vmatprep.mubr.bf16.mxu1 %v4782_v53  ;;  %5179 = vmatprep.mubr.bf16.mxu0 %v4784_v12 }
0x1103   : > { %v4544_v41 = vadd.f32 %v4543_v14, %v4094_v60  ;;  %v4595_v45 = vadd.f32 %v4594_v52, %v4102_v50  ;;  %v4545_v43 = vpop.f32.mrb[101].mxu1  ;;  %v4596_v48 = vpop.f32.mrb[93].mxu0  ;;  %v8882_v14 = vld [vmem:[%s8697_s13 + $0xb8] sm:$0xff] }
0x1104   : > { %v4546_v46 = vadd.f32 %v4545_v43, %v4098_v35  ;;  %v4597_v51 = vadd.f32 %v4596_v48, %v4106_v58  ;;  %v4547_v6 = vpop.f32.mrb[102].mxu1  ;;  %v4598_v54 = vpop.f32.mrb[94].mxu0  ;;  %v8885_v52 = vld [vmem:[%s8697_s13 + $0xf8] sm:$0xff] }
0x1105   : > { %v4548_v5 = vadd.f32 %v4547_v6, %v4094_v60  ;;  %v4599_v38 = vadd.f32 %v4598_v54, %v4102_v50  ;;  %v4549_v42 = vpop.f32.mrb[103].mxu1  ;;  %v4600_v2 = vpop.f32.mrb[95].mxu0  ;;  %5132 = vmatmul.mubr.bf16.gmra.mrb[128].mxu1 %v4781_v40  ;;  %5180 = vmatmul.mubr.bf16.gmra.mrb[120].mxu0 %v4783_v1  ;;  %v4721_v37 = vmax.f32 %v4544_v41, 0.0  ;;  %v4723_v15 = vmax.f32 %v4595_v45, 0.0 }
0x1106   : > { %v4550_v8 = vadd.f32 %v4549_v42, %v4098_v35  ;;  %v4601_v47 = vadd.f32 %v4600_v2, %v4106_v58  ;;  %5190 = vmatpush1.bf16.xpose.msra.mxu1 %v5694_v63  ;;  %5238 = vmatpush1.bf16.xpose.msra.mxu0 %v5696_v11  ;;  %v4722_v49 = vmax.f32 %v4546_v46, 0.0  ;;  %v4724_v36 = vmax.f32 %v4597_v51, 0.0 }
0x1107   : > { %v4737_v44 = vmax.f32 %v4548_v5, 0.0  ;;  %v4739_v9 = vmax.f32 %v4599_v38, 0.0  ;;  %5283 = vmatprep.subr.bf16.mxu1 %v5683_v7  ;;  %5331 = vmatprep.subr.bf16.mxu0 %v5685_v59  ;;  %v5682_v7 = vcombine.low %v8847_v39, %v8854_v0  ;;  %v5684_v59 = vcombine.low %v8857_v16, %v8860_v62 }
0x1108   : > { %v4738_v53 = vmax.f32 %v4550_v8, 0.0  ;;  %v4740_v12 = vmax.f32 %v4601_v47, 0.0  ;;  %v5699_v6 = vcombine.high %v8876_v10, %v8879_v61  ;;  %v5701_v54 = vcombine.high %v8882_v14, %v8885_v52 }
0x1109   : > { %v4769_v63 = vpack.c.bf16 %v4737_v44, %v4721_v37  ;;  %v4771_v11 = vpack.c.bf16 %v4739_v9, %v4723_v15  ;;  %v4110_v8 = vrot.slane %v8844_v57, %v4077_v17  ;;  %v4114_v37 = vrot.slane %v8844_v57, %v4081_v13 }
0x110a   : > { %v4770_v40 = vpack.c.bf16 %v4738_v53, %v4722_v49  ;;  %v4772_v1 = vpack.c.bf16 %v4740_v12, %v4724_v36  ;;  %v4553_v41 = vpop.f32.mrb[104].mxu1  ;;  %v4604_v45 = vpop.f32.mrb[96].mxu0  ;;  %v4122_v15 = vrot.slane %v8844_v57, %v4089_v34  ;;  %v5698_v17 = vcombine.low %v8876_v10, %v8879_v61 }
0x110b   : > { %v4554_v43 = vadd.f32 %v4553_v41, %v4094_v60  ;;  %v4605_v48 = vadd.f32 %v4604_v45, %v4102_v50  ;;  %v4555_v46 = vpop.f32.mrb[105].mxu1  ;;  %v4606_v51 = vpop.f32.mrb[97].mxu0 }
0x110c   : > { %v4556_v5 = vadd.f32 %v4555_v46, %v4098_v35  ;;  %v4607_v38 = vadd.f32 %v4606_v51, %v4106_v58  ;;  %v4557_v42 = vpop.f32.mrb[106].mxu1  ;;  %v4608_v2 = vpop.f32.mrb[98].mxu0  ;;  %5219 = vmatprep.mubr.bf16.mxu1 %v4770_v40  ;;  %5267 = vmatprep.mubr.bf16.mxu0 %v4772_v1  ;;  %v4118_v35 = vrot.slane %v8844_v57, %v4085_v4 }
0x110d   : > { %v4558_v39 = vpop.f32.mrb[107].mxu1  ;;  %v4609_v0 = vpop.f32.mrb[99].mxu0  ;;  %5220 = vmatmul.mubr.bf16.vlgmr.msra.gmra.mrb[132].mxu1 %v4769_v63  ;;  %5268 = vmatmul.mubr.bf16.vlgmr.msra.gmra.mrb[124].mxu0 %v4771_v11  ;;  %v4753_v16 = vmax.f32 %v4554_v43, 0.0  ;;  %v4755_v62 = vmax.f32 %v4605_v48, 0.0  ;;  %v5700_v4 = vcombine.low %v8882_v14, %v8885_v52 }
0x110e   : > { %v4754_v60 = vmax.f32 %v4556_v5, 0.0  ;;  %v4756_v50 = vmax.f32 %v4607_v38, 0.0  ;;  %5284 = vmatpush1.bf16.xpose.msra.mxu1 %v5682_v7  ;;  %5332 = vmatpush1.bf16.xpose.msra.mxu0 %v5684_v59 }
0x110f   : > { %5285 = vmatprep.subr.bf16.mxu1 %v5699_v6  ;;  %5333 = vmatprep.subr.bf16.mxu0 %v5701_v54  ;;  %v4785_v49 = vpack.c.bf16 %v4753_v16, %v4753_v16  ;;  %v4787_v36 = vpack.c.bf16 %v4755_v62, %v4755_v62 }
0x1110   : > { %v4786_v58 = vpack.c.bf16 %v4754_v60, %v4754_v60  ;;  %v4788_v47 = vpack.c.bf16 %v4756_v50, %v4756_v50 }
0x1112   : > { %v4645_v44 = vpop.f32.mrb[108].mxu1  ;;  %v4696_v9 = vpop.f32.mrb[100].mxu0  ;;  %5227 = vmatprep.mubr.bf16.mxu1 %v4786_v58  ;;  %5275 = vmatprep.mubr.bf16.mxu0 %v4788_v47 }
0x1113   : > { %v4646_v53 = vadd.f32 %v4645_v44, %v4110_v8  ;;  %v4697_v12 = vadd.f32 %v4696_v9, %v4118_v35  ;;  %v4647_v63 = vpop.f32.mrb[109].mxu1  ;;  %v4698_v13 = vpop.f32.mrb[101].mxu0 }
0x1114   : > { %v4648_v11 = vadd.f32 %v4647_v63, %v4114_v37  ;;  %v4699_v18 = vadd.f32 %v4698_v13, %v4122_v15  ;;  %v4649_v40 = vpop.f32.mrb[110].mxu1  ;;  %v4700_v34 = vpop.f32.mrb[102].mxu0 }
0x1115   : > { %v4650_v57 = vadd.f32 %v4649_v40, %v4110_v8  ;;  %v4701_v1 = vadd.f32 %v4700_v34, %v4118_v35  ;;  %v4651_v41 = vpop.f32.mrb[111].mxu1  ;;  %v4702_v45 = vpop.f32.mrb[103].mxu0  ;;  %5228 = vmatmul.mubr.bf16.gmra.mrb[136].mxu1 %v4785_v49  ;;  %5276 = vmatmul.mubr.bf16.gmra.mrb[128].mxu0 %v4787_v36  ;;  %v4725_v14 = vmax.f32 %v4646_v53, 0.0  ;;  %v4727_v52 = vmax.f32 %v4697_v12, 0.0 }
0x1116   : > { %v4652_v10 = vadd.f32 %v4651_v41, %v4114_v37  ;;  %v4703_v61 = vadd.f32 %v4702_v45, %v4122_v15  ;;  %5286 = vmatpush1.bf16.xpose.msra.mxu1 %v5698_v17  ;;  %5334 = vmatpush1.bf16.xpose.msra.mxu0 %v5700_v4  ;;  %v4726_v43 = vmax.f32 %v4648_v11, 0.0  ;;  %v4728_v48 = vmax.f32 %v4699_v18, 0.0 }
0x1117   : > { %v4741_v7 = vmax.f32 %v4650_v57, 0.0  ;;  %v4743_v59 = vmax.f32 %v4701_v1, 0.0 }
0x1118   : > { %v4742_v46 = vmax.f32 %v4652_v10, 0.0  ;;  %v4744_v51 = vmax.f32 %v4703_v61, 0.0 }
0x1119   : > { %v4773_v6 = vpack.c.bf16 %v4741_v7, %v4725_v14  ;;  %v4775_v54 = vpack.c.bf16 %v4743_v59, %v4727_v52 }
0x111a   : > { %v4774_v5 = vpack.c.bf16 %v4742_v46, %v4726_v43  ;;  %v4776_v38 = vpack.c.bf16 %v4744_v51, %v4728_v48  ;;  %v4655_v42 = vpop.f32.mrb[112].mxu1  ;;  %v4706_v2 = vpop.f32.mrb[104].mxu0 }
0x111b   : > { %v4656_v39 = vadd.f32 %v4655_v42, %v4110_v8  ;;  %v4707_v0 = vadd.f32 %v4706_v2, %v4118_v35  ;;  %v4657_v60 = vpop.f32.mrb[113].mxu1  ;;  %v4708_v50 = vpop.f32.mrb[105].mxu0 }
0x111c   : > { %v4658_v16 = vadd.f32 %v4657_v60, %v4114_v37  ;;  %v4709_v62 = vadd.f32 %v4708_v50, %v4122_v15  ;;  %v4659_v58 = vpop.f32.mrb[114].mxu1  ;;  %v4710_v47 = vpop.f32.mrb[106].mxu0  ;;  %5315 = vmatprep.mubr.bf16.mxu1 %v4774_v5  ;;  %5363 = vmatprep.mubr.bf16.mxu0 %v4776_v38  ;;  %v5669_v15 = vld [vmem:[%s4827_s25] ss:$0 sm:$0xff] }
0x111d   : > { %v4660_v44 = vpop.f32.mrb[115].mxu1  ;;  %v4711_v9 = vpop.f32.mrb[107].mxu0  ;;  %5316 = vmatmul.mubr.bf16.vlgmr.msra.gmra.mrb[140].mxu1 %v4773_v6  ;;  %5364 = vmatmul.mubr.bf16.vlgmr.msra.gmra.mrb[132].mxu0 %v4775_v54  ;;  %v4757_v49 = vmax.f32 %v4656_v39, 0.0  ;;  %v4759_v36 = vmax.f32 %v4707_v0, 0.0 }
0x111e   : > { %v4758_v17 = vmax.f32 %v4658_v16, 0.0  ;;  %v4760_v4 = vmax.f32 %v4709_v62, 0.0 }
0x111f   : > { %v4789_v35 = vpack.c.bf16 %v4757_v49, %v4757_v49  ;;  %v4791_v37 = vpack.c.bf16 %v4759_v36, %v4759_v36 }
0x1120   : > { %v4790_v53 = vpack.c.bf16 %v4758_v17, %v4758_v17  ;;  %v4792_v8 = vpack.c.bf16 %v4760_v4, %v4760_v4 }
0x1122   : > { %5323 = vmatprep.mubr.bf16.mxu1 %v4790_v53  ;;  %5371 = vmatprep.mubr.bf16.mxu0 %v4792_v8 }
0x1125   : > { %5324 = vmatmul.mubr.bf16.gmra.mrb[144].mxu1 %v4789_v35  ;;  %5372 = vmatmul.mubr.bf16.gmra.mrb[136].mxu0 %v4791_v37 }
0x11c0   : > { %v5029_v12 = vpop.f32.mrb[116].mxu1  ;;  %v5077_v63 = vpop.f32.mrb[108].mxu0 }
0x11c1   : > { %v5030_v13 = vadd.f32 %v5669_v15, %v5029_v12  ;;  %v5031_v11 = vpop.f32.mrb[117].mxu1  ;;  %v5079_v18 = vpop.f32.mrb[109].mxu0 }
0x11c2   : > { %v5032_v40 = vpop.f32.mrb[118].mxu1  ;;  %v5080_v34 = vpop.f32.mrb[110].mxu0 }
0x11c3   : > { %v5078_v57 = vadd.f32 %v5077_v63, %v5030_v13  ;;  %v5033_v1 = vadd.f32 %v5669_v15, %v5032_v40  ;;  %v5034_v41 = vpop.f32.mrb[119].mxu1  ;;  %v5082_v45 = vpop.f32.mrb[111].mxu0 }
0x11c5   : > { %v5081_v10 = vadd.f32 %v5080_v34, %v5033_v1 }
0x11c8   : > { %v5037_v61 = vpop.f32.mrb[120].mxu1  ;;  %v5085_v14 = vpop.f32.mrb[112].mxu0 }
0x11c9   : > { %v5038_v52 = vadd.f32 %v5669_v15, %v5037_v61  ;;  %v5039_v7 = vpop.f32.mrb[121].mxu1  ;;  %v5087_v59 = vpop.f32.mrb[113].mxu0 }
0x11ca   : > { %v5040_v43 = vpop.f32.mrb[122].mxu1  ;;  %v5088_v48 = vpop.f32.mrb[114].mxu0 }
0x11cb   : > { %v5086_v46 = vadd.f32 %v5085_v14, %v5038_v52  ;;  %v5041_v51 = vpop.f32.mrb[123].mxu1  ;;  %v5089_v6 = vpop.f32.mrb[115].mxu0 }
0x11d0   : > { %v5125_v54 = vpop.f32.mrb[124].mxu1  ;;  %v5173_v5 = vpop.f32.mrb[116].mxu0 }
0x11d1   : > { %v5126_v38 = vadd.f32 %v5125_v54, %v5078_v57  ;;  %v5127_v42 = vpop.f32.mrb[125].mxu1  ;;  %v5175_v2 = vpop.f32.mrb[117].mxu0 }
0x11d2   : > { %v5128_v39 = vpop.f32.mrb[126].mxu1  ;;  %v5176_v0 = vpop.f32.mrb[118].mxu0 }
0x11d3   : > { %v5174_v60 = vadd.f32 %v5173_v5, %v5126_v38  ;;  %v5129_v50 = vadd.f32 %v5128_v39, %v5081_v10  ;;  %v5130_v16 = vpop.f32.mrb[127].mxu1  ;;  %v5178_v62 = vpop.f32.mrb[119].mxu0 }
0x11d5   : > { %v5177_v58 = vadd.f32 %v5176_v0, %v5129_v50 }
0x11d8   : > { %v5133_v47 = vpop.f32.mrb[128].mxu1  ;;  %v5181_v44 = vpop.f32.mrb[120].mxu0 }
0x11d9   : > { %v5134_v9 = vadd.f32 %v5133_v47, %v5086_v46  ;;  %v5135_v17 = vpop.f32.mrb[129].mxu1  ;;  %v5183_v4 = vpop.f32.mrb[121].mxu0 }
0x11da   : > { %v5136_v49 = vpop.f32.mrb[130].mxu1  ;;  %v5184_v36 = vpop.f32.mrb[122].mxu0 }
0x11db   : > { %v5182_v53 = vadd.f32 %v5181_v44, %v5134_v9  ;;  %v5137_v8 = vpop.f32.mrb[131].mxu1  ;;  %v5185_v35 = vpop.f32.mrb[123].mxu0 }
0x11e0   : > { %v5221_v37 = vpop.f32.mrb[132].mxu1  ;;  %v5269_v15 = vpop.f32.mrb[124].mxu0 }
0x11e1   : > { %v5222_v12 = vadd.f32 %v5221_v37, %v5174_v60  ;;  %v5223_v63 = vpop.f32.mrb[133].mxu1  ;;  %v5271_v13 = vpop.f32.mrb[125].mxu0 }
0x11e2   : > { %v5224_v11 = vpop.f32.mrb[134].mxu1  ;;  %v5272_v18 = vpop.f32.mrb[126].mxu0 }
0x11e3   : > { %v5270_v40 = vadd.f32 %v5269_v15, %v5222_v12  ;;  %v5225_v34 = vadd.f32 %v5224_v11, %v5177_v58  ;;  %v5226_v57 = vpop.f32.mrb[135].mxu1  ;;  %v5274_v1 = vpop.f32.mrb[127].mxu0 }
0x11e5   : > { %v5273_v41 = vadd.f32 %v5272_v18, %v5225_v34 }
0x11e8   : > { %v5229_v45 = vpop.f32.mrb[136].mxu1  ;;  %v5277_v10 = vpop.f32.mrb[128].mxu0 }
0x11e9   : > { %v5230_v61 = vadd.f32 %v5229_v45, %v5182_v53  ;;  %v5231_v14 = vpop.f32.mrb[137].mxu1  ;;  %v5279_v52 = vpop.f32.mrb[129].mxu0 }
0x11ea   : > { %v5232_v7 = vpop.f32.mrb[138].mxu1  ;;  %v5280_v59 = vpop.f32.mrb[130].mxu0 }
0x11eb   : > { %v5278_v43 = vadd.f32 %v5277_v10, %v5230_v61  ;;  %v5233_v48 = vpop.f32.mrb[139].mxu1  ;;  %v5281_v46 = vpop.f32.mrb[131].mxu0 }
0x11f0   : > { %v5317_v51 = vpop.f32.mrb[140].mxu1  ;;  %v5365_v6 = vpop.f32.mrb[132].mxu0 }
0x11f1   : > { %v5318_v54 = vadd.f32 %v5317_v51, %v5270_v40  ;;  %v5319_v5 = vpop.f32.mrb[141].mxu1  ;;  %v5367_v38 = vpop.f32.mrb[133].mxu0 }
0x11f2   : > { %v5320_v42 = vpop.f32.mrb[142].mxu1  ;;  %v5368_v2 = vpop.f32.mrb[134].mxu0  ;;  %v5702_v38 = vld [vmem:[%s5382_s26] ss:$0 sm:$0xff] }
0x11f3   : > { %v5366_v39 = vadd.f32 %v5365_v6, %v5318_v54  ;;  %v5321_v0 = vadd.f32 %v5320_v42, %v5273_v41  ;;  %v5322_v60 = vpop.f32.mrb[143].mxu1  ;;  %v5370_v50 = vpop.f32.mrb[135].mxu0 }
0x11f5   : > { %v5379_v16 = vadd.f32 %v5366_v39, %v8638_v55  ;;  %v5369_v62 = vadd.f32 %v5368_v2, %v5321_v0  ;;  %v5703_v39 = vld [vmem:[%s5384_s19] ss:$0 sm:$0xff] }
0x11f7   : > { %v5380_v58 = vadd.f32 %v5369_v62, %v8640_v56  ;;  %v5386_v47 = vsel %vm423_vm0, %v5379_v16, 0.0 }
0x11f8   : > { %v5325_v44 = vpop.f32.mrb[144].mxu1  ;;  %v5373_v9 = vpop.f32.mrb[136].mxu0  ;;  %5387 = vadd.xlane.f32.xlu1 %v5386_v47 }
0x11f9   : > { %v5326_v17 = vadd.f32 %v5325_v44, %v5278_v43  ;;  %v5327_v4 = vpop.f32.mrb[145].mxu1  ;;  %v5375_v49 = vpop.f32.mrb[137].mxu0  ;;  %v5389_v36 = vsel %vm423_vm0, %v5380_v58, 0.0 }
0x11fa   : > { %v5328_v53 = vpop.f32.mrb[146].mxu1  ;;  %v5376_v8 = vpop.f32.mrb[138].mxu0  ;;  %5390 = vadd.xlane.f32.xlu0 %v5389_v36 }
0x11fb   : > { %v5374_v35 = vadd.f32 %v5373_v9, %v5326_v17  ;;  %v5329_v37 = vpop.f32.mrb[147].mxu1  ;;  %v5377_v15 = vpop.f32.mrb[139].mxu0 }
0x11fd   : > { %v5381_v55 = vadd.f32 %v5374_v35, %v8657_v19 }
0x11ff   : > { %v5392_v56 = vsel %vm2203_vm3, %v5381_v55, 0.0 }
0x1200   : > { %5393 = vadd.xlane.f32.xlu1 %v5392_v56 }
0x1285   : > { %v5388_v12 = vpop.xlane.xlu1 %5387 }
0x1286   : > { %v5395_v63 = vmul.f32 0.03125, %v5388_v12 }
0x1287   : > { %v5391_v13 = vpop.xlane.xlu0 %5390 }
0x1288   : > { %v5398_v11 = vsub.f32 %v5379_v16, %v5395_v63  ;;  %v5396_v18 = vmul.f32 0.03125, %v5391_v13 }
0x128a   : > { %v5399_v40 = vsub.f32 %v5380_v58, %v5396_v18  ;;  %v5401_v34 = vmul.f32 %v5398_v11, %v5398_v11 }
0x128c   : > { %v5404_v57 = vsel %vm423_vm0, %v5401_v34, 0.0  ;;  %v5402_v1 = vmul.f32 %v5399_v40, %v5399_v40 }
0x128d   : > { %5405 = vadd.xlane.f32.xlu0 %v5404_v57  ;;  %v5394_v41 = vpop.xlane.xlu1 %5393 }
0x128e   : > { %v5397_v45 = vmul.f32 0.03125, %v5394_v41  ;;  %v5407_v10 = vsel %vm423_vm0, %v5402_v1, 0.0 }
0x128f   : > { %5408 = vadd.xlane.f32.xlu1 %v5407_v10 }
0x1290   : > { %v5400_v19 = vsub.f32 %v5381_v55, %v5397_v45 }
0x1292   : > { %v5403_v61 = vmul.f32 %v5400_v19, %v5400_v19 }
0x1294   : > { %v5410_v14 = vsel %vm2203_vm3, %v5403_v61, 0.0 }
0x1295   : > { %5411 = vadd.xlane.f32.xlu0 %v5410_v14 }
0x131a   : > { %v5406_v52 = vpop.xlane.xlu0 %5405 }
0x131b   : > { %v5413_v7 = vmul.f32 0.03125, %v5406_v52 }
0x131c   : > { %v5409_v59 = vpop.xlane.xlu1 %5408 }
0x131d   : > { %v5416_v43 = vadd.f32 1e-05, %v5413_v7  ;;  %v5414_v48 = vmul.f32 0.03125, %v5409_v59 }
0x131f   : > { %6503 = vrsqrt.f32 %v5416_v43  ;;  %v5417_v46 = vadd.f32 1e-05, %v5414_v48 }
0x1321   : > { %6505 = vrsqrt.f32 %v5417_v46 }
0x1322   : > { %v5412_v51 = vpop.xlane.xlu0 %5411 }
0x1323   : > { %v5415_v6 = vmul.f32 0.03125, %v5412_v51 }
0x1325   : > { %v5418_v54 = vadd.f32 1e-05, %v5415_v6 }
0x1327   : > { %6507 = vrsqrt.f32 %v5418_v54 }
0x1329   : > { %v6504_v5 = vpop.eup %6503 }
0x132a   : > { %v5422_v42 = vmul.f32 %v6504_v5, %v5398_v11 }
0x132b   : > { %v6506_v2 = vpop.eup %6505 }
0x132c   : > { %v5431_v0 = vmul.f32 %v5702_v38, %v5422_v42  ;;  %v5423_v60 = vmul.f32 %v6506_v2, %v5399_v40 }
0x132e   : > { %v5440_v50 = vadd.f32 %v5703_v39, %v5431_v0   ;;  %v5432_v16 = vmul.f32 %v5702_v38, %v5423_v60 }
0x1330   : > { %v5441_v62 = vadd.f32 %v5703_v39, %v5432_v16  }
0x1331   : > { %v6508_v58 = vpop.eup %6507 }
0x1332   : > { %v5424_v47 = vmul.f32 %v6508_v58, %v5400_v19  ;;  %v9051_v40 = vmov %v5441_v62  ;;  %376 = sbr.rel (!%p374_p12) target bundleno = 405 (0x195), region = 209 }
0x1334   : > { %v5433_v44 = vmul.f32 %v5702_v38, %v5424_v47 }
0x1336   : > { %v5442_v9 = vadd.f32 %v5703_v39, %v5433_v44   ;;  %v9052_v39 = vmov %v5440_v50 }
0x1338   : > { %v9050_v41 = vmov %v5442_v9  ;;  %v5444_v17 = vsel (%p374_p12), %vm1477_vm2, %v5441_v62, %v5442_v9 }
0x1339   :  { %5446 = vst.msk [vmem:[#allocation32] sm:$0x3] %vm2203_vm3, %v5444_v17 }
0x133a   :  { %6938 = shalt.err (!%p6935_p3)
}
0x133b   :  { %s9053_s10 = sld [smem:[#allocation76_spill]] }
0x1341   :  { %s6939_s3 = scalar_lea.hbm %s9053_s10, 32 }
0x1342   :  { %p6940_p4 = scmp.ne.s32.totalorder %s9053_s10, %s6939_s3  ;;  %p6943_p5 = scmp.lt.u32.totalorder %s6939_s3, %s9053_s10 }
0x1344   :  { %p6945_p6 = pnand %p6943_p5, %p6940_p4 }
0x1346   :  { %6948 = shalt.err (!%p6945_p6)
}
0x1347   :  { %5456 = dma.vmem_to_hbm [thread:$0]  %s5454_s28, 32, %s9053_s10, [#allocation4]  }
0x1348   :  { %6985 = dma.done.wait [#allocation4], 32  }
0x1349   :  { %6986 = vsyncadd [#allocation4], 4294967264 }
0x134a   :  { %5460 = vsyncpa [#allocation3], 1 }
0x134b   :  { %5461 = vsyncpa [#allocation6], 1 }
0x134c   :  { %5462 = vsyncpa [#allocation9], 1 }
0x134d   :  { %5463 = vsyncpa [#allocation12], 1 }
0x134e   :  { %5464 = vsyncpa [#allocation15], 1 }
0x134f   :  { %5465 = vsyncpa [#allocation18], 1 }
0x1350   :  { %5466 = vsyncpa [#allocation21], 1 }
0x1351   :  { %5467 = vsyncpa [#allocation24], 1 }
0x1352   :  { %5468 = vsyncpa [#allocation27], 1 }
0x1353   :  { %5469 = vsyncpa [#allocation30], 1 }
0x1354   :  { %5470 = vsyncpa [#allocation4], 1 }

</bundles_post_ra>
